<compile_context>
chip_gen: v7x
topology: tpu7x:2x2x1
jax: 0.10.0
libtpu: 0.0.40
codegen_flags: <defaults>
</compile_context>

<pallas_src>
import functools
import math

import jax
import jax.numpy as jnp
from jax.experimental import pallas as pl
from jax.experimental.pallas import tpu as pltpu

TAU = 0.2
LANE = 128  # lane-dense (padded) output width


def _generator_kernel(x_ref, w1_ref, b1_ref, w2_ref, b2_ref, g_ref, o_ref, *,
                      num_cont, cat_dims):
    """Fused forward: 2 bf16 MXU matmuls + relu + per-group gumbel-softmax."""
    x = x_ref[...].astype(jnp.bfloat16)              # no-op when x is bf16

    # lin1 + relu — bf16 MXU operands, f32 accumulation.
    h = jnp.dot(x, w1_ref[...], preferred_element_type=jnp.float32) + b1_ref[...]
    h = jnp.maximum(h, 0.0)

    # Combined, lane-padded output projection: [num | cat0 | cat1 | ... | 0pad].
    z = jnp.dot(h.astype(jnp.bfloat16), w2_ref[...],
                preferred_element_type=jnp.float32) + b2_ref[...]   # (TB, LANE)

    width = o_ref.shape[-1]
    lane = jax.lax.broadcasted_iota(jnp.int32, (1, width), 1)

    inv_tau = jnp.float32(1.0 / TAU)
    y = (z + g_ref[...].astype(jnp.float32)) * inv_tau

    # Gumbel-softmax (tau=0.2), one categorical group at a time (static,
    # trace-time loop).  Per-group max avoids cross-group exp underflow; the
    # denominators are exact cross-lane (XLU) sums — no f32 MXU matmul — and
    # the normalization is an exact divide.
    neg = jnp.float32(-1e30)
    soft = jnp.zeros_like(z)
    off = num_cont
    for d in cat_dims:
        grp = (lane >= off) & (lane < off + d)               # (1, width)
        m_g = jnp.max(jnp.where(grp, y, neg), axis=-1, keepdims=True)
        e_g = jnp.exp(jnp.where(grp, y - m_g, neg))          # 0 outside group
        denom = jnp.sum(e_g, axis=-1, keepdims=True)         # >= 1 (has exp(0))
        soft = soft + e_g / denom
        off += d

    # Single lane-dense store: relu on numerical lanes, softmax on categorical
    # lanes, zeros on padding lanes (padded W2/b2 columns are zero -> relu 0).
    is_cat = (lane >= num_cont) & (lane < off)
    o_ref[...] = jnp.where(is_cat, soft, jnp.maximum(z, 0.0)).astype(o_ref.dtype)


def generator_forward(x, w1, b1, w2, b2, gumbel, *, num_cont, cat_dims,
                      out_dim, block_b=None):
    """Pallas wrapper: batch tiled on a tiny parallel grid; weights resident."""
    B, D = x.shape
    width = w2.shape[1]                              # lane-padded output width

    if block_b is None:
        # Exactly two parallel programs: keeps both v7x TensorCores busy while
        # the ~0.35 us/step grid overhead stays negligible on v5e/v6e (1 TC).
        block_b = B // 2 if (B % 2 == 0 and (B // 2) % 8 == 0) else B
    if B % block_b != 0:
        block_b = B  # single tile; avoids a wrapper-side jnp.pad HBM round-trip

    kernel = functools.partial(_generator_kernel, num_cont=num_cont,
                               cat_dims=tuple(cat_dims))

    out = pl.pallas_call(
        kernel,
        out_shape=jax.ShapeDtypeStruct((B, width), jnp.float32),
        grid=(B // block_b,),
        in_specs=[
            pl.BlockSpec((block_b, D), lambda i: (i, 0)),       # x      (bf16)
            pl.BlockSpec((D, D), lambda i: (0, 0)),             # W1     (bf16)
            pl.BlockSpec((1, D), lambda i: (0, 0)),             # b1     (f32)
            pl.BlockSpec((D, width), lambda i: (0, 0)),         # W2 pad (bf16)
            pl.BlockSpec((1, width), lambda i: (0, 0)),         # b2 pad (f32)
            pl.BlockSpec((block_b, width), lambda i: (i, 0)),   # gumbel (bf16)
        ],
        out_specs=pl.BlockSpec((block_b, width), lambda i: (i, 0)),
        compiler_params=pltpu.CompilerParams(
            dimension_semantics=("parallel",)),   # megacore / 2-TC sharding
    )(x, w1, b1, w2, b2, gumbel)

    return out[:, :out_dim]


def _linear_init(key, fan_in, fan_out):
    """PyTorch-style U(-1/sqrt(fan_in), 1/sqrt(fan_in)) init.
    Returns W transposed to (fan_in, fan_out) and bias (1, fan_out), f32."""
    kw, kb = jax.random.split(key)
    bound = 1.0 / math.sqrt(fan_in)
    w = jax.random.uniform(kw, (fan_in, fan_out), jnp.float32, -bound, bound)
    b = jax.random.uniform(kb, (1, fan_out), jnp.float32, -bound, bound)
    return w, b


def _reference_forward(x, w1, b1, w2, b2, gumbel, num_cont, cat_dims):
    """Pure-JAX reference with the same bf16-operand / f32-accumulate matmuls."""
    h = jnp.maximum(
        jnp.dot(x, w1, preferred_element_type=jnp.float32) + b1, 0.0)
    z = jnp.dot(h.astype(jnp.bfloat16), w2, preferred_element_type=jnp.float32) + b2
    inv_tau = jnp.float32(1.0 / TAU)
    parts = [jnp.maximum(z[:, :num_cont], 0.0)]
    off = num_cont
    for d in cat_dims:
        y = (z[:, off:off + d] + gumbel[:, off:off + d]) * inv_tau
        parts.append(jax.nn.softmax(y, axis=-1))
        off += d
    return jnp.concatenate(parts, axis=1)


if __name__ == "__main__":
    # Config consistent with Generator(input_dim, continuous_columns,
    # discrete_columns); batch sized to exercise the 2-program parallel grid.
    batch = 1024
    input_dim = 32
    continuous_columns = ["c0", "c1", "c2"]            # 3 numerical outputs
    discrete_columns = {"cat_a": 4, "cat_b": 5}        # categorical cardinalities
    num_cont = len(continuous_columns)
    cat_dims = tuple(discrete_columns.values())
    out_dim = num_cont + sum(cat_dims)

    root = jax.random.PRNGKey(0)
    k_x, k_l1, k_lnum, k_ca, k_cb, k_g = jax.random.split(root, 6)

    # bf16 noise straight from the samplers (halves the dominant HBM streams,
    # no separate cast op).  Gumbel is sampled lane-dense at the padded width;
    # only lanes [num_cont, out_dim) are ever used.
    x = jax.random.normal(k_x, (batch, input_dim), jnp.bfloat16)
    gumbel = jax.random.gumbel(k_g, (batch, LANE), jnp.bfloat16)

    # Parameters (deterministic, PyTorch-default-style uniform init).
    w1, b1 = _linear_init(k_l1, input_dim, input_dim)                 # lin1
    w_num, b_num = _linear_init(k_lnum, input_dim, num_cont)          # lin_numerical
    w_ca, b_ca = _linear_init(k_ca, input_dim, discrete_columns["cat_a"])
    w_cb, b_cb = _linear_init(k_cb, input_dim, discrete_columns["cat_b"])

    # Pack output heads into one combined projection, then lane-pad to 128.
    w2 = jnp.concatenate([w_num, w_ca, w_cb], axis=1)                 # (D, out_dim)
    b2 = jnp.concatenate([b_num, b_ca, b_cb], axis=1)                 # (1, out_dim)
    w2_pad = jnp.zeros((input_dim, LANE), jnp.float32).at[:, :out_dim].set(w2)
    b2_pad = jnp.zeros((1, LANE), jnp.float32).at[:, :out_dim].set(b2)

    # bf16 weight storage: halves weight DMA bytes, native MXU path.
    w1_bf = w1.astype(jnp.bfloat16)
    w2_bf = w2_pad.astype(jnp.bfloat16)

    out = generator_forward(x, w1_bf, b1, w2_bf, b2_pad, gumbel,
                            num_cont=num_cont, cat_dims=cat_dims,
                            out_dim=out_dim)
    out = jax.block_until_ready(out)

    ref = _reference_forward(x, w1_bf, b1, w2.astype(jnp.bfloat16), b2, gumbel,
                             num_cont, cat_dims)
    assert out.shape == (batch, out_dim)
    # Both sides use identical bf16-operand matmuls, identical per-group max
    # shifts and exact f32 reductions/divides -> agreement well under 1e-3.
    assert bool(jnp.allclose(out, ref, atol=1e-3, rtol=1e-3)), "mismatch vs reference"

    print("KERNEL_OK")
</pallas_src>

<mosaic_0001>
module attributes {stable_mosaic.version = 11 : i64} {
  func.func @_generator_kernel(%arg0: i32, %arg1: memref<512x32xbf16, #tpu.memory_space<vmem>>, %arg2: memref<32x32xbf16, #tpu.memory_space<vmem>>, %arg3: memref<1x32xf32, #tpu.memory_space<vmem>>, %arg4: memref<32x128xbf16, #tpu.memory_space<vmem>>, %arg5: memref<1x128xf32, #tpu.memory_space<vmem>>, %arg6: memref<512x128xbf16, #tpu.memory_space<vmem>>, %arg7: memref<512x128xf32, #tpu.memory_space<vmem>>) attributes {dimension_semantics = [#tpu.dimension_semantics<parallel>], iteration_bounds = array<i64: 2>, scalar_prefetch = 0 : i64, scratch_operands = 0 : i64, tpu.core_type = #tpu.core_type<tc>, window_params = [{transform_indices = @transform_0, window_bounds = array<i64: 512, 32>}, {pipeline_mode = #tpu.pipeline_mode<synchronous>, transform_indices = @transform_1, window_bounds = array<i64: 32, 32>}, {pipeline_mode = #tpu.pipeline_mode<synchronous>, transform_indices = @transform_2, window_bounds = array<i64: 1, 32>}, {pipeline_mode = #tpu.pipeline_mode<synchronous>, transform_indices = @transform_3, window_bounds = array<i64: 32, 128>}, {pipeline_mode = #tpu.pipeline_mode<synchronous>, transform_indices = @transform_4, window_bounds = array<i64: 1, 128>}, {transform_indices = @transform_5, window_bounds = array<i64: 512, 128>}, {transform_indices = @transform_6, window_bounds = array<i64: 512, 128>}]} {
    %c0 = arith.constant 0 : index
    %c0_0 = arith.constant 0 : index
    %0 = vector.load %arg1[%c0, %c0_0] : memref<512x32xbf16, #tpu.memory_space<vmem>>, vector<512x32xbf16>
    %c0_1 = arith.constant 0 : index
    %c0_2 = arith.constant 0 : index
    %1 = vector.load %arg2[%c0_1, %c0_2] : memref<32x32xbf16, #tpu.memory_space<vmem>>, vector<32x32xbf16>
    %cst = arith.constant dense<0.000000e+00> : vector<512x32xf32>
    %2 = tpu.matmul %0, %1, %cst {dimension_numbers = #tpu.dot_dimension_numbers<[1], [0], [0], [1], [0, 0, 1, 1], [], []>} : vector<512x32xbf16>, vector<32x32xbf16>, vector<512x32xf32> -> vector<512x32xf32>
    %c0_3 = arith.constant 0 : index
    %c0_4 = arith.constant 0 : index
    %3 = vector.load %arg3[%c0_3, %c0_4] : memref<1x32xf32, #tpu.memory_space<vmem>>, vector<1x32xf32>
    %4 = vector.broadcast %3 : vector<1x32xf32> to vector<512x32xf32>
    %5 = arith.addf %2, %4 : vector<512x32xf32>
    %cst_5 = arith.constant 0.000000e+00 : f32
    %6 = vector.broadcast %cst_5 : f32 to vector<512x32xf32>
    %7 = arith.maximumf %5, %6 : vector<512x32xf32>
    %8 = arith.truncf %7 : vector<512x32xf32> to vector<512x32xbf16>
    %c0_6 = arith.constant 0 : index
    %c0_7 = arith.constant 0 : index
    %9 = vector.load %arg4[%c0_6, %c0_7] : memref<32x128xbf16, #tpu.memory_space<vmem>>, vector<32x128xbf16>
    %cst_8 = arith.constant dense<0.000000e+00> : vector<512x128xf32>
    %10 = tpu.matmul %8, %9, %cst_8 {dimension_numbers = #tpu.dot_dimension_numbers<[1], [0], [0], [1], [0, 0, 1, 1], [], []>} : vector<512x32xbf16>, vector<32x128xbf16>, vector<512x128xf32> -> vector<512x128xf32>
    %c0_9 = arith.constant 0 : index
    %c0_10 = arith.constant 0 : index
    %11 = vector.load %arg5[%c0_9, %c0_10] : memref<1x128xf32, #tpu.memory_space<vmem>>, vector<1x128xf32>
    %12 = vector.broadcast %11 : vector<1x128xf32> to vector<512x128xf32>
    %13 = arith.addf %10, %12 : vector<512x128xf32>
    %14 = tpu.iota {dimensions = array<i32: 1>} : vector<1x128xi32>
    %c0_11 = arith.constant 0 : index
    %c0_12 = arith.constant 0 : index
    %15 = vector.load %arg6[%c0_11, %c0_12] : memref<512x128xbf16, #tpu.memory_space<vmem>>, vector<512x128xbf16>
    %16 = arith.extf %15 : vector<512x128xbf16> to vector<512x128xf32>
    %17 = arith.addf %13, %16 : vector<512x128xf32>
    %cst_13 = arith.constant 5.000000e+00 : f32
    %18 = vector.broadcast %cst_13 : f32 to vector<512x128xf32>
    %19 = arith.mulf %17, %18 : vector<512x128xf32>
    %cst_14 = arith.constant 0.000000e+00 : f32
    %20 = vector.broadcast %cst_14 : f32 to vector<512x128xf32>
    %c3_i32 = arith.constant 3 : i32
    %21 = vector.broadcast %c3_i32 : i32 to vector<1x128xi32>
    %22 = arith.cmpi sge, %14, %21 : vector<1x128xi32>
    %c7_i32 = arith.constant 7 : i32
    %23 = vector.broadcast %c7_i32 : i32 to vector<1x128xi32>
    %24 = arith.cmpi slt, %14, %23 : vector<1x128xi32>
    %25 = arith.andi %22, %24 : vector<1x128xi1>
    %cst_15 = arith.constant -1.000000e+30 : f32
    %26 = vector.shape_cast %25 : vector<1x128xi1> to vector<1x128xi1>
    %27 = vector.broadcast %26 : vector<1x128xi1> to vector<512x128xi1>
    %28 = vector.broadcast %cst_15 : f32 to vector<512x128xf32>
    %29 = arith.select %27, %19, %28 : vector<512x128xi1>, vector<512x128xf32>
    %cst_16 = arith.constant dense<0xFF800000> : vector<512xf32>
    %30 = vector.multi_reduction <maximumf>, %29, %cst_16 [1] : vector<512x128xf32> to vector<512xf32>
    %31 = vector.shape_cast %30 : vector<512xf32> to vector<512x1xf32>
    %32 = vector.broadcast %31 : vector<512x1xf32> to vector<512x128xf32>
    %33 = arith.subf %19, %32 : vector<512x128xf32>
    %cst_17 = arith.constant -1.000000e+30 : f32
    %34 = vector.shape_cast %25 : vector<1x128xi1> to vector<1x128xi1>
    %35 = vector.broadcast %34 : vector<1x128xi1> to vector<512x128xi1>
    %36 = vector.broadcast %cst_17 : f32 to vector<512x128xf32>
    %37 = arith.select %35, %33, %36 : vector<512x128xi1>, vector<512x128xf32>
    %38 = math.exp %37 : vector<512x128xf32>
    %cst_18 = arith.constant dense<0.000000e+00> : vector<512xf32>
    %39 = vector.multi_reduction <add>, %38, %cst_18 [1] : vector<512x128xf32> to vector<512xf32>
    %40 = vector.shape_cast %39 : vector<512xf32> to vector<512x1xf32>
    %41 = vector.broadcast %40 : vector<512x1xf32> to vector<512x128xf32>
    %42 = arith.divf %38, %41 : vector<512x128xf32>
    %43 = arith.addf %20, %42 : vector<512x128xf32>
    %c7_i32_19 = arith.constant 7 : i32
    %44 = vector.broadcast %c7_i32_19 : i32 to vector<1x128xi32>
    %45 = arith.cmpi sge, %14, %44 : vector<1x128xi32>
    %c12_i32 = arith.constant 12 : i32
    %46 = vector.broadcast %c12_i32 : i32 to vector<1x128xi32>
    %47 = arith.cmpi slt, %14, %46 : vector<1x128xi32>
    %48 = arith.andi %45, %47 : vector<1x128xi1>
    %cst_20 = arith.constant -1.000000e+30 : f32
    %49 = vector.shape_cast %48 : vector<1x128xi1> to vector<1x128xi1>
    %50 = vector.broadcast %49 : vector<1x128xi1> to vector<512x128xi1>
    %51 = vector.broadcast %cst_20 : f32 to vector<512x128xf32>
    %52 = arith.select %50, %19, %51 : vector<512x128xi1>, vector<512x128xf32>
    %cst_21 = arith.constant dense<0xFF800000> : vector<512xf32>
    %53 = vector.multi_reduction <maximumf>, %52, %cst_21 [1] : vector<512x128xf32> to vector<512xf32>
    %54 = vector.shape_cast %53 : vector<512xf32> to vector<512x1xf32>
    %55 = vector.broadcast %54 : vector<512x1xf32> to vector<512x128xf32>
    %56 = arith.subf %19, %55 : vector<512x128xf32>
    %cst_22 = arith.constant -1.000000e+30 : f32
    %57 = vector.shape_cast %48 : vector<1x128xi1> to vector<1x128xi1>
    %58 = vector.broadcast %57 : vector<1x128xi1> to vector<512x128xi1>
    %59 = vector.broadcast %cst_22 : f32 to vector<512x128xf32>
    %60 = arith.select %58, %56, %59 : vector<512x128xi1>, vector<512x128xf32>
    %61 = math.exp %60 : vector<512x128xf32>
    %cst_23 = arith.constant dense<0.000000e+00> : vector<512xf32>
    %62 = vector.multi_reduction <add>, %61, %cst_23 [1] : vector<512x128xf32> to vector<512xf32>
    %63 = vector.shape_cast %62 : vector<512xf32> to vector<512x1xf32>
    %64 = vector.broadcast %63 : vector<512x1xf32> to vector<512x128xf32>
    %65 = arith.divf %61, %64 : vector<512x128xf32>
    %66 = arith.addf %43, %65 : vector<512x128xf32>
    %c3_i32_24 = arith.constant 3 : i32
    %67 = vector.broadcast %c3_i32_24 : i32 to vector<1x128xi32>
    %68 = arith.cmpi sge, %14, %67 : vector<1x128xi32>
    %c12_i32_25 = arith.constant 12 : i32
    %69 = vector.broadcast %c12_i32_25 : i32 to vector<1x128xi32>
    %70 = arith.cmpi slt, %14, %69 : vector<1x128xi32>
    %71 = arith.andi %68, %70 : vector<1x128xi1>
    %cst_26 = arith.constant 0.000000e+00 : f32
    %72 = vector.broadcast %cst_26 : f32 to vector<512x128xf32>
    %73 = arith.maximumf %13, %72 : vector<512x128xf32>
    %74 = vector.shape_cast %71 : vector<1x128xi1> to vector<1x128xi1>
    %75 = vector.broadcast %74 : vector<1x128xi1> to vector<512x128xi1>
    %76 = arith.select %75, %66, %73 : vector<512x128xi1>, vector<512x128xf32>
    %c0_27 = arith.constant 0 : index
    %c0_28 = arith.constant 0 : index
    %77 = vector.load %arg7[%c0_27, %c0_28] : memref<512x128xf32, #tpu.memory_space<vmem>>, vector<512x128xf32>
    tpu.vector_store %arg7[%c0_27, %c0_28], %76 {strides = array<i32>} : memref<512x128xf32, #tpu.memory_space<vmem>>, vector<512x128xf32>,
    return
  }
  func.func @transform_0(%arg0: i32) -> (i32, i32) {
    %c0_i32 = arith.constant 0 : i32
    %c0_i32_0 = arith.constant 0 : i32
    return %arg0, %c0_i32 : i32, i32
  }
  func.func @transform_1(%arg0: i32) -> (i32, i32) {
    %c0_i32 = arith.constant 0 : i32
    %c0_i32_0 = arith.constant 0 : i32
    %c0_i32_1 = arith.constant 0 : i32
    return %c0_i32, %c0_i32_0 : i32, i32
  }
  func.func @transform_2(%arg0: i32) -> (i32, i32) {
    %c0_i32 = arith.constant 0 : i32
    %c0_i32_0 = arith.constant 0 : i32
    %c0_i32_1 = arith.constant 0 : i32
    return %c0_i32, %c0_i32_0 : i32, i32
  }
  func.func @transform_3(%arg0: i32) -> (i32, i32) {
    %c0_i32 = arith.constant 0 : i32
    %c0_i32_0 = arith.constant 0 : i32
    %c0_i32_1 = arith.constant 0 : i32
    return %c0_i32, %c0_i32_0 : i32, i32
  }
  func.func @transform_4(%arg0: i32) -> (i32, i32) {
    %c0_i32 = arith.constant 0 : i32
    %c0_i32_0 = arith.constant 0 : i32
    %c0_i32_1 = arith.constant 0 : i32
    return %c0_i32, %c0_i32_0 : i32, i32
  }
  func.func @transform_5(%arg0: i32) -> (i32, i32) {
    %c0_i32 = arith.constant 0 : i32
    %c0_i32_0 = arith.constant 0 : i32
    return %arg0, %c0_i32 : i32, i32
  }
  func.func @transform_6(%arg0: i32) -> (i32, i32) {
    %c0_i32 = arith.constant 0 : i32
    %c0_i32_0 = arith.constant 0 : i32
    return %arg0, %c0_i32 : i32, i32
  }
}

</mosaic_0001>

<bundles_post_ra>
// kernel: tpu_custom_call.1
= control target key start
LH: loop header
LB: loop body
LE: loop exit
PB: predicated region body
PF: predicated region fallthrough
CT: control target
= control target key end

     0   :  { %11 = vsyncpa [#allocation3], 0  ;;  %s7494_s0 = inlined_call_operand.vmem [shape: bf16[1024,32], index: 0, kind: input, shape index: {}]   ;;  %s7495_s1 = inlined_call_operand.vmem [shape: bf16[32,32], index: 1, kind: input, shape index: {}]   ;;  %s7496_s2 = inlined_call_operand.vmem [shape: f32[1,32], index: 2, kind: input, shape index: {}]   ;;  %s7497_s3 = inlined_call_operand.vmem [shape: bf16[32,128], index: 3, kind: input, shape index: {}]   ;;  %s7498_s4 = inlined_call_operand.vmem [shape: f32[1,128], index: 4, kind: input, shape index: {}]   ;;  %s7499_s5 = inlined_call_operand.vmem [shape: bf16[1024,128], index: 5, kind: input, shape index: {}]   ;;  %s7500_s6 = inlined_call_operand.hbm [shape: f32[1024,128], index: 6, kind: output, shape index: {}]  }
   0x1   :  { %13 = vsyncpa [#allocation3 + $0x1], 0  ;;  %s4672_s21 = smov 0   ;;  %s4674_s22 = smov 0  }
   0x2   :  { %s4676_s23 = smov 0   ;;  %s4678_s24 = smov 0  }
   0x3 LB: > { %s4693_s25 = sadd.s32 4294967295, %s4632_s24   ;;  %s3500_s26 = sadd.s32 4294967294, %s4632_s24   ;;  %s4632_s24 = sphi %s4678_s24, %s8205_s24   ;;  %s4628_s23 = sphi %s4676_s23, %s8204_s23   ;;  %s4624_s22 = sphi %s4674_s22, %s8203_s22   ;;  %s4620_s21 = sphi %s4672_s21, %s8202_s21  }
   0x4   : > { %s4697_s27 = sadd.s32 1, %s4632_s24   ;;  %s162_s28 = sadd.s32 1, %s4628_s23 }
   0x5   : > { %s159_s29 = ssub.s32 %s4632_s24, %s4697_s27  ;;  %p172_p0 = scmp.ne.s32.totalorder %s4628_s23, %s4624_s22 }
   0x6   : > { %p160_p1 = scmp.eq.s32.totalorder %s159_s29, 0  ;;  %p173_p2 = scmp.eq.s32.totalorder %s4693_s25, 1 }
   0x7   : > { %p178_p3 = scmp.ne.s32.totalorder %s4624_s22, %s4620_s21  ;;  %p179_p4 = scmp.eq.s32.totalorder %s3500_s26, 1 }
   0x8   : > { %s4708_s30 = scalar_select %p160_p1, %s4628_s23, %s162_s28  }
   0x9   : > { %p4710_p5 = por %p173_p2, %p172_p0  ;;  %p4714_p6 = por %p179_p4, %p178_p3 }
   0xa   : > { %p3503_p7 = scmp.ge.s32.totalorder %s4632_s24, 1  ;;  %p227_p8 = scmp.lt.s32.totalorder %s4632_s24, 3 }
   0xc   : > { %p228_p9 = pnand %p3503_p7, %p227_p8 }
   0xe   : > { %231 = sbr.rel (%p228_p9) target bundleno = 1153 (0x481), region = 44 }
  0x15   : > { %v4021_v0 = vld [vmem:[%s7495_s1] sm:$0xff]   ;;  %s3505_s11 = sshll.u32 %s4693_s25, 6  ;;  %v4022_v1 = vld [vmem:[%s7495_s1 + $0x8] sm:$0xff]   ;;  %vm523_vm0 = vcmask 261120   ;;  %s259_s16 = sand.u32 1, %s4624_s22  }
  0x16   : > { %p263_p10 = scmp.lt.s32.totalorder %s3505_s11, 127  ;;  %3844 = vmatprep.subr.bf16.mxu0 %v4021_v0  ;;  %v4052_v26 = vld [vmem:[%s7497_s3] sm:$0xff]   ;;  %v4054_v28 = vld [vmem:[%s7497_s3 + $0x8] sm:$0xff]   ;;  %s3616_s19 = sshll.u32 %s4693_s25, 13 }
  0x17   : > { %3845 = vmatpush3.bf16.msra.mxu0 %v4021_v0  ;;  %3912 = vmatprep.subr.bf16.mxu1 %v4052_v26  ;;  %v4810_v36 = vld [vmem:[%s7496_s2] ss:$0 sm:$0xff]  ;;  %s7441_s28 = scalar_lea.hbm %s7500_s6, %s3616_s19  ;;  %s7453_s29 = scalar_lea.sflag [#allocation3], %s259_s16 }
  0x18   : > { %s8207_s11 = smov (!%p263_p10, %s3505_s11), 127  ;;  %3846 = vmatprep.subr.bf16.mxu0 %v4022_v1  ;;  %3913 = vmatpush3.bf16.msra.mxu1 %v4052_v26  ;;  %s4634_s10 = smov [#allocation2]  }
  0x19   : > { %s3506_s14 = sshll.u32 %s8207_s11, 2  ;;  %3914 = vmatprep.subr.bf16.mxu1 %v4054_v28 }
  0x1a   : > { %s4735_s17 = scalar_lea.vmem %s7494_s0, %s3506_s14  ;;  %s4913_s12 = scalar_lea.vmem %s7499_s5, %s3506_s14 }
  0x1b   : > { %3847 = vmatpush3.bf16.msra.mxu0 %v4022_v1  ;;  %v4023_v2 = vld [vmem:[%s4735_s17] sm:$0xff]   ;;  %v4024_v3 = vld [vmem:[%s4735_s17 + $0x8] sm:$0xff]   ;;  %v4025_v4 = vld [vmem:[%s4735_s17 + $0x10] sm:$0xff]  }
  0x1c   : > { %3848 = vmatprep.mubr.msk.bf16.mxu0 %vm523_vm0, %v4023_v2  ;;  %v4026_v5 = vld [vmem:[%s4735_s17 + $0x18] sm:$0xff]   ;;  %v4027_v6 = vld [vmem:[%s4735_s17 + $0x20] sm:$0xff]   ;;  %v4028_v7 = vld [vmem:[%s4735_s17 + $0x28] sm:$0xff]   ;;  %3915 = vmatpush3.bf16.msra.mxu1 %v4054_v28 }
  0x1d   : > { %v4029_v8 = vld [vmem:[%s4735_s17 + $0x30] sm:$0xff]   ;;  %v4030_v9 = vld [vmem:[%s4735_s17 + $0x38] sm:$0xff]   ;;  %v4031_v10 = vld [vmem:[%s4735_s17 + $0x40] sm:$0xff]  }
  0x1e   : > { %3849 = vmatmul.mubr.msk.bf16.vlgmr.msra.gmra.mrb[0].mxu0 %vm523_vm0, %v4024_v3  ;;  %v4032_v11 = vld [vmem:[%s4735_s17 + $0x48] sm:$0xff]   ;;  %v4033_v12 = vld [vmem:[%s4735_s17 + $0x50] sm:$0xff]   ;;  %v4034_v13 = vld [vmem:[%s4735_s17 + $0x58] sm:$0xff]  }
  0x1f   : > { %3852 = vmatprep.mubr.msk.bf16.mxu0 %vm523_vm0, %v4025_v4  ;;  %v4035_v14 = vld [vmem:[%s4735_s17 + $0x60] sm:$0xff]   ;;  %v4036_v15 = vld [vmem:[%s4735_s17 + $0x68] sm:$0xff]   ;;  %v4037_v16 = vld [vmem:[%s4735_s17 + $0x70] sm:$0xff]  }
  0x20   : > { %v4038_v17 = vld [vmem:[%s4735_s17 + $0x78] sm:$0xff]   ;;  %v4039_v18 = vld [vmem:[%s4735_s17 + $0x80] sm:$0xff]   ;;  %v4040_v19 = vld [vmem:[%s4735_s17 + $0x88] sm:$0xff]  }
  0x21   : > { %v4041_v20 = vld [vmem:[%s4735_s17 + $0x90] sm:$0xff]   ;;  %v4042_v21 = vld [vmem:[%s4735_s17 + $0x98] sm:$0xff]   ;;  %v4043_v22 = vld [vmem:[%s4735_s17 + $0xa0] sm:$0xff]  }
  0x22   : > { %v4044_v23 = vld [vmem:[%s4735_s17 + $0xa8] sm:$0xff]   ;;  %v4045_v24 = vld [vmem:[%s4735_s17 + $0xb0] sm:$0xff]   ;;  %v4046_v25 = vld [vmem:[%s4735_s17 + $0xb8] sm:$0xff]  }
  0x23   : > { %v4047_v27 = vld [vmem:[%s4735_s17 + $0xc0] sm:$0xff]   ;;  %v4048_v29 = vld [vmem:[%s4735_s17 + $0xc8] sm:$0xff]   ;;  %v4049_v30 = vld [vmem:[%s4735_s17 + $0xd0] sm:$0xff]  }
  0x24   : > { %v4050_v31 = vld [vmem:[%s4735_s17 + $0xd8] sm:$0xff]   ;;  %v4051_v32 = vld [vmem:[%s4735_s17 + $0xe0] sm:$0xff]   ;;  %v4053_v33 = vld [vmem:[%s4735_s17 + $0xe8] sm:$0xff]  }
  0x25   : > { %v4055_v34 = vld [vmem:[%s4735_s17 + $0xf0] sm:$0xff]   ;;  %v4056_v35 = vld [vmem:[%s4735_s17 + $0xf8] sm:$0xff]   ;;  %s6748_s17 = sshll.u32 %s259_s16, 9 }
  0x26   : > { %3853 = vmatmul.mubr.msk.bf16.gmra.mrb[4].mxu0 %vm523_vm0, %v4026_v5  ;;  %s6790_s18 = scalar_lea.vmem [#allocation2], %s6748_s17 }
  0x27   : > { %3856 = vmatprep.mubr.msk.bf16.mxu0 %vm523_vm0, %v4027_v6  ;;  %s3426_s20 = sshll.u32 %s6790_s18, 4  ;;  %s7443_s20 = int_to_ptr.vmem [resolvable:$true] %s3426_s20 }
  0x28   : > { %s4570_s9 = scalar_lea.vmem %s7443_s20, 8192 }
  0x29   : > { %p4571_p11 = scmp.ne.s32.totalorder %s7443_s20, %s4570_s9 }
  0x2b   : > { %p4572_p12 = pnand %p4571_p11, %p4710_p5 }
  0x2d   : > { %p4573_p13 = pneg %p4572_p12 }
  0x2e   : > { %3857 = vmatmul.mubr.msk.bf16.gmra.mrb[8].mxu0 %vm523_vm0, %v4028_v7 }
  0x2f   : > { %3860 = vmatprep.mubr.msk.bf16.mxu0 %vm523_vm0, %v4029_v8 }
  0x36   : > { %3861 = vmatmul.mubr.msk.bf16.gmra.mrb[12].mxu0 %vm523_vm0, %v4030_v9 }
  0x37   : > { %3864 = vmatprep.mubr.msk.bf16.mxu0 %vm523_vm0, %v4031_v10 }
  0x3e   : > { %3865 = vmatmul.mubr.msk.bf16.gmra.mrb[16].mxu0 %vm523_vm0, %v4032_v11 }
  0x3f   : > { %3868 = vmatprep.mubr.msk.bf16.mxu0 %vm523_vm0, %v4033_v12 }
  0x46   : > { %3869 = vmatmul.mubr.msk.bf16.gmra.mrb[20].mxu0 %vm523_vm0, %v4034_v13 }
  0x47   : > { %3872 = vmatprep.mubr.msk.bf16.mxu0 %vm523_vm0, %v4035_v14 }
  0x4e   : > { %3873 = vmatmul.mubr.msk.bf16.gmra.mrb[24].mxu0 %vm523_vm0, %v4036_v15 }
  0x4f   : > { %3876 = vmatprep.mubr.msk.bf16.mxu0 %vm523_vm0, %v4037_v16 }
  0x56   : > { %3877 = vmatmul.mubr.msk.bf16.gmra.mrb[28].mxu0 %vm523_vm0, %v4038_v17 }
  0x57   : > { %3880 = vmatprep.mubr.msk.bf16.mxu0 %vm523_vm0, %v4039_v18 }
  0x5e   : > { %3881 = vmatmul.mubr.msk.bf16.gmra.mrb[32].mxu0 %vm523_vm0, %v4040_v19 }
  0x5f   : > { %3884 = vmatprep.mubr.msk.bf16.mxu0 %vm523_vm0, %v4041_v20 }
  0x66   : > { %3885 = vmatmul.mubr.msk.bf16.gmra.mrb[36].mxu0 %vm523_vm0, %v4042_v21 }
  0x67   : > { %3888 = vmatprep.mubr.msk.bf16.mxu0 %vm523_vm0, %v4043_v22 }
  0x6e   : > { %3889 = vmatmul.mubr.msk.bf16.gmra.mrb[40].mxu0 %vm523_vm0, %v4044_v23 }
  0x6f   : > { %3892 = vmatprep.mubr.msk.bf16.mxu0 %vm523_vm0, %v4045_v24 }
  0x76   : > { %3893 = vmatmul.mubr.msk.bf16.gmra.mrb[44].mxu0 %vm523_vm0, %v4046_v25 }
  0x77   : > { %3896 = vmatprep.mubr.msk.bf16.mxu0 %vm523_vm0, %v4047_v27 }
  0x7e   : > { %3897 = vmatmul.mubr.msk.bf16.gmra.mrb[48].mxu0 %vm523_vm0, %v4048_v29 }
  0x7f   : > { %3900 = vmatprep.mubr.msk.bf16.mxu0 %vm523_vm0, %v4049_v30 }
  0x86   : > { %3901 = vmatmul.mubr.msk.bf16.gmra.mrb[52].mxu0 %vm523_vm0, %v4050_v31 }
  0x87   : > { %3904 = vmatprep.mubr.msk.bf16.mxu0 %vm523_vm0, %v4051_v32 }
  0x8e   : > { %3905 = vmatmul.mubr.msk.bf16.gmra.mrb[56].mxu0 %vm523_vm0, %v4053_v33 }
  0x8f   : > { %3908 = vmatprep.mubr.msk.bf16.mxu0 %vm523_vm0, %v4055_v34 }
  0x96   : > { %3909 = vmatmul.mubr.msk.bf16.gmra.mrb[60].mxu0 %vm523_vm0, %v4056_v35 }
  0xf1   : > { %v3850_v37 = vpop.f32.mrb[0].mxu0 }
  0xf2   : > { %v663_v38 = vadd.f32 %v3850_v37, %v4810_v36  ;;  %v654_v39 = vpop.f32.mrb[1].mxu0 }
  0xf3   : > { %v655_v40 = vadd.f32 %v4810_v36, %v654_v39  ;;  %v3851_v41 = vpop.f32.mrb[2].mxu0 }
  0xf4   : > { %v666_v42 = vadd.f32 %v3851_v41, %v4810_v36  ;;  %v657_v43 = vpop.f32.mrb[3].mxu0  ;;  %v911_v45 = vmax.f32 %v663_v38, 0.0 }
  0xf5   : > { %v658_v44 = vadd.f32 %v4810_v36, %v657_v43  ;;  %v909_v47 = vmax.f32 %v655_v40, 0.0 }
  0xf6   : > { %v912_v46 = vmax.f32 %v666_v42, 0.0 }
  0xf7   : > { %v910_v48 = vmax.f32 %v658_v44, 0.0 }
  0xf8   : > { %v974_v49 = vpack.c.bf16 %v912_v46, %v911_v45 }
  0xf9   : > { %v3854_v50 = vpop.f32.mrb[4].mxu0  ;;  %v973_v51 = vpack.c.bf16 %v910_v48, %v909_v47 }
  0xfa   : > { %v679_v52 = vadd.f32 %v3854_v50, %v4810_v36  ;;  %v670_v53 = vpop.f32.mrb[5].mxu0 }
  0xfb   : > { %v671_v54 = vadd.f32 %v4810_v36, %v670_v53  ;;  %v3855_v55 = vpop.f32.mrb[6].mxu0  ;;  %3916 = vmatprep.mubr.msk.bf16.mxu1 %vm523_vm0, %v973_v51 }
  0xfc   : > { %v915_v56 = vmax.f32 %v679_v52, 0.0  ;;  %v682_v57 = vadd.f32 %v3855_v55, %v4810_v36  ;;  %v673_v58 = vpop.f32.mrb[7].mxu0  ;;  %3917 = vmatmul.mubr.msk.bf16.vlgmr.msra.gmra.mrb[0].mxu1 %vm523_vm0, %v974_v49 }
  0xfd   : > { %v913_v59 = vmax.f32 %v671_v54, 0.0  ;;  %v674_v60 = vadd.f32 %v4810_v36, %v673_v58 }
  0xfe   : > { %v916_v61 = vmax.f32 %v682_v57, 0.0 }
  0xff   : > { %v914_v62 = vmax.f32 %v674_v60, 0.0 }
 0x100   : > { %v976_v63 = vpack.c.bf16 %v916_v61, %v915_v56 }
 0x101   : > { %v975_v0 = vpack.c.bf16 %v914_v62, %v913_v59  ;;  %v3858_v1 = vpop.f32.mrb[8].mxu0 }
 0x102   : > { %v695_v2 = vadd.f32 %v3858_v1, %v4810_v36  ;;  %v686_v3 = vpop.f32.mrb[9].mxu0 }
 0x103   : > { %3920 = vmatprep.mubr.msk.bf16.mxu1 %vm523_vm0, %v975_v0  ;;  %v687_v4 = vadd.f32 %v4810_v36, %v686_v3  ;;  %v3859_v5 = vpop.f32.mrb[10].mxu0 }
 0x104   : > { %3921 = vmatmul.mubr.msk.bf16.gmra.mrb[4].mxu1 %vm523_vm0, %v976_v63  ;;  %v919_v6 = vmax.f32 %v695_v2, 0.0  ;;  %v698_v7 = vadd.f32 %v3859_v5, %v4810_v36  ;;  %v689_v8 = vpop.f32.mrb[11].mxu0 }
 0x105   : > { %v917_v9 = vmax.f32 %v687_v4, 0.0  ;;  %v690_v10 = vadd.f32 %v4810_v36, %v689_v8 }
 0x106   : > { %v920_v11 = vmax.f32 %v698_v7, 0.0 }
 0x107   : > { %v918_v12 = vmax.f32 %v690_v10, 0.0 }
 0x108   : > { %v978_v13 = vpack.c.bf16 %v920_v11, %v919_v6 }
 0x109   : > { %v977_v14 = vpack.c.bf16 %v918_v12, %v917_v9  ;;  %v3862_v15 = vpop.f32.mrb[12].mxu0 }
 0x10a   : > { %v711_v16 = vadd.f32 %v3862_v15, %v4810_v36  ;;  %v702_v17 = vpop.f32.mrb[13].mxu0 }
 0x10b   : > { %3924 = vmatprep.mubr.msk.bf16.mxu1 %vm523_vm0, %v977_v14  ;;  %v703_v18 = vadd.f32 %v4810_v36, %v702_v17  ;;  %v3863_v19 = vpop.f32.mrb[14].mxu0 }
 0x10c   : > { %3925 = vmatmul.mubr.msk.bf16.gmra.mrb[8].mxu1 %vm523_vm0, %v978_v13  ;;  %v923_v20 = vmax.f32 %v711_v16, 0.0  ;;  %v714_v21 = vadd.f32 %v3863_v19, %v4810_v36  ;;  %v705_v22 = vpop.f32.mrb[15].mxu0 }
 0x10d   : > { %v921_v23 = vmax.f32 %v703_v18, 0.0  ;;  %v706_v24 = vadd.f32 %v4810_v36, %v705_v22 }
 0x10e   : > { %v924_v25 = vmax.f32 %v714_v21, 0.0 }
 0x10f   : > { %v922_v26 = vmax.f32 %v706_v24, 0.0 }
 0x110   : > { %v980_v27 = vpack.c.bf16 %v924_v25, %v923_v20 }
 0x111   : > { %v979_v28 = vpack.c.bf16 %v922_v26, %v921_v23  ;;  %v3866_v29 = vpop.f32.mrb[16].mxu0 }
 0x112   : > { %v727_v30 = vadd.f32 %v3866_v29, %v4810_v36  ;;  %v718_v31 = vpop.f32.mrb[17].mxu0 }
 0x113   : > { %3928 = vmatprep.mubr.msk.bf16.mxu1 %vm523_vm0, %v979_v28  ;;  %v719_v32 = vadd.f32 %v4810_v36, %v718_v31  ;;  %v3867_v33 = vpop.f32.mrb[18].mxu0 }
 0x114   : > { %3929 = vmatmul.mubr.msk.bf16.gmra.mrb[12].mxu1 %vm523_vm0, %v980_v27  ;;  %v927_v34 = vmax.f32 %v727_v30, 0.0  ;;  %v730_v35 = vadd.f32 %v3867_v33, %v4810_v36  ;;  %v721_v37 = vpop.f32.mrb[19].mxu0 }
 0x115   : > { %v925_v38 = vmax.f32 %v719_v32, 0.0  ;;  %v722_v39 = vadd.f32 %v4810_v36, %v721_v37 }
 0x116   : > { %v928_v40 = vmax.f32 %v730_v35, 0.0 }
 0x117   : > { %v926_v41 = vmax.f32 %v722_v39, 0.0 }
 0x118   : > { %v982_v42 = vpack.c.bf16 %v928_v40, %v927_v34 }
 0x119   : > { %v981_v43 = vpack.c.bf16 %v926_v41, %v925_v38  ;;  %v3870_v44 = vpop.f32.mrb[20].mxu0 }
 0x11a   : > { %v743_v45 = vadd.f32 %v3870_v44, %v4810_v36  ;;  %v734_v46 = vpop.f32.mrb[21].mxu0 }
 0x11b   : > { %3932 = vmatprep.mubr.msk.bf16.mxu1 %vm523_vm0, %v981_v43  ;;  %v735_v47 = vadd.f32 %v4810_v36, %v734_v46  ;;  %v3871_v48 = vpop.f32.mrb[22].mxu0 }
 0x11c   : > { %3933 = vmatmul.mubr.msk.bf16.gmra.mrb[16].mxu1 %vm523_vm0, %v982_v42  ;;  %v931_v49 = vmax.f32 %v743_v45, 0.0  ;;  %v746_v50 = vadd.f32 %v3871_v48, %v4810_v36  ;;  %v737_v51 = vpop.f32.mrb[23].mxu0 }
 0x11d   : > { %v929_v52 = vmax.f32 %v735_v47, 0.0  ;;  %v738_v53 = vadd.f32 %v4810_v36, %v737_v51 }
 0x11e   : > { %v932_v54 = vmax.f32 %v746_v50, 0.0 }
 0x11f   : > { %v930_v55 = vmax.f32 %v738_v53, 0.0 }
 0x120   : > { %v984_v56 = vpack.c.bf16 %v932_v54, %v931_v49 }
 0x121   : > { %v983_v57 = vpack.c.bf16 %v930_v55, %v929_v52  ;;  %v3874_v58 = vpop.f32.mrb[24].mxu0 }
 0x122   : > { %v759_v59 = vadd.f32 %v3874_v58, %v4810_v36  ;;  %v750_v60 = vpop.f32.mrb[25].mxu0 }
 0x123   : > { %3936 = vmatprep.mubr.msk.bf16.mxu1 %vm523_vm0, %v983_v57  ;;  %v751_v61 = vadd.f32 %v4810_v36, %v750_v60  ;;  %v3875_v62 = vpop.f32.mrb[26].mxu0 }
 0x124   : > { %3937 = vmatmul.mubr.msk.bf16.gmra.mrb[20].mxu1 %vm523_vm0, %v984_v56  ;;  %v935_v63 = vmax.f32 %v759_v59, 0.0  ;;  %v762_v0 = vadd.f32 %v3875_v62, %v4810_v36  ;;  %v753_v1 = vpop.f32.mrb[27].mxu0 }
 0x125   : > { %v933_v2 = vmax.f32 %v751_v61, 0.0  ;;  %v754_v3 = vadd.f32 %v4810_v36, %v753_v1 }
 0x126   : > { %v936_v4 = vmax.f32 %v762_v0, 0.0 }
 0x127   : > { %v934_v5 = vmax.f32 %v754_v3, 0.0 }
 0x128   : > { %v986_v6 = vpack.c.bf16 %v936_v4, %v935_v63 }
 0x129   : > { %v985_v7 = vpack.c.bf16 %v934_v5, %v933_v2  ;;  %v3878_v8 = vpop.f32.mrb[28].mxu0 }
 0x12a   : > { %v775_v9 = vadd.f32 %v3878_v8, %v4810_v36  ;;  %v766_v10 = vpop.f32.mrb[29].mxu0 }
 0x12b   : > { %3940 = vmatprep.mubr.msk.bf16.mxu1 %vm523_vm0, %v985_v7  ;;  %v767_v11 = vadd.f32 %v4810_v36, %v766_v10  ;;  %v3879_v12 = vpop.f32.mrb[30].mxu0 }
 0x12c   : > { %3941 = vmatmul.mubr.msk.bf16.gmra.mrb[24].mxu1 %vm523_vm0, %v986_v6  ;;  %v939_v13 = vmax.f32 %v775_v9, 0.0  ;;  %v778_v14 = vadd.f32 %v3879_v12, %v4810_v36  ;;  %v769_v15 = vpop.f32.mrb[31].mxu0 }
 0x12d   : > { %v937_v16 = vmax.f32 %v767_v11, 0.0  ;;  %v770_v17 = vadd.f32 %v4810_v36, %v769_v15 }
 0x12e   : > { %v940_v18 = vmax.f32 %v778_v14, 0.0 }
 0x12f   : > { %v938_v19 = vmax.f32 %v770_v17, 0.0 }
 0x130   : > { %v988_v20 = vpack.c.bf16 %v940_v18, %v939_v13 }
 0x131   : > { %v987_v21 = vpack.c.bf16 %v938_v19, %v937_v16  ;;  %v3882_v22 = vpop.f32.mrb[32].mxu0 }
 0x132   : > { %v791_v23 = vadd.f32 %v3882_v22, %v4810_v36  ;;  %v782_v24 = vpop.f32.mrb[33].mxu0 }
 0x133   : > { %3944 = vmatprep.mubr.msk.bf16.mxu1 %vm523_vm0, %v987_v21  ;;  %v783_v25 = vadd.f32 %v4810_v36, %v782_v24  ;;  %v3883_v26 = vpop.f32.mrb[34].mxu0 }
 0x134   : > { %3945 = vmatmul.mubr.msk.bf16.gmra.mrb[28].mxu1 %vm523_vm0, %v988_v20  ;;  %v943_v27 = vmax.f32 %v791_v23, 0.0  ;;  %v794_v28 = vadd.f32 %v3883_v26, %v4810_v36  ;;  %v785_v29 = vpop.f32.mrb[35].mxu0 }
 0x135   : > { %v941_v30 = vmax.f32 %v783_v25, 0.0  ;;  %v786_v31 = vadd.f32 %v4810_v36, %v785_v29 }
 0x136   : > { %v944_v32 = vmax.f32 %v794_v28, 0.0 }
 0x137   : > { %v942_v33 = vmax.f32 %v786_v31, 0.0 }
 0x138   : > { %v990_v34 = vpack.c.bf16 %v944_v32, %v943_v27 }
 0x139   : > { %v989_v35 = vpack.c.bf16 %v942_v33, %v941_v30  ;;  %v3886_v37 = vpop.f32.mrb[36].mxu0 }
 0x13a   : > { %v807_v38 = vadd.f32 %v3886_v37, %v4810_v36  ;;  %v798_v39 = vpop.f32.mrb[37].mxu0 }
 0x13b   : > { %3948 = vmatprep.mubr.msk.bf16.mxu1 %vm523_vm0, %v989_v35  ;;  %v799_v40 = vadd.f32 %v4810_v36, %v798_v39  ;;  %v3887_v41 = vpop.f32.mrb[38].mxu0 }
 0x13c   : > { %3949 = vmatmul.mubr.msk.bf16.gmra.mrb[32].mxu1 %vm523_vm0, %v990_v34  ;;  %v947_v42 = vmax.f32 %v807_v38, 0.0  ;;  %v810_v43 = vadd.f32 %v3887_v41, %v4810_v36  ;;  %v801_v44 = vpop.f32.mrb[39].mxu0 }
 0x13d   : > { %v945_v45 = vmax.f32 %v799_v40, 0.0  ;;  %v802_v46 = vadd.f32 %v4810_v36, %v801_v44 }
 0x13e   : > { %v948_v47 = vmax.f32 %v810_v43, 0.0 }
 0x13f   : > { %v946_v48 = vmax.f32 %v802_v46, 0.0 }
 0x140   : > { %v992_v49 = vpack.c.bf16 %v948_v47, %v947_v42 }
 0x141   : > { %v991_v50 = vpack.c.bf16 %v946_v48, %v945_v45  ;;  %v3890_v51 = vpop.f32.mrb[40].mxu0 }
 0x142   : > { %v823_v52 = vadd.f32 %v3890_v51, %v4810_v36  ;;  %v814_v53 = vpop.f32.mrb[41].mxu0 }
 0x143   : > { %3952 = vmatprep.mubr.msk.bf16.mxu1 %vm523_vm0, %v991_v50  ;;  %v815_v54 = vadd.f32 %v4810_v36, %v814_v53  ;;  %v3891_v55 = vpop.f32.mrb[42].mxu0 }
 0x144   : > { %3953 = vmatmul.mubr.msk.bf16.gmra.mrb[36].mxu1 %vm523_vm0, %v992_v49  ;;  %v951_v56 = vmax.f32 %v823_v52, 0.0  ;;  %v826_v57 = vadd.f32 %v3891_v55, %v4810_v36  ;;  %v817_v58 = vpop.f32.mrb[43].mxu0 }
 0x145   : > { %v949_v59 = vmax.f32 %v815_v54, 0.0  ;;  %v818_v60 = vadd.f32 %v4810_v36, %v817_v58 }
 0x146   : > { %v952_v61 = vmax.f32 %v826_v57, 0.0 }
 0x147   : > { %v950_v62 = vmax.f32 %v818_v60, 0.0 }
 0x148   : > { %v994_v63 = vpack.c.bf16 %v952_v61, %v951_v56 }
 0x149   : > { %v993_v0 = vpack.c.bf16 %v950_v62, %v949_v59  ;;  %v3894_v1 = vpop.f32.mrb[44].mxu0 }
 0x14a   : > { %v839_v2 = vadd.f32 %v3894_v1, %v4810_v36  ;;  %v830_v3 = vpop.f32.mrb[45].mxu0 }
 0x14b   : > { %3956 = vmatprep.mubr.msk.bf16.mxu1 %vm523_vm0, %v993_v0  ;;  %v831_v4 = vadd.f32 %v4810_v36, %v830_v3  ;;  %v3895_v5 = vpop.f32.mrb[46].mxu0 }
 0x14c   : > { %3957 = vmatmul.mubr.msk.bf16.gmra.mrb[40].mxu1 %vm523_vm0, %v994_v63  ;;  %v955_v6 = vmax.f32 %v839_v2, 0.0  ;;  %v842_v7 = vadd.f32 %v3895_v5, %v4810_v36  ;;  %v833_v8 = vpop.f32.mrb[47].mxu0 }
 0x14d   : > { %v953_v9 = vmax.f32 %v831_v4, 0.0  ;;  %v834_v10 = vadd.f32 %v4810_v36, %v833_v8  ;;  %v1413_v8 = vlaneseq }
 0x14e   : > { %v956_v11 = vmax.f32 %v842_v7, 0.0 }
 0x14f   : > { %v954_v12 = vmax.f32 %v834_v10, 0.0  ;;  %v4916_v10 = vand.u32 127, %v1413_v8 }
 0x150   : > { %v996_v13 = vpack.c.bf16 %v956_v11, %v955_v6  ;;  %v4922_v11 = vld [vmem:[%s7498_s4] ss:$0 sm:$0xff] }
 0x151   : > { %v995_v14 = vpack.c.bf16 %v954_v12, %v953_v9  ;;  %v3898_v15 = vpop.f32.mrb[48].mxu0  ;;  %v3745_v9 = vld [vmem:[%s4913_s12 + $0x8] sm:$0xff]   ;;  %7760 = vst [vmem:[#allocation5_spill] sm:$0xff] %v4916_v10  ;;  %vm2444_vm1 = vcmp.ge.s32.totalorder %v4916_v10, 7  ;;  %vm2445_vm2 = vcmp.lt.s32.totalorder %v4916_v10, 12  ;;  %vm1671_vm3 = vcmp.ge.s32.totalorder %v4916_v10, 3 }
 0x152   : > { %v855_v16 = vadd.f32 %v3898_v15, %v4810_v36  ;;  %v846_v17 = vpop.f32.mrb[49].mxu0  ;;  %v3623_v12 = vunpack.c.l.bf16 %v3745_v9  ;;  %vm1672_vm4 = vcmp.lt.s32.totalorder %v4916_v10, 7  ;;  %vm4940_vm5 = vmand %vm2444_vm1, %vm2445_vm2 }
 0x153   : > { %3960 = vmatprep.mubr.msk.bf16.mxu1 %vm523_vm0, %v995_v14  ;;  %v847_v18 = vadd.f32 %v4810_v36, %v846_v17  ;;  %v3899_v19 = vpop.f32.mrb[50].mxu0  ;;  %v3624_v17 = vunpack.c.h.bf16 %v3745_v9  ;;  %vm4947_vm6 = vmand %vm1671_vm3, %vm1672_vm4 }
 0x154   : > { %3961 = vmatmul.mubr.msk.bf16.gmra.mrb[44].mxu1 %vm523_vm0, %v996_v13  ;;  %v959_v20 = vmax.f32 %v855_v16, 0.0  ;;  %v858_v21 = vadd.f32 %v3899_v19, %v4810_v36  ;;  %v849_v22 = vpop.f32.mrb[51].mxu0  ;;  %vm6765_vm7 = vmand %vm1671_vm3, %vm2445_vm2 }
 0x155   : > { %v957_v23 = vmax.f32 %v847_v18, 0.0  ;;  %v850_v24 = vadd.f32 %v4810_v36, %v849_v22 }
 0x156   : > { %v960_v25 = vmax.f32 %v858_v21, 0.0 }
 0x157   : > { %v958_v26 = vmax.f32 %v850_v24, 0.0 }
 0x158   : > { %v998_v27 = vpack.c.bf16 %v960_v25, %v959_v20 }
 0x159   : > { %v997_v28 = vpack.c.bf16 %v958_v26, %v957_v23  ;;  %v3902_v29 = vpop.f32.mrb[52].mxu0 }
 0x15a   : > { %v871_v30 = vadd.f32 %v3902_v29, %v4810_v36  ;;  %v862_v31 = vpop.f32.mrb[53].mxu0 }
 0x15b   : > { %3964 = vmatprep.mubr.msk.bf16.mxu1 %vm523_vm0, %v997_v28  ;;  %v863_v32 = vadd.f32 %v4810_v36, %v862_v31  ;;  %v3903_v33 = vpop.f32.mrb[54].mxu0 }
 0x15c   : > { %3965 = vmatmul.mubr.msk.bf16.gmra.mrb[48].mxu1 %vm523_vm0, %v998_v27  ;;  %v963_v34 = vmax.f32 %v871_v30, 0.0  ;;  %v874_v35 = vadd.f32 %v3903_v33, %v4810_v36  ;;  %v865_v37 = vpop.f32.mrb[55].mxu0  ;;  %v3747_v30 = vld [vmem:[%s4913_s12 + $0x18] sm:$0xff]  }
 0x15d   : > { %v961_v38 = vmax.f32 %v863_v32, 0.0  ;;  %v866_v39 = vadd.f32 %v4810_v36, %v865_v37 }
 0x15e   : > { %v964_v40 = vmax.f32 %v874_v35, 0.0 }
 0x15f   : > { %v962_v41 = vmax.f32 %v866_v39, 0.0  ;;  %v3631_v39 = vunpack.c.l.bf16 %v3747_v30 }
 0x160   : > { %v1000_v42 = vpack.c.bf16 %v964_v40, %v963_v34 }
 0x161   : > { %v999_v43 = vpack.c.bf16 %v962_v41, %v961_v38  ;;  %v3906_v44 = vpop.f32.mrb[56].mxu0  ;;  %v3632_v41 = vunpack.c.h.bf16 %v3747_v30 }
 0x162   : > { %v887_v45 = vadd.f32 %v3906_v44, %v4810_v36  ;;  %v878_v46 = vpop.f32.mrb[57].mxu0 }
 0x163   : > { %3968 = vmatprep.mubr.msk.bf16.mxu1 %vm523_vm0, %v999_v43  ;;  %v879_v47 = vadd.f32 %v4810_v36, %v878_v46  ;;  %v3907_v48 = vpop.f32.mrb[58].mxu0 }
 0x164   : > { %3969 = vmatmul.mubr.msk.bf16.gmra.mrb[52].mxu1 %vm523_vm0, %v1000_v42  ;;  %v967_v49 = vmax.f32 %v887_v45, 0.0  ;;  %v890_v50 = vadd.f32 %v3907_v48, %v4810_v36  ;;  %v881_v51 = vpop.f32.mrb[59].mxu0 }
 0x165   : > { %v965_v52 = vmax.f32 %v879_v47, 0.0  ;;  %v882_v53 = vadd.f32 %v4810_v36, %v881_v51 }
 0x166   : > { %v968_v54 = vmax.f32 %v890_v50, 0.0 }
 0x167   : > { %v966_v55 = vmax.f32 %v882_v53, 0.0 }
 0x168   : > { %v1002_v56 = vpack.c.bf16 %v968_v54, %v967_v49  ;;  %v3746_v49 = vld [vmem:[%s4913_s12 + $0x10] sm:$0xff]  }
 0x169   : > { %v1001_v57 = vpack.c.bf16 %v966_v55, %v965_v52  ;;  %v3910_v58 = vpop.f32.mrb[60].mxu0 }
 0x16a   : > { %v903_v59 = vadd.f32 %v3910_v58, %v4810_v36  ;;  %v894_v60 = vpop.f32.mrb[61].mxu0 }
 0x16b   : > { %3972 = vmatprep.mubr.msk.bf16.mxu1 %vm523_vm0, %v1001_v57  ;;  %v895_v61 = vadd.f32 %v4810_v36, %v894_v60  ;;  %v3911_v62 = vpop.f32.mrb[62].mxu0  ;;  %v3628_v57 = vunpack.c.h.bf16 %v3746_v49 }
 0x16c   : > { %3973 = vmatmul.mubr.msk.bf16.gmra.mrb[56].mxu1 %vm523_vm0, %v1002_v56  ;;  %v971_v63 = vmax.f32 %v903_v59, 0.0  ;;  %v906_v0 = vadd.f32 %v3911_v62, %v4810_v36  ;;  %v897_v1 = vpop.f32.mrb[63].mxu0  ;;  %v3627_v56 = vunpack.c.l.bf16 %v3746_v49 }
 0x16d   : > { %v969_v2 = vmax.f32 %v895_v61, 0.0  ;;  %v898_v3 = vadd.f32 %v4810_v36, %v897_v1  ;;  %v3618_v36 = vld [vmem:[%s4913_s12] sm:$0xff]  }
 0x16e   : > { %v972_v4 = vmax.f32 %v906_v0, 0.0  ;;  %v3619_v14 = vunpack.c.l.bf16 %v3618_v36  ;;  %v3620_v29 = vunpack.c.h.bf16 %v3618_v36 }
 0x16f   : > { %v970_v5 = vmax.f32 %v898_v3, 0.0  ;;  %v3749_v3 = vld [vmem:[%s4913_s12 + $0x28] sm:$0xff]  }
 0x170   : > { %v1004_v6 = vpack.c.bf16 %v972_v4, %v971_v63  ;;  %v3639_v9 = vunpack.c.l.bf16 %v3749_v3  ;;  %v3640_v36 = vunpack.c.h.bf16 %v3749_v3 }
 0x171   : > { %v1003_v7 = vpack.c.bf16 %v970_v5, %v969_v2 }
 0x173   : > { %3976 = vmatprep.mubr.msk.bf16.mxu1 %vm523_vm0, %v1003_v7 }
 0x174   : > { %3977 = vmatmul.mubr.msk.bf16.gmra.mrb[60].mxu1 %vm523_vm0, %v1004_v6 }
 0x1cf   : > { %v3918_v13 = vpop.f32.mrb[0].mxu1 }
 0x1d0   : > { %v4927_v15 = vadd.f32 %v3918_v13, %v4922_v11  ;;  %v1158_v16 = vpop.f32.mrb[1].mxu1 }
 0x1d1   : > { %v4932_v18 = vadd.f32 %v4922_v11, %v1158_v16  ;;  %v3919_v19 = vpop.f32.mrb[2].mxu1 }
 0x1d2   : > { %7761 = vst [vmem:[#allocation6_spill] sm:$0xff] %v4927_v15  ;;  %v1545_v20 = vadd.f32 %v3623_v12, %v4927_v15  ;;  %v4936_v21 = vadd.f32 %v3919_v19, %v4922_v11  ;;  %v1161_v22 = vpop.f32.mrb[3].mxu1 }
 0x1d3   : > { %7762 = vst [vmem:[#allocation7_spill] sm:$0xff] %v4932_v18  ;;  %v1543_v24 = vadd.f32 %v3619_v14, %v4932_v18  ;;  %v4955_v28 = vadd.f32 %v4922_v11, %v1161_v22 }
 0x1d4   : > { %7763 = vst [vmem:[#allocation8_spill] sm:$0xff] %v4936_v21  ;;  %v4951_v26 = vmul.f32 5.0, %v1545_v20  ;;  %v1546_v27 = vadd.f32 %v3624_v17, %v4936_v21 }
 0x1d5   : > { %7768 = vst [vmem:[#allocation9_spill] sm:$0xff] %v4955_v28  ;;  %v4958_v31 = vmul.f32 5.0, %v1543_v24  ;;  %v1544_v38 = vadd.f32 %v3620_v29, %v4955_v28  ;;  %v3748_v24 = vld [vmem:[%s4913_s12 + $0x20] sm:$0xff]  }
 0x1d6   : > { %v4960_v32 = vmul.f32 5.0, %v1546_v27  ;;  %v2451_v33 = vsel %vm4940_vm5, %v4951_v26, -1e+30  ;;  %v1678_v34 = vsel %vm4947_vm6, %v4951_v26, -1e+30 }
 0x1d7   : > { %2517 = vmax.xlane.f32.xlu0 %v2451_v33  ;;  %1744 = vmax.xlane.f32.xlu1 %v1678_v34  ;;  %v3922_v35 = vpop.f32.mrb[4].mxu1  ;;  %v1676_v46 = vsel %vm4947_vm6, %v4958_v31, -1e+30  ;;  %v4981_v47 = vmul.f32 5.0, %v1544_v38  ;;  %v2449_v52 = vsel %vm4940_vm5, %v4958_v31, -1e+30  ;;  %v3636_v38 = vunpack.c.h.bf16 %v3748_v24 }
 0x1d8   : > { %v1174_v37 = vpop.f32.mrb[5].mxu1  ;;  %v4970_v42 = vadd.f32 %v3922_v35, %v4922_v11  ;;  %v1679_v45 = vsel %vm4947_vm6, %v4960_v32, -1e+30  ;;  %v2452_v51 = vsel %vm4940_vm5, %v4960_v32, -1e+30 }
 0x1d9   : > { %v3923_v40 = vpop.f32.mrb[6].mxu1  ;;  %v4993_v55 = vadd.f32 %v4922_v11, %v1174_v37  ;;  %v2450_v58 = vsel %vm4940_vm5, %v4981_v47, -1e+30  ;;  %v1677_v63 = vsel %vm4947_vm6, %v4981_v47, -1e+30  ;;  %v3635_v37 = vunpack.c.l.bf16 %v3748_v24 }
 0x1da   : > { %7769 = vst [vmem:[#allocation10_spill] sm:$0xff] %v4970_v42  ;;  %v4973_v43 = vadd.f32 %v3923_v40, %v4922_v11  ;;  %v1177_v44 = vpop.f32.mrb[7].mxu1  ;;  %v1549_v48 = vadd.f32 %v3631_v39, %v4970_v42 }
 0x1db   : > { %1746 = vmax.xlane.f32.xlu1 %v1679_v45  ;;  %1740 = vmax.xlane.f32.xlu0 %v1676_v46  ;;  %7771 = vst [vmem:[#allocation12_spill] sm:$0xff] %v4993_v55  ;;  %v5003_v62 = vadd.f32 %v4922_v11, %v1177_v44  ;;  %v1547_v1 = vadd.f32 %v3627_v56, %v4993_v55 }
 0x1dc   : > { %7770 = vst [vmem:[#allocation11_spill] sm:$0xff] %v4973_v43  ;;  %v1550_v50 = vadd.f32 %v3632_v41, %v4973_v43  ;;  %v4998_v60 = vmul.f32 5.0, %v1549_v48 }
 0x1dd   : > { %7772 = vst [vmem:[#allocation13_spill] sm:$0xff] %v5003_v62  ;;  %v1548_v2 = vadd.f32 %v3628_v57, %v5003_v62  ;;  %v5019_v8 = vmul.f32 5.0, %v1547_v1 }
 0x1de   : > { %v5000_v61 = vmul.f32 5.0, %v1550_v50  ;;  %v1682_v5 = vsel %vm4947_vm6, %v4998_v60, -1e+30  ;;  %v2455_v12 = vsel %vm4940_vm5, %v4998_v60, -1e+30 }
 0x1df   : > { %2519 = vmax.xlane.f32.xlu1 %v2452_v51  ;;  %2513 = vmax.xlane.f32.xlu0 %v2449_v52  ;;  %v3926_v53 = vpop.f32.mrb[8].mxu1  ;;  %v5024_v14 = vmul.f32 5.0, %v1548_v2  ;;  %v1680_v30 = vsel %vm4947_vm6, %v5019_v8, -1e+30  ;;  %v2453_v39 = vsel %vm4940_vm5, %v5019_v8, -1e+30 }
 0x1e0   : > { %v1190_v54 = vpop.f32.mrb[9].mxu1  ;;  %v1683_v4 = vsel %vm4947_vm6, %v5000_v61, -1e+30  ;;  %v5027_v16 = vadd.f32 %v3926_v53, %v4922_v11  ;;  %v2456_v19 = vsel %vm4940_vm5, %v5000_v61, -1e+30  ;;  %v3751_v51 = vld [vmem:[%s4913_s12 + $0x38] sm:$0xff]  }
 0x1e1   : > { %v3927_v59 = vpop.f32.mrb[10].mxu1  ;;  %v1681_v29 = vsel %vm4947_vm6, %v5024_v14, -1e+30  ;;  %v5049_v35 = vadd.f32 %v4922_v11, %v1190_v54  ;;  %v2454_v46 = vsel %vm4940_vm5, %v5024_v14, -1e+30 }
 0x1e2   : > { %v1193_v0 = vpop.f32.mrb[11].mxu1  ;;  %7773 = vst [vmem:[#allocation14_spill] sm:$0xff] %v5027_v16  ;;  %v5030_v17 = vadd.f32 %v3927_v59, %v4922_v11  ;;  %v1553_v22 = vadd.f32 %v3639_v9, %v5027_v16  ;;  %v3648_v59 = vunpack.c.h.bf16 %v3751_v51 }
 0x1e3   : > { %2515 = vmax.xlane.f32.xlu1 %v2450_v58  ;;  %1742 = vmax.xlane.f32.xlu0 %v1677_v63  ;;  %7775 = vst [vmem:[#allocation16_spill] sm:$0xff] %v5049_v35  ;;  %v5061_v45 = vadd.f32 %v4922_v11, %v1193_v0  ;;  %v1551_v49 = vadd.f32 %v3635_v37, %v5049_v35  ;;  %v3647_v58 = vunpack.c.l.bf16 %v3751_v51 }
 0x1e4   : > { %7774 = vst [vmem:[#allocation15_spill] sm:$0xff] %v5030_v17  ;;  %v1554_v27 = vadd.f32 %v3640_v36, %v5030_v17  ;;  %v5056_v41 = vmul.f32 5.0, %v1553_v22  ;;  %v3750_v36 = vld [vmem:[%s4913_s12 + $0x30] sm:$0xff]  }
 0x1e5   : > { %7776 = vst [vmem:[#allocation17_spill] sm:$0xff] %v5061_v45  ;;  %v1552_v50 = vadd.f32 %v3636_v38, %v5061_v45  ;;  %v5081_v57 = vmul.f32 5.0, %v1551_v49 }
 0x1e6   : > { %v5058_v44 = vmul.f32 5.0, %v1554_v27  ;;  %v1686_v53 = vsel %vm4947_vm6, %v5056_v41, -1e+30  ;;  %v2459_v63 = vsel %vm4940_vm5, %v5056_v41, -1e+30  ;;  %v3643_v27 = vunpack.c.l.bf16 %v3750_v36 }
 0x1e7   : > { %1754 = vmax.xlane.f32.xlu1 %v1683_v4  ;;  %1752 = vmax.xlane.f32.xlu0 %v1682_v5  ;;  %v3930_v6 = vpop.f32.mrb[12].mxu1  ;;  %7777 = vst [vmem:[#allocation18_spill] sm:$0xff] %v5081_v57  ;;  %v5088_v1 = vmul.f32 5.0, %v1552_v50 }
 0x1e8   : > { %v5017_v7 = vpop.f32.mrb[13].mxu1  ;;  %v1687_v52 = vsel %vm4947_vm6, %v5058_v44, -1e+30  ;;  %v5091_v2 = vadd.f32 %v3930_v6, %v4922_v11  ;;  %v2460_v4 = vsel %vm4940_vm5, %v5058_v44, -1e+30 }
 0x1e9   : > { %v3931_v13 = vpop.f32.mrb[14].mxu1  ;;  %v1685_v6 = vsel %vm4947_vm6, %v5088_v1, -1e+30  ;;  %v5116_v24 = vadd.f32 %v4922_v11, %v5017_v7  ;;  %v2458_v7 = vsel %vm4940_vm5, %v5088_v1, -1e+30 }
 0x1ea   : > { %v1209_v20 = vpop.f32.mrb[15].mxu1  ;;  %7778 = vst [vmem:[#allocation19_spill] sm:$0xff] %v5091_v2  ;;  %v5094_v3 = vadd.f32 %v3931_v13, %v4922_v11  ;;  %v1557_v9 = vadd.f32 %v3647_v58, %v5091_v2  ;;  %v1684_v13 = vsel %vm4947_vm6, %v5081_v57, -1e+30 }
 0x1eb   : > { %2527 = vmax.xlane.f32.xlu1 %v2456_v19  ;;  %2525 = vmax.xlane.f32.xlu0 %v2455_v12  ;;  %7780 = vst [vmem:[#allocation21_spill] sm:$0xff] %v5116_v24  ;;  %v1555_v50 = vadd.f32 %v3643_v27, %v5116_v24 }
 0x1ec   : > { %7779 = vst [vmem:[#allocation20_spill] sm:$0xff] %v5094_v3  ;;  %v1558_v12 = vadd.f32 %v3648_v59, %v5094_v3  ;;  %v5123_v38 = vmul.f32 5.0, %v1557_v9 }
 0x1ee   : > { %7781 = vst [vmem:[#allocation22_spill] sm:$0xff] %v5123_v38 }
 0x1ef   : > { %1750 = vmax.xlane.f32.xlu1 %v1681_v29  ;;  %1748 = vmax.xlane.f32.xlu0 %v1680_v30  ;;  %v5044_v33 = vpop.f32.mrb[16].mxu1  ;;  %v3644_v29 = vunpack.c.h.bf16 %v3750_v36  ;;  %v2457_v30 = vsel %vm4940_vm5, %v5081_v57, -1e+30  ;;  %v2463_v36 = vsel %vm4940_vm5, %v5123_v38, -1e+30 }
 0x1f0   : > { %v5046_v34 = vpop.f32.mrb[17].mxu1 }
 0x1f1   : > { %v5054_v40 = vpop.f32.mrb[18].mxu1 }
 0x1f2   : > { %v5066_v48 = vpop.f32.mrb[19].mxu1  ;;  %v5163_v27 = vadd.f32 %v5054_v40, %v4922_v11 }
 0x1f3   : > { %2523 = vmax.xlane.f32.xlu1 %v2454_v46  ;;  %2521 = vmax.xlane.f32.xlu0 %v2453_v39  ;;  %v5125_v39 = vmul.f32 5.0, %v1558_v12  ;;  %v5128_v46 = vadd.f32 %v4922_v11, %v1209_v20  ;;  %v1690_v20 = vsel %vm4947_vm6, %v5123_v38, -1e+30 }
 0x1f4   : > { %7787 = vst [vmem:[#allocation28_spill] sm:$0xff] %v5163_v27 }
 0x1f5   : > { %7782 = vst [vmem:[#allocation23_spill] sm:$0xff] %v5125_v39  ;;  %7783 = vst [vmem:[#allocation24_spill] sm:$0xff] %v5128_v46  ;;  %v1556_v51 = vadd.f32 %v3644_v29, %v5128_v46  ;;  %v2464_v29 = vsel %vm4940_vm5, %v5125_v39, -1e+30 }
 0x1f7   : > { %1762 = vmax.xlane.f32.xlu1 %v1687_v52  ;;  %1760 = vmax.xlane.f32.xlu0 %v1686_v53  ;;  %v5077_v54 = vpop.f32.mrb[20].mxu1  ;;  %v3753_v52 = vld [vmem:[%s4913_s12 + $0x48] sm:$0xff]   ;;  %v1691_v53 = vsel %vm4947_vm6, %v5125_v39, -1e+30 }
 0x1f8   : > { %v5079_v56 = vpop.f32.mrb[21].mxu1  ;;  %v3656_v9 = vunpack.c.h.bf16 %v3753_v52 }
 0x1f9   : > { %v5086_v0 = vpop.f32.mrb[22].mxu1 }
 0x1fa   : > { %v5099_v5 = vpop.f32.mrb[23].mxu1 }
 0x1fb   : > { %2535 = vmax.xlane.f32.xlu1 %v2460_v4  ;;  %2533 = vmax.xlane.f32.xlu0 %v2459_v63  ;;  %v5148_v63 = vmul.f32 5.0, %v1555_v50  ;;  %v3655_v4 = vunpack.c.l.bf16 %v3753_v52  ;;  %v3752_v50 = vld [vmem:[%s4913_s12 + $0x40] sm:$0xff]  }
 0x1fd   : > { %7784 = vst [vmem:[#allocation25_spill] sm:$0xff] %v5148_v63  ;;  %v1688_v40 = vsel %vm4947_vm6, %v5148_v63, -1e+30 }
 0x1ff   : > { %1758 = vmax.xlane.f32.xlu1 %v1685_v6  ;;  %1756 = vmax.xlane.f32.xlu0 %v1684_v13  ;;  %v5110_v19 = vpop.f32.mrb[24].mxu1  ;;  %v5155_v6 = vmul.f32 5.0, %v1556_v51  ;;  %v5159_v13 = vadd.f32 %v5044_v33, %v4922_v11  ;;  %v1562_v51 = vadd.f32 %v3656_v9, %v5163_v27  ;;  %v3652_v9 = vunpack.c.h.bf16 %v3752_v50 }
 0x200   : > { %v5112_v22 = vpop.f32.mrb[25].mxu1 }
 0x201   : > { %v5121_v37 = vpop.f32.mrb[26].mxu1  ;;  %7785 = vst [vmem:[#allocation26_spill] sm:$0xff] %v5155_v6  ;;  %7786 = vst [vmem:[#allocation27_spill] sm:$0xff] %v5159_v13  ;;  %v1689_v33 = vsel %vm4947_vm6, %v5155_v6, -1e+30 }
 0x202   : > { %v5133_v49 = vpop.f32.mrb[27].mxu1 }
 0x203   : > { %2531 = vmax.xlane.f32.xlu1 %v2458_v7  ;;  %2529 = vmax.xlane.f32.xlu0 %v2457_v30  ;;  %v1561_v7 = vadd.f32 %v3655_v4, %v5159_v13  ;;  %v3651_v4 = vunpack.c.l.bf16 %v3752_v50 }
 0x205   : > { %v5192_v27 = vmul.f32 5.0, %v1561_v7  ;;  %v3755_v7 = vld [vmem:[%s4913_s12 + $0x58] sm:$0xff]  }
 0x207   : > { %1770 = vmax.xlane.f32.xlu1 %v1691_v53  ;;  %1768 = vmax.xlane.f32.xlu0 %v1690_v20  ;;  %v5144_v58 = vpop.f32.mrb[28].mxu1  ;;  %v5185_v20 = vadd.f32 %v4922_v11, %v5046_v34  ;;  %7789 = vst [vmem:[#allocation30_spill] sm:$0xff] %v5192_v27  ;;  %v2462_v34 = vsel %vm4940_vm5, %v5155_v6, -1e+30 }
 0x208   : > { %v5146_v59 = vpop.f32.mrb[29].mxu1 }
 0x209   : > { %v5153_v12 = vpop.f32.mrb[30].mxu1  ;;  %7788 = vst [vmem:[#allocation29_spill] sm:$0xff] %v5185_v20  ;;  %v1559_v50 = vadd.f32 %v3651_v4, %v5185_v20  ;;  %v3663_v4 = vunpack.c.l.bf16 %v3755_v7 }
 0x20a   : > { %v5168_v30 = vpop.f32.mrb[31].mxu1 }
 0x20b   : > { %2543 = vmax.xlane.f32.xlu1 %v2464_v29  ;;  %2541 = vmax.xlane.f32.xlu0 %v2463_v36  ;;  %v2461_v36 = vsel %vm4940_vm5, %v5148_v63, -1e+30 }
 0x20f   : > { %1766 = vmax.xlane.f32.xlu1 %v1689_v33  ;;  %1764 = vmax.xlane.f32.xlu0 %v1688_v40  ;;  %v5179_v52 = vpop.f32.mrb[32].mxu1  ;;  %v5194_v33 = vmul.f32 5.0, %v1562_v51  ;;  %v5198_v40 = vadd.f32 %v4922_v11, %v5066_v48  ;;  %v1694_v48 = vsel %vm4947_vm6, %v5192_v27, -1e+30 }
 0x210   : > { %v5181_v53 = vpop.f32.mrb[33].mxu1 }
 0x211   : > { %v5190_v29 = vpop.f32.mrb[34].mxu1  ;;  %7790 = vst [vmem:[#allocation31_spill] sm:$0xff] %v5194_v33  ;;  %7791 = vst [vmem:[#allocation32_spill] sm:$0xff] %v5198_v40  ;;  %v1560_v46 = vadd.f32 %v3652_v9, %v5198_v40  ;;  %v1695_v51 = vsel %vm4947_vm6, %v5194_v33, -1e+30  ;;  %v3664_v9 = vunpack.c.h.bf16 %v3755_v7 }
 0x212   : > { %v5203_v13 = vpop.f32.mrb[35].mxu1  ;;  %v2467_v40 = vsel %vm4940_vm5, %v5192_v27, -1e+30 }
 0x213   : > { %2539 = vmax.xlane.f32.xlu1 %v2462_v34  ;;  %2537 = vmax.xlane.f32.xlu0 %v2461_v36  ;;  %v5218_v36 = vmul.f32 5.0, %v1559_v50  ;;  %v5225_v3 = vmul.f32 5.0, %v1560_v46  ;;  %v2468_v50 = vsel %vm4940_vm5, %v5194_v33, -1e+30  ;;  %v3754_v46 = vld [vmem:[%s4913_s12 + $0x50] sm:$0xff]  }
 0x215   : > { %7792 = vst [vmem:[#allocation33_spill] sm:$0xff] %v5218_v36  ;;  %7793 = vst [vmem:[#allocation34_spill] sm:$0xff] %v5225_v3 }
 0x217   : > { %1778 = vmax.xlane.f32.xlu1 %v1695_v51  ;;  %1776 = vmax.xlane.f32.xlu0 %v1694_v48  ;;  %v5214_v24 = vpop.f32.mrb[36].mxu1  ;;  %v5229_v51 = vadd.f32 %v5077_v54, %v4922_v11  ;;  %v5233_v48 = vadd.f32 %v5086_v0, %v4922_v11  ;;  %v1693_v54 = vsel %vm4947_vm6, %v5225_v3, -1e+30  ;;  %v1692_v0 = vsel %vm4947_vm6, %v5218_v36, -1e+30 }
 0x218   : > { %v5216_v34 = vpop.f32.mrb[37].mxu1 }
 0x219   : > { %v5223_v20 = vpop.f32.mrb[38].mxu1  ;;  %7794 = vst [vmem:[#allocation35_spill] sm:$0xff] %v5229_v51  ;;  %7795 = vst [vmem:[#allocation36_spill] sm:$0xff] %v5233_v48  ;;  %v1565_v2 = vadd.f32 %v3663_v4, %v5229_v51  ;;  %v1566_v45 = vadd.f32 %v3664_v9, %v5233_v48  ;;  %v3659_v4 = vunpack.c.l.bf16 %v3754_v46  ;;  %v3660_v9 = vunpack.c.h.bf16 %v3754_v46 }
 0x21a   : > { %v5238_v7 = vpop.f32.mrb[39].mxu1  ;;  %v2465_v51 = vsel %vm4940_vm5, %v5218_v36, -1e+30 }
 0x21b   : > { %2551 = vmax.xlane.f32.xlu1 %v2468_v50  ;;  %2549 = vmax.xlane.f32.xlu0 %v2467_v40  ;;  %v5255_v40 = vadd.f32 %v4922_v11, %v5079_v56  ;;  %v5262_v17 = vmul.f32 5.0, %v1565_v2  ;;  %v2466_v56 = vsel %vm4940_vm5, %v5225_v3, -1e+30  ;;  %v3757_v2 = vld [vmem:[%s4913_s12 + $0x68] sm:$0xff]  }
 0x21d   : > { %7796 = vst [vmem:[#allocation37_spill] sm:$0xff] %v5255_v40  ;;  %7797 = vst [vmem:[#allocation38_spill] sm:$0xff] %v5262_v17  ;;  %v1563_v46 = vadd.f32 %v3659_v4, %v5255_v40  ;;  %v3671_v4 = vunpack.c.l.bf16 %v3757_v2  ;;  %v2471_v40 = vsel %vm4940_vm5, %v5262_v17, -1e+30 }
 0x21f   : > { %1774 = vmax.xlane.f32.xlu1 %v1693_v54  ;;  %1772 = vmax.xlane.f32.xlu0 %v1692_v0  ;;  %v5249_v35 = vpop.f32.mrb[40].mxu1  ;;  %v5264_v54 = vmul.f32 5.0, %v1566_v45  ;;  %v5268_v0 = vadd.f32 %v4922_v11, %v5099_v5  ;;  %v1698_v5 = vsel %vm4947_vm6, %v5262_v17, -1e+30 }
 0x220   : > { %v5251_v50 = vpop.f32.mrb[41].mxu1 }
 0x221   : > { %v5260_v48 = vpop.f32.mrb[42].mxu1  ;;  %7798 = vst [vmem:[#allocation39_spill] sm:$0xff] %v5264_v54  ;;  %7799 = vst [vmem:[#allocation40_spill] sm:$0xff] %v5268_v0  ;;  %v1564_v62 = vadd.f32 %v3660_v9, %v5268_v0  ;;  %v1699_v45 = vsel %vm4947_vm6, %v5264_v54, -1e+30  ;;  %v3672_v9 = vunpack.c.h.bf16 %v3757_v2 }
 0x222   : > { %v5273_v16 = vpop.f32.mrb[43].mxu1 }
 0x223   : > { %2547 = vmax.xlane.f32.xlu1 %v2466_v56  ;;  %2545 = vmax.xlane.f32.xlu0 %v2465_v51  ;;  %v5288_v51 = vmul.f32 5.0, %v1563_v46  ;;  %v5295_v43 = vmul.f32 5.0, %v1564_v62  ;;  %v2472_v46 = vsel %vm4940_vm5, %v5264_v54, -1e+30  ;;  %v3756_v62 = vld [vmem:[%s4913_s12 + $0x60] sm:$0xff]  }
 0x225   : > { %7800 = vst [vmem:[#allocation41_spill] sm:$0xff] %v5288_v51  ;;  %7801 = vst [vmem:[#allocation42_spill] sm:$0xff] %v5295_v43 }
 0x227   : > { %1786 = vmax.xlane.f32.xlu1 %v1699_v45  ;;  %1784 = vmax.xlane.f32.xlu0 %v1698_v5  ;;  %v5284_v55 = vpop.f32.mrb[44].mxu1  ;;  %v5299_v45 = vadd.f32 %v5110_v19, %v4922_v11  ;;  %v5303_v5 = vadd.f32 %v5121_v37, %v4922_v11  ;;  %v1697_v19 = vsel %vm4947_vm6, %v5295_v43, -1e+30  ;;  %v1696_v37 = vsel %vm4947_vm6, %v5288_v51, -1e+30 }
 0x228   : > { %v5286_v56 = vpop.f32.mrb[45].mxu1  ;;  %v5627_v33 = vadd.f32 %v5284_v55, %v4922_v11 }
 0x229   : > { %v5293_v0 = vpop.f32.mrb[46].mxu1  ;;  %7802 = vst [vmem:[#allocation43_spill] sm:$0xff] %v5299_v45  ;;  %7803 = vst [vmem:[#allocation44_spill] sm:$0xff] %v5303_v5  ;;  %v1569_v42 = vadd.f32 %v3671_v4, %v5299_v45  ;;  %v1570_v28 = vadd.f32 %v3672_v9, %v5303_v5  ;;  %v3667_v4 = vunpack.c.l.bf16 %v3756_v62  ;;  %v3668_v9 = vunpack.c.h.bf16 %v3756_v62 }
 0x22a   : > { %v5308_v2 = vpop.f32.mrb[47].mxu1  ;;  %v2469_v45 = vsel %vm4940_vm5, %v5288_v51, -1e+30  ;;  %7842 = vst [vmem:[#allocation83_spill] sm:$0xff] %v5627_v33 }
 0x22b   : > { %2559 = vmax.xlane.f32.xlu1 %v2472_v46  ;;  %2557 = vmax.xlane.f32.xlu0 %v2471_v40  ;;  %v5325_v40 = vadd.f32 %v4922_v11, %v5112_v22  ;;  %v5332_v21 = vmul.f32 5.0, %v1569_v42  ;;  %v2470_v22 = vsel %vm4940_vm5, %v5295_v43, -1e+30  ;;  %v3759_v42 = vld [vmem:[%s4913_s12 + $0x78] sm:$0xff]  }
 0x22d   : > { %7804 = vst [vmem:[#allocation45_spill] sm:$0xff] %v5325_v40  ;;  %7805 = vst [vmem:[#allocation46_spill] sm:$0xff] %v5332_v21  ;;  %v1567_v62 = vadd.f32 %v3667_v4, %v5325_v40  ;;  %v3679_v4 = vunpack.c.l.bf16 %v3759_v42  ;;  %v2475_v40 = vsel %vm4940_vm5, %v5332_v21, -1e+30 }
 0x22f   : > { %1782 = vmax.xlane.f32.xlu1 %v1697_v19  ;;  %1780 = vmax.xlane.f32.xlu0 %v1696_v37  ;;  %v5319_v18 = vpop.f32.mrb[48].mxu1  ;;  %v5334_v19 = vmul.f32 5.0, %v1570_v28  ;;  %v5338_v37 = vadd.f32 %v4922_v11, %v5133_v49  ;;  %v1702_v49 = vsel %vm4947_vm6, %v5332_v21, -1e+30 }
 0x230   : > { %v5321_v46 = vpop.f32.mrb[49].mxu1  ;;  %v5697_v39 = vadd.f32 %v5319_v18, %v4922_v11 }
 0x231   : > { %v5330_v5 = vpop.f32.mrb[50].mxu1  ;;  %7806 = vst [vmem:[#allocation47_spill] sm:$0xff] %v5334_v19  ;;  %7807 = vst [vmem:[#allocation48_spill] sm:$0xff] %v5338_v37  ;;  %v1568_v15 = vadd.f32 %v3668_v9, %v5338_v37  ;;  %v1703_v28 = vsel %vm4947_vm6, %v5334_v19, -1e+30  ;;  %v3680_v9 = vunpack.c.h.bf16 %v3759_v42 }
 0x232   : > { %v5343_v10 = vpop.f32.mrb[51].mxu1  ;;  %7850 = vst [vmem:[#allocation91_spill] sm:$0xff] %v5697_v39 }
 0x233   : > { %2555 = vmax.xlane.f32.xlu1 %v2470_v22  ;;  %2553 = vmax.xlane.f32.xlu0 %v2469_v45  ;;  %v5358_v45 = vmul.f32 5.0, %v1567_v62  ;;  %v5365_v43 = vmul.f32 5.0, %v1568_v15  ;;  %v2476_v62 = vsel %vm4940_vm5, %v5334_v19, -1e+30  ;;  %v3758_v15 = vld [vmem:[%s4913_s12 + $0x70] sm:$0xff]  }
 0x235   : > { %7808 = vst [vmem:[#allocation49_spill] sm:$0xff] %v5358_v45  ;;  %7809 = vst [vmem:[#allocation50_spill] sm:$0xff] %v5365_v43 }
 0x237   : > { %1794 = vmax.xlane.f32.xlu1 %v1703_v28  ;;  %1792 = vmax.xlane.f32.xlu0 %v1702_v49  ;;  %v5354_v51 = vpop.f32.mrb[52].mxu1  ;;  %v5369_v28 = vadd.f32 %v5144_v58, %v4922_v11  ;;  %v5373_v49 = vadd.f32 %v5153_v12, %v4922_v11  ;;  %v1701_v58 = vsel %vm4947_vm6, %v5365_v43, -1e+30  ;;  %v1700_v12 = vsel %vm4947_vm6, %v5358_v45, -1e+30 }
 0x238   : > { %v5356_v22 = vpop.f32.mrb[53].mxu1 }
 0x239   : > { %v5363_v37 = vpop.f32.mrb[54].mxu1  ;;  %7810 = vst [vmem:[#allocation51_spill] sm:$0xff] %v5369_v28  ;;  %7811 = vst [vmem:[#allocation52_spill] sm:$0xff] %v5373_v49  ;;  %v1573_v21 = vadd.f32 %v3679_v4, %v5369_v28  ;;  %v1574_v17 = vadd.f32 %v3680_v9, %v5373_v49  ;;  %v3675_v4 = vunpack.c.l.bf16 %v3758_v15  ;;  %v3676_v9 = vunpack.c.h.bf16 %v3758_v15 }
 0x23a   : > { %v5378_v42 = vpop.f32.mrb[55].mxu1  ;;  %v2473_v28 = vsel %vm4940_vm5, %v5358_v45, -1e+30 }
 0x23b   : > { %2567 = vmax.xlane.f32.xlu1 %v2476_v62  ;;  %2565 = vmax.xlane.f32.xlu0 %v2475_v40  ;;  %v5395_v40 = vadd.f32 %v4922_v11, %v5146_v59  ;;  %v5402_v54 = vmul.f32 5.0, %v1573_v21  ;;  %v2474_v59 = vsel %vm4940_vm5, %v5365_v43, -1e+30  ;;  %v3761_v21 = vld [vmem:[%s4913_s12 + $0x88] sm:$0xff]  }
 0x23d   : > { %7812 = vst [vmem:[#allocation53_spill] sm:$0xff] %v5395_v40  ;;  %7813 = vst [vmem:[#allocation54_spill] sm:$0xff] %v5402_v54  ;;  %v1571_v15 = vadd.f32 %v3675_v4, %v5395_v40  ;;  %v3687_v4 = vunpack.c.l.bf16 %v3761_v21  ;;  %v2479_v40 = vsel %vm4940_vm5, %v5402_v54, -1e+30 }
 0x23f   : > { %1790 = vmax.xlane.f32.xlu1 %v1701_v58  ;;  %1788 = vmax.xlane.f32.xlu0 %v1700_v12  ;;  %v5389_v19 = vpop.f32.mrb[56].mxu1  ;;  %v5404_v58 = vmul.f32 5.0, %v1574_v17  ;;  %v5408_v12 = vadd.f32 %v4922_v11, %v5168_v30  ;;  %v1706_v30 = vsel %vm4947_vm6, %v5402_v54, -1e+30 }
 0x240   : > { %v5391_v62 = vpop.f32.mrb[57].mxu1 }
 0x241   : > { %v5400_v49 = vpop.f32.mrb[58].mxu1  ;;  %7814 = vst [vmem:[#allocation55_spill] sm:$0xff] %v5404_v58  ;;  %7815 = vst [vmem:[#allocation56_spill] sm:$0xff] %v5408_v12  ;;  %v1572_v45 = vadd.f32 %v3676_v9, %v5408_v12  ;;  %v1707_v17 = vsel %vm4947_vm6, %v5404_v58, -1e+30  ;;  %v3688_v9 = vunpack.c.h.bf16 %v3761_v21 }
 0x242   : > { %v5413_v36 = vpop.f32.mrb[59].mxu1 }
 0x243   : > { %2563 = vmax.xlane.f32.xlu1 %v2474_v59  ;;  %2561 = vmax.xlane.f32.xlu0 %v2473_v28  ;;  %v5428_v28 = vmul.f32 5.0, %v1571_v15  ;;  %v5435_v3 = vmul.f32 5.0, %v1572_v45  ;;  %v2480_v15 = vsel %vm4940_vm5, %v5404_v58, -1e+30  ;;  %v3760_v45 = vld [vmem:[%s4913_s12 + $0x80] sm:$0xff]   ;;  %v5472_v58 = vadd.f32 %v4922_v11, %v5203_v13 }
 0x245   : > { %7816 = vst [vmem:[#allocation57_spill] sm:$0xff] %v5428_v28  ;;  %7817 = vst [vmem:[#allocation58_spill] sm:$0xff] %v5435_v3 }
 0x246   : > { %7823 = vst [vmem:[#allocation64_spill] sm:$0xff] %v5472_v58 }
 0x247   : > { %1802 = vmax.xlane.f32.xlu1 %v1707_v17  ;;  %1800 = vmax.xlane.f32.xlu0 %v1706_v30  ;;  %v5424_v43 = vpop.f32.mrb[60].mxu1  ;;  %v5439_v17 = vadd.f32 %v5179_v52, %v4922_v11  ;;  %v5443_v30 = vadd.f32 %v5190_v29, %v4922_v11  ;;  %v1705_v52 = vsel %vm4947_vm6, %v5435_v3, -1e+30  ;;  %v1704_v29 = vsel %vm4947_vm6, %v5428_v28, -1e+30 }
 0x248   : > { %v5426_v59 = vpop.f32.mrb[61].mxu1 }
 0x249   : > { %v5433_v12 = vpop.f32.mrb[62].mxu1  ;;  %7818 = vst [vmem:[#allocation59_spill] sm:$0xff] %v5439_v17  ;;  %7819 = vst [vmem:[#allocation60_spill] sm:$0xff] %v5443_v30  ;;  %v1577_v54 = vadd.f32 %v3687_v4, %v5439_v17  ;;  %v1578_v27 = vadd.f32 %v3688_v9, %v5443_v30  ;;  %v3684_v4 = vunpack.c.h.bf16 %v3760_v45  ;;  %v2477_v9 = vsel %vm4940_vm5, %v5428_v28, -1e+30 }
 0x24a   : > { %v5448_v21 = vpop.f32.mrb[63].mxu1 }
 0x24b   : > { %2575 = vmax.xlane.f32.xlu1 %v2480_v15  ;;  %2573 = vmax.xlane.f32.xlu0 %v2479_v40  ;;  %v5461_v15 = vadd.f32 %v4922_v11, %v5181_v53  ;;  %v3683_v40 = vunpack.c.l.bf16 %v3760_v45  ;;  %v5466_v17 = vmul.f32 5.0, %v1577_v54  ;;  %v5468_v30 = vmul.f32 5.0, %v1578_v27 }
 0x24c   : > { %v1576_v45 = vadd.f32 %v3684_v4, %v5472_v58  ;;  %v5499_v58 = vadd.f32 %v5223_v20, %v4922_v11 }
 0x24d   : > { %7820 = vst [vmem:[#allocation61_spill] sm:$0xff] %v5461_v15  ;;  %7821 = vst [vmem:[#allocation62_spill] sm:$0xff] %v5466_v17  ;;  %v1575_v53 = vadd.f32 %v3683_v40, %v5461_v15  ;;  %v1711_v27 = vsel %vm4947_vm6, %v5468_v30, -1e+30  ;;  %v1710_v13 = vsel %vm4947_vm6, %v5466_v17, -1e+30  ;;  %v5495_v15 = vadd.f32 %v5214_v24, %v4922_v11 }
 0x24e   : > { %7822 = vst [vmem:[#allocation63_spill] sm:$0xff] %v5468_v30  ;;  %v2483_v40 = vsel %vm4940_vm5, %v5466_v17, -1e+30  ;;  %v5491_v4 = vmul.f32 5.0, %v1576_v45  ;;  %7827 = vst [vmem:[#allocation68_spill] sm:$0xff] %v5499_v58  ;;  %v5557_v17 = vadd.f32 %v5249_v35, %v4922_v11 }
 0x24f   : > { %1798 = vmax.xlane.f32.xlu1 %v1705_v52  ;;  %1796 = vmax.xlane.f32.xlu0 %v1704_v29  ;;  %v2478_v52 = vsel %vm4940_vm5, %v5435_v3, -1e+30  ;;  %v3763_v29 = vld [vmem:[%s4913_s12 + $0x98] sm:$0xff]   ;;  %v5486_v54 = vmul.f32 5.0, %v1575_v53  ;;  %7826 = vst [vmem:[#allocation67_spill] sm:$0xff] %v5495_v15 }
 0x250   : > { %7825 = vst [vmem:[#allocation66_spill] sm:$0xff] %v5491_v4  ;;  %v2484_v53 = vsel %vm4940_vm5, %v5468_v30, -1e+30  ;;  %v1709_v24 = vsel %vm4947_vm6, %v5491_v4, -1e+30  ;;  %7834 = vst [vmem:[#allocation75_spill] sm:$0xff] %v5557_v17 }
 0x251   : > { %7824 = vst [vmem:[#allocation65_spill] sm:$0xff] %v5486_v54  ;;  %v1708_v20 = vsel %vm4947_vm6, %v5486_v54, -1e+30 }
 0x253   : > { %2571 = vmax.xlane.f32.xlu1 %v2478_v52  ;;  %2569 = vmax.xlane.f32.xlu0 %v2477_v9  ;;  %v3695_v52 = vunpack.c.l.bf16 %v3763_v29  ;;  %v3696_v9 = vunpack.c.h.bf16 %v3763_v29 }
 0x255   : > { %v1581_v29 = vadd.f32 %v3695_v52, %v5495_v15  ;;  %v1582_v45 = vadd.f32 %v3696_v9, %v5499_v58  ;;  %v2481_v9 = vsel %vm4940_vm5, %v5486_v54, -1e+30  ;;  %v5526_v58 = vadd.f32 %v4922_v11, %v5238_v7 }
 0x257   : > { %1810 = vmax.xlane.f32.xlu1 %v1711_v27  ;;  %1808 = vmax.xlane.f32.xlu0 %v1710_v13  ;;  %v3762_v27 = vld [vmem:[%s4913_s12 + $0x90] sm:$0xff]   ;;  %v5515_v13 = vadd.f32 %v4922_v11, %v5216_v34  ;;  %v5522_v15 = vmul.f32 5.0, %v1582_v45  ;;  %7831 = vst [vmem:[#allocation72_spill] sm:$0xff] %v5526_v58  ;;  %v3765_v45 = vld [vmem:[%s4913_s12 + $0xa8] sm:$0xff]  }
 0x258   : > { %v3692_v52 = vunpack.c.h.bf16 %v3762_v27 }
 0x259   : > { %7828 = vst [vmem:[#allocation69_spill] sm:$0xff] %v5515_v13  ;;  %7830 = vst [vmem:[#allocation71_spill] sm:$0xff] %v5522_v15  ;;  %v1715_v7 = vsel %vm4947_vm6, %v5522_v15, -1e+30 }
 0x25b   : > { %2583 = vmax.xlane.f32.xlu1 %v2484_v53  ;;  %2581 = vmax.xlane.f32.xlu0 %v2483_v40  ;;  %v3691_v40 = vunpack.c.l.bf16 %v3762_v27  ;;  %v5520_v53 = vmul.f32 5.0, %v1581_v29  ;;  %v1580_v29 = vadd.f32 %v3692_v52, %v5526_v58  ;;  %v3704_v52 = vunpack.c.h.bf16 %v3765_v45 }
 0x25d   : > { %7829 = vst [vmem:[#allocation70_spill] sm:$0xff] %v5520_v53  ;;  %v1714_v54 = vsel %vm4947_vm6, %v5520_v53, -1e+30  ;;  %v5553_v58 = vmul.f32 5.0, %v1580_v29 }
 0x25f   : > { %1806 = vmax.xlane.f32.xlu1 %v1709_v24  ;;  %1804 = vmax.xlane.f32.xlu0 %v1708_v20  ;;  %v2482_v24 = vsel %vm4940_vm5, %v5491_v4, -1e+30  ;;  %v1579_v20 = vadd.f32 %v3691_v40, %v5515_v13  ;;  %v3703_v40 = vunpack.c.l.bf16 %v3765_v45  ;;  %v2487_v13 = vsel %vm4940_vm5, %v5520_v53, -1e+30  ;;  %7833 = vst [vmem:[#allocation74_spill] sm:$0xff] %v5553_v58  ;;  %v3764_v53 = vld [vmem:[%s4913_s12 + $0xa0] sm:$0xff]  }
 0x261   : > { %v5548_v4 = vmul.f32 5.0, %v1579_v20  ;;  %v2488_v20 = vsel %vm4940_vm5, %v5522_v15, -1e+30  ;;  %v1585_v29 = vadd.f32 %v3703_v40, %v5557_v17  ;;  %v5585_v40 = vadd.f32 %v4922_v11, %v5251_v50 }
 0x262   : > { %v3700_v17 = vunpack.c.h.bf16 %v3764_v53 }
 0x263   : > { %2579 = vmax.xlane.f32.xlu1 %v2482_v24  ;;  %2577 = vmax.xlane.f32.xlu0 %v2481_v9  ;;  %7832 = vst [vmem:[#allocation73_spill] sm:$0xff] %v5548_v4  ;;  %v1712_v30 = vsel %vm4947_vm6, %v5548_v4, -1e+30  ;;  %7836 = vst [vmem:[#allocation77_spill] sm:$0xff] %v5585_v40  ;;  %v5590_v15 = vmul.f32 5.0, %v1585_v29 }
 0x264   : > { %v5531_v34 = vpop.xlane.xlu0 %2517  ;;  %v5533_v27 = vpop.xlane.xlu1 %1744 }
 0x265   : > { %7837 = vst [vmem:[#allocation78_spill] sm:$0xff] %v5590_v15  ;;  %v1718_v3 = vsel %vm4947_vm6, %v5590_v15, -1e+30 }
 0x267   : > { %1818 = vmax.xlane.f32.xlu1 %v1715_v7  ;;  %1816 = vmax.xlane.f32.xlu0 %v1714_v54  ;;  %v5561_v54 = vadd.f32 %v5260_v48, %v4922_v11  ;;  %v1713_v48 = vsel %vm4947_vm6, %v5553_v58, -1e+30 }
 0x268   : > { %v5544_v9 = vpop.xlane.xlu1 %1746  ;;  %v5546_v24 = vpop.xlane.xlu0 %1740 }
 0x269   : > { %7835 = vst [vmem:[#allocation76_spill] sm:$0xff] %v5561_v54  ;;  %v1586_v35 = vadd.f32 %v3704_v52, %v5561_v54  ;;  %v3699_v52 = vunpack.c.l.bf16 %v3764_v53  ;;  %v2485_v54 = vsel %vm4940_vm5, %v5548_v4, -1e+30 }
 0x26b   : > { %2591 = vmax.xlane.f32.xlu1 %v2488_v20  ;;  %2589 = vmax.xlane.f32.xlu0 %v2487_v13  ;;  %v5592_v28 = vmul.f32 5.0, %v1586_v35  ;;  %v1583_v4 = vadd.f32 %v3699_v52, %v5585_v40  ;;  %v3767_v35 = vld [vmem:[%s4913_s12 + $0xb8] sm:$0xff]   ;;  %v2491_v40 = vsel %vm4940_vm5, %v5590_v15, -1e+30  ;;  %v3766_v15 = vld [vmem:[%s4913_s12 + $0xb0] sm:$0xff]  }
 0x26c   : > { %v5566_v45 = vpop.xlane.xlu1 %2519  ;;  %v5568_v7 = vpop.xlane.xlu0 %2513  ;;  %v3711_v52 = vunpack.c.l.bf16 %v3767_v35 }
 0x26d   : > { %7838 = vst [vmem:[#allocation79_spill] sm:$0xff] %v5592_v28 }
 0x26f   : > { %1814 = vmax.xlane.f32.xlu1 %v1713_v48  ;;  %1812 = vmax.xlane.f32.xlu0 %v1712_v30  ;;  %v5596_v30 = vadd.f32 %v4922_v11, %v5273_v16  ;;  %v2486_v48 = vsel %vm4940_vm5, %v5553_v58, -1e+30  ;;  %v1719_v16 = vsel %vm4947_vm6, %v5592_v28, -1e+30  ;;  %v5618_v58 = vmul.f32 5.0, %v1583_v4 }
 0x270   : > { %v5579_v13 = vpop.xlane.xlu1 %2515  ;;  %v5581_v20 = vpop.xlane.xlu0 %1742  ;;  %v2492_v4 = vsel %vm4940_vm5, %v5592_v28, -1e+30 }
 0x271   : > { %7839 = vst [vmem:[#allocation80_spill] sm:$0xff] %v5596_v30  ;;  %v1584_v29 = vadd.f32 %v3700_v17, %v5596_v30  ;;  %7840 = vst [vmem:[#allocation81_spill] sm:$0xff] %v5618_v58  ;;  %v3712_v17 = vunpack.c.h.bf16 %v3767_v35  ;;  %v1716_v63 = vsel %vm4947_vm6, %v5618_v58, -1e+30 }
 0x273   : > { %2587 = vmax.xlane.f32.xlu1 %v2486_v48  ;;  %2585 = vmax.xlane.f32.xlu0 %v2485_v54  ;;  %v5623_v30 = vmul.f32 5.0, %v1584_v29  ;;  %v1589_v29 = vadd.f32 %v3711_v52, %v5627_v33  ;;  %v5655_v52 = vadd.f32 %v4922_v11, %v5286_v56  ;;  %v3708_v33 = vunpack.c.h.bf16 %v3766_v15 }
 0x274   : > { %v5601_v50 = vpop.xlane.xlu1 %1754  ;;  %v5603_v53 = vpop.xlane.xlu0 %1752 }
 0x275   : > { %7841 = vst [vmem:[#allocation82_spill] sm:$0xff] %v5623_v30  ;;  %7844 = vst [vmem:[#allocation85_spill] sm:$0xff] %v5655_v52  ;;  %v5660_v28 = vmul.f32 5.0, %v1589_v29 }
 0x277   : > { %1826 = vmax.xlane.f32.xlu1 %v1719_v16  ;;  %1824 = vmax.xlane.f32.xlu0 %v1718_v3  ;;  %v5631_v3 = vadd.f32 %v5293_v0, %v4922_v11  ;;  %v1717_v0 = vsel %vm4947_vm6, %v5623_v30, -1e+30  ;;  %7845 = vst [vmem:[#allocation86_spill] sm:$0xff] %v5660_v28  ;;  %v1722_v38 = vsel %vm4947_vm6, %v5660_v28, -1e+30 }
 0x278   : > { %v5614_v54 = vpop.xlane.xlu1 %2527  ;;  %v5616_v48 = vpop.xlane.xlu0 %2525 }
 0x279   : > { %7843 = vst [vmem:[#allocation84_spill] sm:$0xff] %v5631_v3  ;;  %v1590_v55 = vadd.f32 %v3712_v17, %v5631_v3  ;;  %v3707_v17 = vunpack.c.l.bf16 %v3766_v15  ;;  %v2489_v3 = vsel %vm4940_vm5, %v5618_v58, -1e+30 }
 0x27b   : > { %2599 = vmax.xlane.f32.xlu1 %v2492_v4  ;;  %2597 = vmax.xlane.f32.xlu0 %v2491_v40  ;;  %v5662_v6 = vmul.f32 5.0, %v1590_v55  ;;  %v1587_v58 = vadd.f32 %v3707_v17, %v5655_v52  ;;  %v3769_v55 = vld [vmem:[%s4913_s12 + $0xc8] sm:$0xff]   ;;  %v2495_v52 = vsel %vm4940_vm5, %v5660_v28, -1e+30  ;;  %v3768_v28 = vld [vmem:[%s4913_s12 + $0xc0] sm:$0xff]  }
 0x27c   : > { %v5636_v35 = vpop.xlane.xlu1 %1750  ;;  %v5638_v16 = vpop.xlane.xlu0 %1748  ;;  %v3719_v17 = vunpack.c.l.bf16 %v3769_v55 }
 0x27d   : > { %7846 = vst [vmem:[#allocation87_spill] sm:$0xff] %v5662_v6 }
 0x27f   : > { %1822 = vmax.xlane.f32.xlu1 %v1717_v0  ;;  %1820 = vmax.xlane.f32.xlu0 %v1716_v63  ;;  %v5666_v63 = vadd.f32 %v4922_v11, %v5308_v2  ;;  %v2490_v0 = vsel %vm4940_vm5, %v5623_v30, -1e+30  ;;  %v1723_v2 = vsel %vm4947_vm6, %v5662_v6, -1e+30  ;;  %v5688_v30 = vmul.f32 5.0, %v1587_v58 }
 0x280   : > { %v5649_v40 = vpop.xlane.xlu1 %2523  ;;  %v5651_v4 = vpop.xlane.xlu0 %2521  ;;  %v2496_v58 = vsel %vm4940_vm5, %v5662_v6, -1e+30 }
 0x281   : > { %7847 = vst [vmem:[#allocation88_spill] sm:$0xff] %v5666_v63  ;;  %v1588_v29 = vadd.f32 %v3708_v33, %v5666_v63  ;;  %7848 = vst [vmem:[#allocation89_spill] sm:$0xff] %v5688_v30  ;;  %v3720_v33 = vunpack.c.h.bf16 %v3769_v55  ;;  %v1720_v57 = vsel %vm4947_vm6, %v5688_v30, -1e+30 }
 0x283   : > { %2595 = vmax.xlane.f32.xlu1 %v2490_v0  ;;  %2593 = vmax.xlane.f32.xlu0 %v2489_v3  ;;  %v5693_v63 = vmul.f32 5.0, %v1588_v29  ;;  %v1593_v29 = vadd.f32 %v3719_v17, %v5697_v39  ;;  %v5725_v17 = vadd.f32 %v4922_v11, %v5321_v46  ;;  %v3716_v39 = vunpack.c.h.bf16 %v3768_v28 }
 0x284   : > { %v5671_v56 = vpop.xlane.xlu1 %1762  ;;  %v5673_v15 = vpop.xlane.xlu0 %1760 }
 0x285   : > { %7849 = vst [vmem:[#allocation90_spill] sm:$0xff] %v5693_v63  ;;  %7853 = vst [vmem:[#allocation94_spill] sm:$0xff] %v5725_v17  ;;  %v5730_v6 = vmul.f32 5.0, %v1593_v29 }
 0x287   : > { %1834 = vmax.xlane.f32.xlu1 %v1723_v2  ;;  %1832 = vmax.xlane.f32.xlu0 %v1722_v38  ;;  %v5701_v38 = vadd.f32 %v5330_v5, %v4922_v11  ;;  %v1721_v5 = vsel %vm4947_vm6, %v5693_v63, -1e+30  ;;  %7854 = vst [vmem:[#allocation95_spill] sm:$0xff] %v5730_v6 }
 0x288   : > { %v5684_v3 = vpop.xlane.xlu1 %2535  ;;  %v5686_v0 = vpop.xlane.xlu0 %2533 }
 0x289   : > { %7851 = vst [vmem:[#allocation92_spill] sm:$0xff] %v5701_v38  ;;  %v1594_v18 = vadd.f32 %v3720_v33, %v5701_v38  ;;  %v3715_v33 = vunpack.c.l.bf16 %v3768_v28  ;;  %v2493_v38 = vsel %vm4940_vm5, %v5688_v30, -1e+30 }
 0x28b   : > { %2607 = vmax.xlane.f32.xlu1 %v2496_v58  ;;  %2605 = vmax.xlane.f32.xlu0 %v2495_v52  ;;  %v1591_v30 = vadd.f32 %v3715_v33, %v5725_v17  ;;  %v2499_v17 = vsel %vm4940_vm5, %v5730_v6, -1e+30 }
 0x28c   : > { %v5706_v55 = vpop.xlane.xlu1 %1758  ;;  %v5708_v2 = vpop.xlane.xlu0 %1756 }
 0x28d   : > { %7852 = vst [vmem:[#allocation93_spill] sm:$0xff] %v5708_v2  ;;  %v5732_v2 = vmul.f32 5.0, %v1594_v18  ;;  %v3771_v18 = vld [vmem:[%s4913_s12 + $0xd8] sm:$0xff]  }
 0x28e   : > { %v3727_v33 = vunpack.c.l.bf16 %v3771_v18 }
 0x28f   : > { %1830 = vmax.xlane.f32.xlu1 %v1721_v5  ;;  %1828 = vmax.xlane.f32.xlu0 %v1720_v57  ;;  %7855 = vst [vmem:[#allocation96_spill] sm:$0xff] %v5732_v2  ;;  %v5736_v57 = vadd.f32 %v4922_v11, %v5343_v10  ;;  %v2494_v5 = vsel %vm4940_vm5, %v5693_v63, -1e+30  ;;  %v1727_v10 = vsel %vm4947_vm6, %v5732_v2, -1e+30  ;;  %v5758_v63 = vmul.f32 5.0, %v1591_v30 }
 0x290   : > { %v5719_v52 = vpop.xlane.xlu1 %2531  ;;  %v5721_v58 = vpop.xlane.xlu0 %2529  ;;  %v1726_v11 = vsel %vm4947_vm6, %v5730_v6, -1e+30 }
 0x291   : > { %7856 = vst [vmem:[#allocation97_spill] sm:$0xff] %v5736_v57  ;;  %v1592_v29 = vadd.f32 %v3716_v39, %v5736_v57  ;;  %7860 = vst [vmem:[#allocation101_spill] sm:$0xff] %v5758_v63  ;;  %v3728_v39 = vunpack.c.h.bf16 %v3771_v18  ;;  %v2500_v18 = vsel %vm4940_vm5, %v5732_v2, -1e+30 }
 0x293   : > { %2603 = vmax.xlane.f32.xlu1 %v2494_v5  ;;  %2601 = vmax.xlane.f32.xlu0 %v2493_v38  ;;  %v5763_v57 = vmul.f32 5.0, %v1592_v29 }
 0x294   : > { %v5741_v46 = vpop.xlane.xlu1 %1770  ;;  %v5743_v28 = vpop.xlane.xlu0 %1768 }
 0x295   : > { %7857 = vst [vmem:[#allocation98_spill] sm:$0xff] %v5743_v28  ;;  %7861 = vst [vmem:[#allocation102_spill] sm:$0xff] %v5763_v57  ;;  %v1724_v28 = vsel %vm4947_vm6, %v5758_v63, -1e+30 }
 0x297   : > { %1842 = vmax.xlane.f32.xlu1 %v1727_v10  ;;  %1840 = vmax.xlane.f32.xlu0 %v1726_v11  ;;  %v5768_v10 = vld [vmem:[%s7498_s4] ss:$0 sm:$0xff] }
 0x298   : > { %v5754_v38 = vpop.xlane.xlu1 %2543  ;;  %v5756_v5 = vpop.xlane.xlu0 %2541  ;;  %v5772_v11 = vadd.f32 %v5768_v10, %v5354_v51  ;;  %v5776_v30 = vadd.f32 %v5768_v10, %v5363_v37  ;;  %v1725_v37 = vsel %vm4947_vm6, %v5763_v57, -1e+30 }
 0x299   : > { %7858 = vst [vmem:[#allocation99_spill] sm:$0xff] %v5754_v38  ;;  %7859 = vst [vmem:[#allocation100_spill] sm:$0xff] %v5756_v5  ;;  %v3770_v38 = vld [vmem:[%s4913_s12 + $0xd0] sm:$0xff]  }
 0x29a   : > { %7862 = vst [vmem:[#allocation103_spill] sm:$0xff] %v5772_v11  ;;  %7863 = vst [vmem:[#allocation104_spill] sm:$0xff] %v5776_v30  ;;  %v1597_v5 = vadd.f32 %v3727_v33, %v5772_v11  ;;  %v1598_v51 = vadd.f32 %v3728_v39, %v5776_v30  ;;  %v5800_v33 = vadd.f32 %v5768_v10, %v5356_v22  ;;  %v3723_v39 = vunpack.c.l.bf16 %v3770_v38 }
 0x29b   : > { %2615 = vmax.xlane.f32.xlu1 %v2500_v18  ;;  %2613 = vmax.xlane.f32.xlu0 %v2499_v17  ;;  %v3724_v11 = vunpack.c.h.bf16 %v3770_v38  ;;  %v2497_v30 = vsel %vm4940_vm5, %v5758_v63, -1e+30 }
 0x29c   : > { %v5781_v29 = vpop.xlane.xlu1 %1766  ;;  %v5783_v6 = vpop.xlane.xlu0 %1764  ;;  %7866 = vst [vmem:[#allocation107_spill] sm:$0xff] %v5800_v33  ;;  %v5805_v2 = vmul.f32 5.0, %v1597_v5  ;;  %v1595_v63 = vadd.f32 %v3723_v39, %v5800_v33 }
 0x29d   : > { %7864 = vst [vmem:[#allocation105_spill] sm:$0xff] %v5783_v6  ;;  %v5807_v6 = vmul.f32 5.0, %v1598_v51  ;;  %v3773_v51 = vld [vmem:[%s4913_s12 + $0xe8] sm:$0xff]  }
 0x29e   : > { %7867 = vst [vmem:[#allocation108_spill] sm:$0xff] %v5805_v2  ;;  %v3735_v39 = vunpack.c.l.bf16 %v3773_v51  ;;  %v2503_v33 = vsel %vm4940_vm5, %v5805_v2, -1e+30 }
 0x29f   : > { %1838 = vmax.xlane.f32.xlu1 %v1725_v37  ;;  %1836 = vmax.xlane.f32.xlu0 %v1724_v28  ;;  %7868 = vst [vmem:[#allocation109_spill] sm:$0xff] %v5807_v6  ;;  %v5811_v28 = vadd.f32 %v5768_v10, %v5378_v42  ;;  %v2498_v37 = vsel %vm4940_vm5, %v5763_v57, -1e+30  ;;  %v1731_v42 = vsel %vm4947_vm6, %v5807_v6, -1e+30  ;;  %v5833_v57 = vmul.f32 5.0, %v1595_v63 }
 0x2a0   : > { %v5794_v17 = vpop.xlane.xlu1 %2539  ;;  %v5796_v18 = vpop.xlane.xlu0 %2537  ;;  %v2504_v63 = vsel %vm4940_vm5, %v5807_v6, -1e+30 }
 0x2a1   : > { %7865 = vst [vmem:[#allocation106_spill] sm:$0xff] %v5796_v18  ;;  %7869 = vst [vmem:[#allocation110_spill] sm:$0xff] %v5811_v28  ;;  %v1596_v5 = vadd.f32 %v3724_v11, %v5811_v28  ;;  %v1730_v18 = vsel %vm4947_vm6, %v5805_v2, -1e+30  ;;  %v3736_v11 = vunpack.c.h.bf16 %v3773_v51  ;;  %v3772_v2 = vld [vmem:[%s4913_s12 + $0xe0] sm:$0xff]  }
 0x2a2   : > { %7872 = vst [vmem:[#allocation113_spill] sm:$0xff] %v5833_v57 }
 0x2a3   : > { %2611 = vmax.xlane.f32.xlu1 %v2498_v37  ;;  %2609 = vmax.xlane.f32.xlu0 %v2497_v30  ;;  %v5838_v28 = vmul.f32 5.0, %v1596_v5 }
 0x2a4   : > { %v5816_v22 = vpop.xlane.xlu1 %1778  ;;  %v5818_v38 = vpop.xlane.xlu0 %1776 }
 0x2a5   : > { %7870 = vst [vmem:[#allocation111_spill] sm:$0xff] %v5818_v38  ;;  %7873 = vst [vmem:[#allocation114_spill] sm:$0xff] %v5838_v28  ;;  %v5842_v38 = vadd.f32 %v5768_v10, %v5389_v19 }
 0x2a7   : > { %1850 = vmax.xlane.f32.xlu1 %v1731_v42  ;;  %1848 = vmax.xlane.f32.xlu0 %v1730_v18  ;;  %7874 = vst [vmem:[#allocation115_spill] sm:$0xff] %v5842_v38  ;;  %v5846_v18 = vadd.f32 %v5768_v10, %v5400_v49  ;;  %v1601_v5 = vadd.f32 %v3735_v39, %v5842_v38  ;;  %v1729_v49 = vsel %vm4947_vm6, %v5838_v28, -1e+30  ;;  %v3732_v38 = vunpack.c.h.bf16 %v3772_v2 }
 0x2a8   : > { %v5829_v30 = vpop.xlane.xlu1 %2551  ;;  %v5831_v37 = vpop.xlane.xlu0 %2549  ;;  %v5870_v39 = vadd.f32 %v5768_v10, %v5391_v62 }
 0x2a9   : > { %7871 = vst [vmem:[#allocation112_spill] sm:$0xff] %v5831_v37  ;;  %7875 = vst [vmem:[#allocation116_spill] sm:$0xff] %v5846_v18  ;;  %v1602_v19 = vadd.f32 %v3736_v11, %v5846_v18  ;;  %v1728_v37 = vsel %vm4947_vm6, %v5833_v57, -1e+30  ;;  %v3731_v11 = vunpack.c.l.bf16 %v3772_v2  ;;  %v2501_v18 = vsel %vm4940_vm5, %v5833_v57, -1e+30 }
 0x2aa   : > { %7878 = vst [vmem:[#allocation119_spill] sm:$0xff] %v5870_v39  ;;  %v5875_v6 = vmul.f32 5.0, %v1601_v5 }
 0x2ab   : > { %2623 = vmax.xlane.f32.xlu1 %v2504_v63  ;;  %2621 = vmax.xlane.f32.xlu0 %v2503_v33  ;;  %v1599_v57 = vadd.f32 %v3731_v11, %v5870_v39 }
 0x2ac   : > { %v5851_v51 = vpop.xlane.xlu1 %1774  ;;  %v5853_v42 = vpop.xlane.xlu0 %1772  ;;  %7879 = vst [vmem:[#allocation120_spill] sm:$0xff] %v5875_v6  ;;  %v2507_v39 = vsel %vm4940_vm5, %v5875_v6, -1e+30 }
 0x2ad   : > { %7876 = vst [vmem:[#allocation117_spill] sm:$0xff] %v5853_v42  ;;  %v5877_v42 = vmul.f32 5.0, %v1602_v19  ;;  %v3775_v19 = vld [vmem:[%s4913_s12 + $0xf8] sm:$0xff]  }
 0x2ae   : > { %v3743_v11 = vunpack.c.l.bf16 %v3775_v19 }
 0x2af   : > { %1846 = vmax.xlane.f32.xlu1 %v1729_v49  ;;  %1844 = vmax.xlane.f32.xlu0 %v1728_v37  ;;  %7880 = vst [vmem:[#allocation121_spill] sm:$0xff] %v5877_v42  ;;  %v5881_v37 = vadd.f32 %v5768_v10, %v5413_v36  ;;  %v2502_v49 = vsel %vm4940_vm5, %v5838_v28, -1e+30  ;;  %v1735_v36 = vsel %vm4947_vm6, %v5877_v42, -1e+30  ;;  %v5903_v28 = vmul.f32 5.0, %v1599_v57 }
 0x2b0   : > { %v5864_v33 = vpop.xlane.xlu1 %2547  ;;  %v5866_v63 = vpop.xlane.xlu0 %2545  ;;  %v2508_v57 = vsel %vm4940_vm5, %v5877_v42, -1e+30 }
 0x2b1   : > { %7877 = vst [vmem:[#allocation118_spill] sm:$0xff] %v5866_v63  ;;  %7881 = vst [vmem:[#allocation122_spill] sm:$0xff] %v5881_v37  ;;  %v1600_v5 = vadd.f32 %v3732_v38, %v5881_v37  ;;  %v1734_v63 = vsel %vm4947_vm6, %v5875_v6, -1e+30  ;;  %v3744_v38 = vunpack.c.h.bf16 %v3775_v19 }
 0x2b2   : > { %7884 = vst [vmem:[#allocation125_spill] sm:$0xff] %v5903_v28 }
 0x2b3   : > { %2619 = vmax.xlane.f32.xlu1 %v2502_v49  ;;  %2617 = vmax.xlane.f32.xlu0 %v2501_v18  ;;  %v5908_v37 = vmul.f32 5.0, %v1600_v5  ;;  %v3774_v5 = vld [vmem:[%s4913_s12 + $0xf0] sm:$0xff]   ;;  %s4574_s12 = sshll.u32 %s4634_s10, 4  ;;  %s4575_s12 = int_to_ptr.vmem [resolvable:$false] %s4574_s12 }
 0x2b4   : > { %v5886_v62 = vpop.xlane.xlu1 %1786  ;;  %v5888_v2 = vpop.xlane.xlu0 %1784  ;;  %s4576_s13 = scalar_lea.vmem %s4575_s12, 16384  ;;  %p4577_p0 = scmp.lt.s32.totalorder %s7443_s20, %s4575_s12 }
 0x2b5   : > { %7882 = vst [vmem:[#allocation123_spill] sm:$0xff] %v5888_v2  ;;  %7885 = vst [vmem:[#allocation126_spill] sm:$0xff] %v5908_v37  ;;  %v5912_v2 = vadd.f32 %v5768_v10, %v5424_v43  ;;  %p4578_p1 = scmp.lt.s32.totalorder %s4576_s13, %s4570_s9 }
 0x2b7   : > { %1858 = vmax.xlane.f32.xlu1 %v1735_v36  ;;  %1856 = vmax.xlane.f32.xlu0 %v1734_v63  ;;  %7886 = vst [vmem:[#allocation127_spill] sm:$0xff] %v5912_v2  ;;  %v5916_v63 = vadd.f32 %v5768_v10, %v5433_v12  ;;  %v1605_v6 = vadd.f32 %v3743_v11, %v5912_v2  ;;  %v1733_v12 = vsel %vm4947_vm6, %v5908_v37, -1e+30  ;;  %v3740_v2 = vunpack.c.h.bf16 %v3774_v5  ;;  %p4579_p2 = por %p4578_p1, %p4577_p0 }
 0x2b8   : > { %v5899_v18 = vpop.xlane.xlu1 %2559  ;;  %v5901_v49 = vpop.xlane.xlu0 %2557  ;;  %v1871_v11 = vsub.f32 %v4960_v32, %v5544_v9  ;;  %v2506_v9 = vsel %vm4940_vm5, %v5908_v37, -1e+30 }
 0x2b9   : > { %7883 = vst [vmem:[#allocation124_spill] sm:$0xff] %v5901_v49  ;;  %7887 = vst [vmem:[#allocation128_spill] sm:$0xff] %v5916_v63  ;;  %v1606_v43 = vadd.f32 %v3744_v38, %v5916_v63  ;;  %v1732_v49 = vsel %vm4947_vm6, %v5903_v28, -1e+30  ;;  %v5944_v38 = vadd.f32 %v5768_v10, %v5426_v59  ;;  %v5955_v63 = vadd.f32 %v5768_v10, %v5448_v21  ;;  %p4580_p3 = pnand %p4579_p2, %p4573_p13 }
 0x2ba   : > { %v2643_v59 = vsub.f32 %v4951_v26, %v5531_v34  ;;  %v1935_v21 = vsel %vm4947_vm6, %v1871_v11, -1e+30  ;;  %v2644_v10 = vsub.f32 %v4960_v32, %v5566_v45  ;;  %v1868_v32 = vsub.f32 %v4958_v31, %v5546_v24 }
 0x2bb   : > { %2631 = vmax.xlane.f32.xlu1 %v2508_v57  ;;  %2629 = vmax.xlane.f32.xlu0 %v2507_v39  ;;  %v1870_v39 = vsub.f32 %v4951_v26, %v5533_v27  ;;  %v3739_v57 = vunpack.c.l.bf16 %v3774_v5  ;;  %7889 = vst [vmem:[#allocation130_spill] sm:$0xff] %v5944_v38  ;;  %v5951_v27 = vmul.f32 5.0, %v1606_v43  ;;  %7892 = vst [vmem:[#allocation133_spill] sm:$0xff] %v5955_v63 }
 0x2bc   : > { %v5921_v19 = vpop.xlane.xlu1 %1782  ;;  %v5923_v36 = vpop.xlane.xlu0 %1780  ;;  %v2707_v11 = vsel %vm4940_vm5, %v2643_v59, -1e+30 }
 0x2bd   : > { %7888 = vst [vmem:[#allocation129_spill] sm:$0xff] %v5923_v36  ;;  %7891 = vst [vmem:[#allocation132_spill] sm:$0xff] %v5951_v27  ;;  %v1934_v5 = vsel %vm4947_vm6, %v1870_v39, -1e+30  ;;  %v1739_v26 = vsel %vm4947_vm6, %v5951_v27, -1e+30 }
 0x2be   : > { %v2000_v39 = vmul.f32 1.442695, %v1934_v5  ;;  %v2512_v59 = vsel %vm4940_vm5, %v5951_v27, -1e+30 }
 0x2bf   : > { %1854 = vmax.xlane.f32.xlu1 %v1733_v12  ;;  %1852 = vmax.xlane.f32.xlu0 %v1732_v49  ;;  %v2505_v49 = vsel %vm4940_vm5, %v5903_v28, -1e+30  ;;  %v5949_v12 = vmul.f32 5.0, %v1605_v6  ;;  %v1603_v28 = vadd.f32 %v3739_v57, %v5944_v38  ;;  %v2708_v57 = vsel %vm4940_vm5, %v2644_v10, -1e+30 }
 0x2c0   : > { %v5936_v42 = vpop.xlane.xlu1 %2555  ;;  %v5938_v36 = vpop.xlane.xlu0 %2553  ;;  %v1869_v38 = vsub.f32 %v4981_v47, %v5581_v20  ;;  %4057 = vpow2.f32 %v2000_v39  ;;  %v1932_v20 = vsel %vm4947_vm6, %v1868_v32, -1e+30  ;;  %v2641_v10 = vsub.f32 %v4958_v31, %v5568_v7 }
 0x2c1   : > { %7890 = vst [vmem:[#allocation131_spill] sm:$0xff] %v5949_v12  ;;  %v1738_v34 = vsel %vm4947_vm6, %v5949_v12, -1e+30  ;;  %v5992_v5 = vmul.f32 5.0, %v1603_v28  ;;  %v2511_v24 = vsel %vm4940_vm5, %v5949_v12, -1e+30  ;;  %v2650_v12 = vsub.f32 %v5088_v1, %v5719_v52 }
 0x2c2   : > { %v2775_v28 = vmul.f32 1.442695, %v2708_v57  ;;  %v1933_v39 = vsel %vm4947_vm6, %v1869_v38, -1e+30  ;;  %v1996_v31 = vmul.f32 1.442695, %v1932_v20 }
 0x2c3   : > { %2627 = vmax.xlane.f32.xlu1 %v2506_v9  ;;  %2625 = vmax.xlane.f32.xlu0 %v2505_v49  ;;  %v1604_v49 = vadd.f32 %v3740_v2, %v5955_v63  ;;  %v2002_v9 = vmul.f32 1.442695, %v1935_v21  ;;  %7893 = vst [vmem:[#allocation134_spill] sm:$0xff] %v5992_v5  ;;  %v2773_v21 = vmul.f32 1.442695, %v2707_v11  ;;  %v2642_v63 = vsub.f32 %v4981_v47, %v5579_v13 }
 0x2c4   : > { %v5964_v6 = vpop.xlane.xlu1 %1794  ;;  %v5966_v43 = vpop.xlane.xlu0 %1792  ;;  %v2705_v7 = vsel %vm4940_vm5, %v2641_v10, -1e+30  ;;  %v1998_v47 = vmul.f32 1.442695, %v1933_v39  ;;  %v1875_v13 = vsub.f32 %v5000_v61, %v5601_v50  ;;  %v2714_v52 = vsel %vm4940_vm5, %v2650_v12, -1e+30 }
 0x2c5   : > { %4059 = vpow2.f32 %v2002_v9  ;;  %v1736_v9 = vsel %vm4947_vm6, %v5992_v5, -1e+30  ;;  %v2706_v57 = vsel %vm4940_vm5, %v2642_v63, -1e+30  ;;  %v2769_v50 = vmul.f32 1.442695, %v2705_v7 }
 0x2c6   : > { %4061 = vpow2.f32 %v2773_v21  ;;  %v2509_v21 = vsel %vm4940_vm5, %v5992_v5, -1e+30  ;;  %v2771_v20 = vmul.f32 1.442695, %v2706_v57  ;;  %v1939_v63 = vsel %vm4947_vm6, %v1875_v13, -1e+30 }
 0x2c7   : > { %1866 = vmax.xlane.f32.xlu1 %v1739_v26  ;;  %1864 = vmax.xlane.f32.xlu0 %v1738_v34  ;;  %v5994_v26 = vmul.f32 5.0, %v1604_v49  ;;  %4063 = vpow2.f32 %v2775_v28  ;;  %v2010_v7 = vmul.f32 1.442695, %v1939_v63 }
 0x2c8   : > { %v5984_v45 = vpop.xlane.xlu1 %2567  ;;  %v5986_v2 = vpop.xlane.xlu0 %2565  ;;  %4065 = vpow2.f32 %v1996_v31 }
 0x2c9   : > { %7894 = vst [vmem:[#allocation135_spill] sm:$0xff] %v5994_v26  ;;  %v1737_v11 = vsel %vm4947_vm6, %v5994_v26, -1e+30  ;;  %4067 = vpow2.f32 %v1998_v47  ;;  %v1873_v47 = vsub.f32 %v5024_v14, %v5636_v35 }
 0x2ca   : > { %v6046_v39 = vpop.eup %4057  ;;  %4069 = vpow2.f32 %v2769_v50 }
 0x2cb   : > { %2639 = vmax.xlane.f32.xlu1 %v2512_v59  ;;  %2637 = vmax.xlane.f32.xlu0 %v2511_v24  ;;  %v1874_v59 = vsub.f32 %v4998_v60, %v5603_v53  ;;  %v2510_v24 = vsel %vm4940_vm5, %v5994_v26, -1e+30  ;;  %v2648_v53 = vsub.f32 %v5000_v61, %v5614_v54  ;;  %7895 = vst [vmem:[#allocation136_spill] sm:$0xff] %v6046_v39  ;;  %4071 = vpow2.f32 %v2771_v20 }
 0x2cc   : > { %v6006_v49 = vpop.xlane.xlu1 %1790  ;;  %v6008_v34 = vpop.xlane.xlu0 %1788  ;;  %4073 = vpow2.f32 %v2010_v7  ;;  %v1937_v50 = vsel %vm4947_vm6, %v1873_v47, -1e+30  ;;  %v2646_v20 = vsub.f32 %v5024_v14, %v5649_v40 }
 0x2cd   : > { %v2712_v54 = vsel %vm4940_vm5, %v2648_v53, -1e+30 }
 0x2ce   : > { %v2710_v40 = vsel %vm4940_vm5, %v2646_v20, -1e+30  ;;  %v2652_v20 = vsub.f32 %v5058_v44, %v5684_v3 }
 0x2cf   : > { %1862 = vmax.xlane.f32.xlu1 %v1737_v11  ;;  %1860 = vmax.xlane.f32.xlu0 %v1736_v9  ;;  %v1938_v11 = vsel %vm4947_vm6, %v1874_v59, -1e+30  ;;  %v2647_v9 = vsub.f32 %v4998_v60, %v5616_v48  ;;  %v6052_v31 = vpop.eup %4059  ;;  %v1872_v59 = vsub.f32 %v5019_v8, %v5638_v16 }
 0x2d0   : > { %v6024_v38 = vpop.xlane.xlu1 %2563  ;;  %v6026_v32 = vpop.xlane.xlu0 %2561  ;;  %7896 = vst [vmem:[#allocation137_spill] sm:$0xff] %v6052_v31  ;;  %v2008_v61 = vmul.f32 1.442695, %v1938_v11  ;;  %v2716_v3 = vsel %vm4940_vm5, %v2652_v20, -1e+30 }
 0x2d1   : > { %v6064_v60 = vpop.eup %4061  ;;  %v2711_v48 = vsel %vm4940_vm5, %v2647_v9, -1e+30  ;;  %v1936_v11 = vsel %vm4947_vm6, %v1872_v59, -1e+30  ;;  %v2645_v9 = vsub.f32 %v5019_v8, %v5651_v4  ;;  %v1878_v59 = vsub.f32 %v5056_v41, %v5673_v15 }
 0x2d2   : > { %7897 = vst [vmem:[#allocation138_spill] sm:$0xff] %v6064_v60  ;;  %4075 = vpow2.f32 %v2008_v61  ;;  %v2781_v35 = vmul.f32 1.442695, %v2711_v48  ;;  %v2006_v61 = vmul.f32 1.442695, %v1937_v50 }
 0x2d3   : > { %2635 = vmax.xlane.f32.xlu1 %v2510_v24  ;;  %2633 = vmax.xlane.f32.xlu0 %v2509_v21  ;;  %v6070_v24 = vpop.eup %4063  ;;  %v2783_v21 = vmul.f32 1.442695, %v2712_v54  ;;  %v2004_v14 = vmul.f32 1.442695, %v1936_v11  ;;  %v1879_v54 = vsub.f32 %v5058_v44, %v5671_v56  ;;  %v2709_v4 = vsel %vm4940_vm5, %v2645_v9, -1e+30 }
 0x2d4   : > { %v6042_v28 = vpop.xlane.xlu1 %1802  ;;  %v6044_v10 = vpop.xlane.xlu0 %1800  ;;  %7898 = vst [vmem:[#allocation139_spill] sm:$0xff] %v6070_v24  ;;  %v2777_v56 = vmul.f32 1.442695, %v2709_v4 }
 0x2d5   : > { %v6082_v16 = vpop.eup %4065  ;;  %4077 = vpow2.f32 %v2783_v21  ;;  %v1943_v50 = vsel %vm4947_vm6, %v1879_v54, -1e+30  ;;  %v1877_v54 = vsub.f32 %v5088_v1, %v5706_v55 }
 0x2d6   : > { %7899 = vst [vmem:[#allocation140_spill] sm:$0xff] %v6082_v16  ;;  %v6088_v7 = vpop.eup %4067  ;;  %4079 = vpow2.f32 %v2781_v35  ;;  %v2779_v35 = vmul.f32 1.442695, %v2710_v40  ;;  %v2651_v40 = vsub.f32 %v5056_v41, %v5686_v0  ;;  %v2018_v4 = vmul.f32 1.442695, %v1943_v50  ;;  %v7907_v50 = vld [vmem:[#allocation18_spill] sm:$0xff] }
 0x2d7   : > { %2130 = vadd.xlane.f32.xlu1 %v6052_v31  ;;  %2128 = vadd.xlane.f32.xlu0 %v6046_v39  ;;  %7900 = vst [vmem:[#allocation141_spill] sm:$0xff] %v6088_v7  ;;  %v6100_v8 = vpop.eup %4069  ;;  %4081 = vpow2.f32 %v2006_v61  ;;  %v1942_v61 = vsel %vm4947_vm6, %v1878_v59, -1e+30  ;;  %v1941_v20 = vsel %vm4947_vm6, %v1877_v54, -1e+30  ;;  %v7911_v54 = vld [vmem:[#allocation23_spill] sm:$0xff] }
 0x2d8   : > { %v6060_v13 = vpop.xlane.xlu1 %2575  ;;  %v6062_v57 = vpop.xlane.xlu0 %2573  ;;  %7901 = vst [vmem:[#allocation142_spill] sm:$0xff] %v6100_v8  ;;  %4083 = vpow2.f32 %v2004_v14  ;;  %v2016_v44 = vmul.f32 1.442695, %v1942_v61  ;;  %v2715_v0 = vsel %vm4940_vm5, %v2651_v40, -1e+30  ;;  %v1883_v37 = vsub.f32 %v7911_v54, %v5741_v46 }
 0x2d9   : > { %v6106_v21 = vpop.eup %4071  ;;  %4085 = vpow2.f32 %v2779_v35  ;;  %v7906_v35 = vld [vmem:[#allocation93_spill] sm:$0xff]  ;;  %v2791_v61 = vmul.f32 1.442695, %v2716_v3  ;;  %v2789_v55 = vmul.f32 1.442695, %v2715_v0  ;;  %v2649_v3 = vsub.f32 %v7907_v50, %v5721_v58 }
 0x2da   : > { %7902 = vst [vmem:[#allocation143_spill] sm:$0xff] %v6106_v21  ;;  %v6118_v15 = vpop.eup %4073  ;;  %4087 = vpow2.f32 %v2777_v56  ;;  %v1876_v26 = vsub.f32 %v7907_v50, %v7906_v35  ;;  %v2014_v0 = vmul.f32 1.442695, %v1941_v20  ;;  %v7914_v20 = vld [vmem:[#allocation22_spill] sm:$0xff]  ;;  %v1947_v12 = vsel %vm4947_vm6, %v1883_v37, -1e+30 }
 0x2db   : > { %2903 = vadd.xlane.f32.xlu1 %v6070_v24  ;;  %2901 = vadd.xlane.f32.xlu0 %v6064_v60  ;;  %7903 = vst [vmem:[#allocation144_spill] sm:$0xff] %v6118_v15  ;;  %4089 = vpow2.f32 %v2018_v4  ;;  %v2713_v50 = vsel %vm4940_vm5, %v2649_v3, -1e+30 }
 0x2dc   : > { %v6078_v63 = vpop.xlane.xlu1 %1798  ;;  %v6080_v53 = vpop.xlane.xlu0 %1796  ;;  %4091 = vpow2.f32 %v2016_v44  ;;  %v1940_v4 = vsel %vm4947_vm6, %v1876_v26, -1e+30  ;;  %v2785_v46 = vmul.f32 1.442695, %v2713_v50  ;;  %v2026_v50 = vmul.f32 1.442695, %v1947_v12 }
 0x2dd   : > { %v6124_v14 = vpop.eup %4075  ;;  %4093 = vpow2.f32 %v2791_v61  ;;  %v2012_v1 = vmul.f32 1.442695, %v1940_v4  ;;  %v7913_v61 = vld [vmem:[#allocation98_spill] sm:$0xff]  ;;  %v2787_v4 = vmul.f32 1.442695, %v2714_v52  ;;  %v7918_v52 = vld [vmem:[#allocation100_spill] sm:$0xff] }
 0x2de   : > { %7904 = vst [vmem:[#allocation145_spill] sm:$0xff] %v6124_v14  ;;  %4095 = vpow2.f32 %v2789_v55  ;;  %v7922_v12 = vld [vmem:[#allocation105_spill] sm:$0xff] }
 0x2df   : > { %2126 = vadd.xlane.f32.xlu1 %v6088_v7  ;;  %2124 = vadd.xlane.f32.xlu0 %v6082_v16  ;;  %v6136_v41 = vpop.eup %4077  ;;  %4097 = vpow2.f32 %v2014_v0 }
 0x2e0   : > { %v6096_v47 = vpop.xlane.xlu1 %2571  ;;  %v6098_v48 = vpop.xlane.xlu0 %2569  ;;  %7905 = vst [vmem:[#allocation146_spill] sm:$0xff] %v6136_v41  ;;  %4099 = vpow2.f32 %v2012_v1 }
 0x2e1   : > { %v6142_v56 = vpop.eup %4079  ;;  %4101 = vpow2.f32 %v2787_v4 }
 0x2e2   : > { %7908 = vst [vmem:[#allocation93_spill] sm:$0xff] %v6142_v56  ;;  %v6154_v35 = vpop.eup %4081  ;;  %4103 = vpow2.f32 %v2785_v46 }
 0x2e3   : > { %2899 = vadd.xlane.f32.xlu1 %v6106_v21  ;;  %2897 = vadd.xlane.f32.xlu0 %v6100_v8  ;;  %7909 = vst [vmem:[#allocation18_spill] sm:$0xff] %v6154_v35  ;;  %v6160_v44 = vpop.eup %4083  ;;  %4105 = vpow2.f32 %v2026_v50 }
 0x2e4   : > { %v6114_v11 = vpop.xlane.xlu1 %1810  ;;  %v6116_v9 = vpop.xlane.xlu0 %1808  ;;  %7910 = vst [vmem:[#allocation147_spill] sm:$0xff] %v6160_v44 }
 0x2e5   : > { %v6172_v58 = vpop.eup %4085 }
 0x2e6   : > { %7912 = vst [vmem:[#allocation23_spill] sm:$0xff] %v6172_v58  ;;  %v6178_v55 = vpop.eup %4087 }
 0x2e7   : > { %2138 = vadd.xlane.f32.xlu1 %v6118_v15  ;;  %2136 = vadd.xlane.f32.xlu0 %v6124_v14  ;;  %7915 = vst [vmem:[#allocation98_spill] sm:$0xff] %v6178_v55 }
 0x2e8   : > { %v6132_v59 = vpop.xlane.xlu1 %2583  ;;  %v6134_v5 = vpop.xlane.xlu0 %2581 }
 0x2eb   : > { %2911 = vadd.xlane.f32.xlu1 %v6136_v41  ;;  %2909 = vadd.xlane.f32.xlu0 %v6142_v56 }
 0x2ec   : > { %v6150_v40 = vpop.xlane.xlu1 %1806  ;;  %v6152_v27 = vpop.xlane.xlu0 %1804 }
 0x2ef   : > { %2134 = vadd.xlane.f32.xlu1 %v6154_v35  ;;  %2132 = vadd.xlane.f32.xlu0 %v6160_v44  ;;  %v1882_v44 = vsub.f32 %v7914_v20, %v7913_v61  ;;  %v7916_v35 = vld [vmem:[#allocation99_spill] sm:$0xff]  ;;  %v6190_v61 = vpop.eup %4089 }
 0x2f0   : > { %v6168_v26 = vpop.xlane.xlu1 %2579  ;;  %v6170_v56 = vpop.xlane.xlu0 %2577  ;;  %v2656_v14 = vsub.f32 %v7911_v54, %v7916_v35  ;;  %7917 = vst [vmem:[#allocation22_spill] sm:$0xff] %v6190_v61  ;;  %v7920_v54 = vld [vmem:[#allocation26_spill] sm:$0xff] }
 0x2f1   : > { %v1946_v0 = vsel %vm4947_vm6, %v1882_v44, -1e+30  ;;  %v6196_v1 = vpop.eup %4091 }
 0x2f2   : > { %7919 = vst [vmem:[#allocation99_spill] sm:$0xff] %v6196_v1  ;;  %v2024_v37 = vmul.f32 1.442695, %v1946_v0  ;;  %v2720_v35 = vsel %vm4940_vm5, %v2656_v14, -1e+30 }
 0x2f3   : > { %2907 = vadd.xlane.f32.xlu1 %v6172_v58  ;;  %2905 = vadd.xlane.f32.xlu0 %v6178_v55  ;;  %v2655_v55 = vsub.f32 %v7914_v20, %v7918_v52  ;;  %v1881_v58 = vsub.f32 %v7920_v54, %v5781_v29  ;;  %v6208_v20 = vpop.eup %4093  ;;  %v7923_v52 = vld [vmem:[#allocation25_spill] sm:$0xff]  ;;  %v2799_v0 = vmul.f32 1.442695, %v2720_v35  ;;  %v7926_v35 = vld [vmem:[#allocation106_spill] sm:$0xff] }
 0x2f4   : > { %v6186_v3 = vpop.xlane.xlu1 %1818  ;;  %v6188_v41 = vpop.xlane.xlu0 %1816  ;;  %7921 = vst [vmem:[#allocation100_spill] sm:$0xff] %v6208_v20  ;;  %4107 = vpow2.f32 %v2024_v37 }
 0x2f5   : > { %v2719_v4 = vsel %vm4940_vm5, %v2655_v55, -1e+30  ;;  %v6214_v46 = vpop.eup %4095  ;;  %v1945_v14 = vsel %vm4947_vm6, %v1881_v58, -1e+30  ;;  %4109 = vpow2.f32 %v2799_v0 }
 0x2f6   : > { %7924 = vst [vmem:[#allocation26_spill] sm:$0xff] %v6214_v46  ;;  %v2797_v29 = vmul.f32 1.442695, %v2719_v4  ;;  %v2022_v4 = vmul.f32 1.442695, %v1945_v14  ;;  %v7930_v14 = vld [vmem:[#allocation111_spill] sm:$0xff] }
 0x2f7   : > { %2146 = vadd.xlane.f32.xlu1 %v6190_v61  ;;  %2144 = vadd.xlane.f32.xlu0 %v6196_v1  ;;  %v1880_v1 = vsub.f32 %v7923_v52, %v7922_v12  ;;  %v2654_v61 = vsub.f32 %v7920_v54, %v5794_v17  ;;  %v6226_v12 = vpop.eup %4097  ;;  %v7928_v54 = vld [vmem:[#allocation31_spill] sm:$0xff] }
 0x2f8   : > { %v6204_v44 = vpop.xlane.xlu1 %2591  ;;  %v6206_v15 = vpop.xlane.xlu0 %2589  ;;  %7925 = vst [vmem:[#allocation105_spill] sm:$0xff] %v6226_v12  ;;  %4111 = vpow2.f32 %v2797_v29 }
 0x2f9   : > { %v1944_v50 = vsel %vm4947_vm6, %v1880_v1, -1e+30  ;;  %v6232_v37 = vpop.eup %4099  ;;  %v2718_v58 = vsel %vm4940_vm5, %v2654_v61, -1e+30  ;;  %4113 = vpow2.f32 %v2022_v4 }
 0x2fa   : > { %7927 = vst [vmem:[#allocation25_spill] sm:$0xff] %v6232_v37  ;;  %v2020_v17 = vmul.f32 1.442695, %v1944_v50  ;;  %v2795_v50 = vmul.f32 1.442695, %v2718_v58  ;;  %v7934_v58 = vld [vmem:[#allocation112_spill] sm:$0xff] }
 0x2fb   : > { %2919 = vadd.xlane.f32.xlu1 %v6208_v20  ;;  %2917 = vadd.xlane.f32.xlu0 %v6214_v46  ;;  %v2653_v46 = vsub.f32 %v7923_v52, %v7926_v35  ;;  %v1887_v20 = vsub.f32 %v7928_v54, %v5816_v22  ;;  %v6244_v52 = vpop.eup %4101  ;;  %v7931_v35 = vld [vmem:[#allocation30_spill] sm:$0xff] }
 0x2fc   : > { %v6222_v55 = vpop.xlane.xlu1 %1814  ;;  %v6224_v8 = vpop.xlane.xlu0 %1812  ;;  %7929 = vst [vmem:[#allocation106_spill] sm:$0xff] %v6244_v52  ;;  %4115 = vpow2.f32 %v2020_v17 }
 0x2fd   : > { %v2717_v0 = vsel %vm4940_vm5, %v2653_v46, -1e+30  ;;  %v6250_v29 = vpop.eup %4103  ;;  %v1951_v61 = vsel %vm4947_vm6, %v1887_v20, -1e+30  ;;  %4117 = vpow2.f32 %v2795_v50 }
 0x2fe   : > { %7932 = vst [vmem:[#allocation31_spill] sm:$0xff] %v6250_v29  ;;  %v2793_v22 = vmul.f32 1.442695, %v2717_v0  ;;  %v2034_v0 = vmul.f32 1.442695, %v1951_v61  ;;  %v7938_v61 = vld [vmem:[#allocation117_spill] sm:$0xff] }
 0x2ff   : > { %2142 = vadd.xlane.f32.xlu1 %v6226_v12  ;;  %2140 = vadd.xlane.f32.xlu0 %v6232_v37  ;;  %v1886_v37 = vsub.f32 %v7931_v35, %v7930_v14  ;;  %v2660_v12 = vsub.f32 %v7928_v54, %v5829_v30  ;;  %v6262_v14 = vpop.eup %4105  ;;  %v7936_v54 = vld [vmem:[#allocation34_spill] sm:$0xff] }
 0x300   : > { %v6240_v1 = vpop.xlane.xlu1 %2587  ;;  %v6242_v16 = vpop.xlane.xlu0 %2585  ;;  %7933 = vst [vmem:[#allocation111_spill] sm:$0xff] %v6262_v14  ;;  %4119 = vpow2.f32 %v2793_v22 }
 0x301   : > { %v1950_v4 = vsel %vm4947_vm6, %v1886_v37, -1e+30  ;;  %v6268_v17 = vpop.eup %4107  ;;  %v2724_v20 = vsel %vm4940_vm5, %v2660_v12, -1e+30  ;;  %4121 = vpow2.f32 %v2034_v0 }
 0x302   : > { %7935 = vst [vmem:[#allocation30_spill] sm:$0xff] %v6268_v17  ;;  %v2032_v30 = vmul.f32 1.442695, %v1950_v4  ;;  %v2807_v4 = vmul.f32 1.442695, %v2724_v20  ;;  %v7942_v20 = vld [vmem:[#allocation118_spill] sm:$0xff] }
 0x303   : > { %2915 = vadd.xlane.f32.xlu1 %v6244_v52  ;;  %2913 = vadd.xlane.f32.xlu0 %v6250_v29  ;;  %v2659_v29 = vsub.f32 %v7931_v35, %v7934_v58  ;;  %v1885_v52 = vsub.f32 %v7936_v54, %v5851_v51  ;;  %v6280_v35 = vpop.eup %4109  ;;  %v7939_v58 = vld [vmem:[#allocation33_spill] sm:$0xff] }
 0x304   : > { %v6258_v46 = vpop.xlane.xlu1 %1826  ;;  %v6260_v21 = vpop.xlane.xlu0 %1824  ;;  %7937 = vst [vmem:[#allocation112_spill] sm:$0xff] %v6280_v35  ;;  %4123 = vpow2.f32 %v2032_v30 }
 0x305   : > { %v2723_v50 = vsel %vm4940_vm5, %v2659_v29, -1e+30  ;;  %v6286_v22 = vpop.eup %4111  ;;  %v1949_v12 = vsel %vm4947_vm6, %v1885_v52, -1e+30  ;;  %4125 = vpow2.f32 %v2807_v4 }
 0x306   : > { %7940 = vst [vmem:[#allocation34_spill] sm:$0xff] %v6286_v22  ;;  %v2805_v51 = vmul.f32 1.442695, %v2723_v50  ;;  %v2030_v50 = vmul.f32 1.442695, %v1949_v12  ;;  %v7946_v12 = vld [vmem:[#allocation123_spill] sm:$0xff] }
 0x307   : > { %2154 = vadd.xlane.f32.xlu1 %v6262_v14  ;;  %2152 = vadd.xlane.f32.xlu0 %v6268_v17  ;;  %v1884_v17 = vsub.f32 %v7939_v58, %v7938_v61  ;;  %v2658_v14 = vsub.f32 %v7936_v54, %v5864_v33  ;;  %v6298_v61 = vpop.eup %4113  ;;  %v7944_v54 = vld [vmem:[#allocation39_spill] sm:$0xff] }
 0x308   : > { %v6276_v37 = vpop.xlane.xlu1 %2599  ;;  %v6278_v7 = vpop.xlane.xlu0 %2597  ;;  %7941 = vst [vmem:[#allocation117_spill] sm:$0xff] %v6298_v61  ;;  %4127 = vpow2.f32 %v2805_v51 }
 0x309   : > { %v1948_v0 = vsel %vm4947_vm6, %v1884_v17, -1e+30  ;;  %v6304_v30 = vpop.eup %4115  ;;  %v2722_v52 = vsel %vm4940_vm5, %v2658_v14, -1e+30  ;;  %4129 = vpow2.f32 %v2030_v50 }
 0x30a   : > { %7943 = vst [vmem:[#allocation33_spill] sm:$0xff] %v6304_v30  ;;  %v2028_v33 = vmul.f32 1.442695, %v1948_v0  ;;  %v2803_v0 = vmul.f32 1.442695, %v2722_v52  ;;  %v7950_v52 = vld [vmem:[#allocation124_spill] sm:$0xff] }
 0x30b   : > { %2927 = vadd.xlane.f32.xlu1 %v6280_v35  ;;  %2925 = vadd.xlane.f32.xlu0 %v6286_v22  ;;  %v2657_v22 = vsub.f32 %v7939_v58, %v7942_v20  ;;  %v1891_v35 = vsub.f32 %v7944_v54, %v5886_v62  ;;  %v6316_v58 = vpop.eup %4117  ;;  %v7947_v20 = vld [vmem:[#allocation38_spill] sm:$0xff] }
 0x30c   : > { %v6294_v29 = vpop.xlane.xlu1 %1822  ;;  %v6296_v60 = vpop.xlane.xlu0 %1820  ;;  %7945 = vst [vmem:[#allocation118_spill] sm:$0xff] %v6316_v58  ;;  %4131 = vpow2.f32 %v2028_v33 }
 0x30d   : > { %v2721_v4 = vsel %vm4940_vm5, %v2657_v22, -1e+30  ;;  %v6322_v51 = vpop.eup %4119  ;;  %v1955_v14 = vsel %vm4947_vm6, %v1891_v35, -1e+30  ;;  %4133 = vpow2.f32 %v2803_v0 }
 0x30e   : > { %7948 = vst [vmem:[#allocation39_spill] sm:$0xff] %v6322_v51  ;;  %v2801_v62 = vmul.f32 1.442695, %v2721_v4  ;;  %v2042_v4 = vmul.f32 1.442695, %v1955_v14  ;;  %v7955_v14 = vld [vmem:[#allocation129_spill] sm:$0xff] }
 0x30f   : > { %2150 = vadd.xlane.f32.xlu1 %v6298_v61  ;;  %2148 = vadd.xlane.f32.xlu0 %v6304_v30  ;;  %v1890_v30 = vsub.f32 %v7947_v20, %v7946_v12  ;;  %v2664_v61 = vsub.f32 %v7944_v54, %v5899_v18  ;;  %v6334_v12 = vpop.eup %4121  ;;  %v7952_v54 = vld [vmem:[#allocation42_spill] sm:$0xff] }
 0x310   : > { %v6312_v17 = vpop.xlane.xlu1 %2595  ;;  %v6314_v39 = vpop.xlane.xlu0 %2593  ;;  %7949 = vst [vmem:[#allocation123_spill] sm:$0xff] %v6334_v12  ;;  %4135 = vpow2.f32 %v2801_v62 }
 0x311   : > { %v1954_v50 = vsel %vm4947_vm6, %v1890_v30, -1e+30  ;;  %v6340_v33 = vpop.eup %4123  ;;  %v2728_v35 = vsel %vm4940_vm5, %v2664_v61, -1e+30  ;;  %4137 = vpow2.f32 %v2042_v4 }
 0x312   : > { %7951 = vst [vmem:[#allocation38_spill] sm:$0xff] %v6340_v33  ;;  %v2040_v18 = vmul.f32 1.442695, %v1954_v50  ;;  %v2815_v50 = vmul.f32 1.442695, %v2728_v35 }
 0x313   : > { %2923 = vadd.xlane.f32.xlu1 %v6316_v58  ;;  %2921 = vadd.xlane.f32.xlu0 %v6322_v51  ;;  %v2663_v51 = vsub.f32 %v7947_v20, %v7950_v52  ;;  %v1889_v58 = vsub.f32 %v7952_v54, %v5921_v19  ;;  %v6352_v20 = vpop.eup %4125  ;;  %v7956_v52 = vld [vmem:[#allocation41_spill] sm:$0xff] }
 0x314   : > { %v6330_v22 = vpop.xlane.xlu1 %1834  ;;  %v6332_v24 = vpop.xlane.xlu0 %1832  ;;  %7954 = vst [vmem:[#allocation42_spill] sm:$0xff] %v6352_v20  ;;  %4139 = vpow2.f32 %v2040_v18  ;;  %v2661_v35 = vsub.f32 %v7956_v52, %v5938_v36 }
 0x315   : > { %v2727_v0 = vsel %vm4940_vm5, %v2663_v51, -1e+30  ;;  %v6358_v62 = vpop.eup %4127  ;;  %v1953_v61 = vsel %vm4947_vm6, %v1889_v58, -1e+30  ;;  %4141 = vpow2.f32 %v2815_v50  ;;  %v7962_v50 = vld [vmem:[#allocation46_spill] sm:$0xff] }
 0x316   : > { %7957 = vst [vmem:[#allocation129_spill] sm:$0xff] %v6358_v62  ;;  %v2813_v19 = vmul.f32 1.442695, %v2727_v0  ;;  %v2038_v0 = vmul.f32 1.442695, %v1953_v61  ;;  %v1894_v61 = vsub.f32 %v7962_v50, %v5966_v43 }
 0x317   : > { %2162 = vadd.xlane.f32.xlu1 %v6334_v12  ;;  %2160 = vadd.xlane.f32.xlu0 %v6340_v33  ;;  %v1888_v33 = vsub.f32 %v7956_v52, %v7955_v14  ;;  %v2662_v12 = vsub.f32 %v7952_v54, %v5936_v42  ;;  %v6370_v14 = vpop.eup %4129  ;;  %v7960_v54 = vld [vmem:[#allocation47_spill] sm:$0xff]  ;;  %v2725_v52 = vsel %vm4940_vm5, %v2661_v35, -1e+30 }
 0x318   : > { %v6348_v30 = vpop.xlane.xlu1 %2607  ;;  %v6350_v31 = vpop.xlane.xlu0 %2605  ;;  %7958 = vst [vmem:[#allocation41_spill] sm:$0xff] %v6370_v14  ;;  %4143 = vpow2.f32 %v2813_v19 }
 0x319   : > { %7953 = vst [vmem:[#allocation124_spill] sm:$0xff] %v6350_v31  ;;  %v1952_v4 = vsel %vm4947_vm6, %v1888_v33, -1e+30  ;;  %v6376_v18 = vpop.eup %4131  ;;  %v2726_v58 = vsel %vm4940_vm5, %v2662_v12, -1e+30  ;;  %4145 = vpow2.f32 %v2038_v0 }
 0x31a   : > { %7959 = vst [vmem:[#allocation148_spill] sm:$0xff] %v6376_v18  ;;  %v2036_v42 = vmul.f32 1.442695, %v1952_v4  ;;  %v6388_v36 = vpop.eup %4133  ;;  %v2811_v4 = vmul.f32 1.442695, %v2726_v58  ;;  %v2667_v58 = vsub.f32 %v7962_v50, %v5986_v2 }
 0x31b   : > { %2935 = vadd.xlane.f32.xlu1 %v6352_v20  ;;  %2933 = vadd.xlane.f32.xlu0 %v6358_v62  ;;  %v1895_v62 = vsub.f32 %v7960_v54, %v5964_v6  ;;  %7961 = vst [vmem:[#allocation47_spill] sm:$0xff] %v6388_v36  ;;  %v6394_v19 = vpop.eup %4135  ;;  %v2809_v6 = vmul.f32 1.442695, %v2725_v52  ;;  %v1958_v0 = vsel %vm4947_vm6, %v1894_v61, -1e+30 }
 0x31c   : > { %v6366_v51 = vpop.xlane.xlu1 %1830  ;;  %v6368_v31 = vpop.xlane.xlu0 %1828  ;;  %7963 = vst [vmem:[#allocation46_spill] sm:$0xff] %v6394_v19  ;;  %4147 = vpow2.f32 %v2036_v42  ;;  %v2731_v50 = vsel %vm4940_vm5, %v2667_v58, -1e+30 }
 0x31d   : > { %v1959_v12 = vsel %vm4947_vm6, %v1895_v62, -1e+30  ;;  %v6406_v43 = vpop.eup %4137  ;;  %4149 = vpow2.f32 %v2811_v4  ;;  %v7968_v4 = vld [vmem:[#allocation49_spill] sm:$0xff] }
 0x31e   : > { %7964 = vst [vmem:[#allocation149_spill] sm:$0xff] %v6406_v43  ;;  %v6412_v42 = vpop.eup %4139  ;;  %v2050_v52 = vmul.f32 1.442695, %v1959_v12  ;;  %4151 = vpow2.f32 %v2809_v6  ;;  %v1892_v12 = vsub.f32 %v7968_v4, %v6008_v34 }
 0x31f   : > { %2158 = vadd.xlane.f32.xlu1 %v6370_v14  ;;  %2156 = vadd.xlane.f32.xlu0 %v6376_v18  ;;  %v2668_v18 = vsub.f32 %v7960_v54, %v5984_v45  ;;  %7965 = vst [vmem:[#allocation150_spill] sm:$0xff] %v6412_v42  ;;  %v2048_v45 = vmul.f32 1.442695, %v1958_v0  ;;  %v7966_v54 = vld [vmem:[#allocation50_spill] sm:$0xff]  ;;  %v6424_v2 = vpop.eup %4141 }
 0x320   : > { %v6384_v33 = vpop.xlane.xlu1 %2603  ;;  %v6386_v20 = vpop.xlane.xlu0 %2601  ;;  %7967 = vst [vmem:[#allocation50_spill] sm:$0xff] %v6424_v2  ;;  %4153 = vpow2.f32 %v2050_v52  ;;  %v1956_v52 = vsel %vm4947_vm6, %v1892_v12, -1e+30 }
 0x321   : > { %v2732_v62 = vsel %vm4940_vm5, %v2668_v18, -1e+30  ;;  %4155 = vpow2.f32 %v2048_v45 }
 0x322   : > { %v6430_v6 = vpop.eup %4143  ;;  %v2823_v0 = vmul.f32 1.442695, %v2732_v62  ;;  %v2665_v62 = vsub.f32 %v7968_v4, %v6026_v32 }
 0x323   : > { %2931 = vadd.xlane.f32.xlu1 %v6388_v36  ;;  %2929 = vadd.xlane.f32.xlu0 %v6394_v19  ;;  %v1893_v19 = vsub.f32 %v7966_v54, %v6006_v49  ;;  %7969 = vst [vmem:[#allocation49_spill] sm:$0xff] %v6430_v6  ;;  %v2821_v49 = vmul.f32 1.442695, %v2731_v50  ;;  %v6442_v34 = vpop.eup %4145 }
 0x324   : > { %v6402_v35 = vpop.xlane.xlu1 %1842  ;;  %v6404_v14 = vpop.xlane.xlu0 %1840  ;;  %7970 = vst [vmem:[#allocation151_spill] sm:$0xff] %v6442_v34  ;;  %4157 = vpow2.f32 %v2823_v0  ;;  %v2729_v4 = vsel %vm4940_vm5, %v2665_v62, -1e+30  ;;  %v7974_v0 = vld [vmem:[#allocation54_spill] sm:$0xff] }
 0x325   : > { %v1957_v18 = vsel %vm4947_vm6, %v1893_v19, -1e+30  ;;  %4159 = vpow2.f32 %v2821_v49 }
 0x326   : > { %v6448_v45 = vpop.eup %4147  ;;  %v2046_v50 = vmul.f32 1.442695, %v1957_v18  ;;  %v1898_v18 = vsub.f32 %v7974_v0, %v6044_v10 }
 0x327   : > { %2170 = vadd.xlane.f32.xlu1 %v6406_v43  ;;  %2168 = vadd.xlane.f32.xlu0 %v6412_v42  ;;  %v2666_v42 = vsub.f32 %v7966_v54, %v6024_v38  ;;  %7971 = vst [vmem:[#allocation152_spill] sm:$0xff] %v6448_v45  ;;  %v2044_v38 = vmul.f32 1.442695, %v1956_v52  ;;  %v7972_v54 = vld [vmem:[#allocation55_spill] sm:$0xff]  ;;  %v6460_v32 = vpop.eup %4149 }
 0x328   : > { %v6420_v61 = vpop.xlane.xlu1 %2615  ;;  %v6422_v36 = vpop.xlane.xlu0 %2613  ;;  %7973 = vst [vmem:[#allocation55_spill] sm:$0xff] %v6460_v32  ;;  %4161 = vpow2.f32 %v2046_v50  ;;  %v1962_v50 = vsel %vm4947_vm6, %v1898_v18, -1e+30 }
 0x329   : > { %v2730_v19 = vsel %vm4940_vm5, %v2666_v42, -1e+30  ;;  %v6466_v49 = vpop.eup %4151  ;;  %4163 = vpow2.f32 %v2044_v38 }
 0x32a   : > { %7975 = vst [vmem:[#allocation54_spill] sm:$0xff] %v6466_v49  ;;  %v2819_v52 = vmul.f32 1.442695, %v2730_v19  ;;  %v6478_v10 = vpop.eup %4153  ;;  %v2671_v19 = vsub.f32 %v7974_v0, %v6062_v57 }
 0x32b   : > { %2943 = vadd.xlane.f32.xlu1 %v6424_v2  ;;  %2941 = vadd.xlane.f32.xlu0 %v6430_v6  ;;  %v1899_v6 = vsub.f32 %v7972_v54, %v6042_v28  ;;  %v2817_v28 = vmul.f32 1.442695, %v2729_v4  ;;  %7976 = vst [vmem:[#allocation153_spill] sm:$0xff] %v6478_v10  ;;  %v6484_v38 = vpop.eup %4155 }
 0x32c   : > { %v6438_v58 = vpop.xlane.xlu1 %1838  ;;  %v6440_v43 = vpop.xlane.xlu0 %1836  ;;  %7977 = vst [vmem:[#allocation154_spill] sm:$0xff] %v6484_v38  ;;  %4165 = vpow2.f32 %v2819_v52  ;;  %v2735_v0 = vsel %vm4940_vm5, %v2671_v19, -1e+30  ;;  %v7980_v52 = vld [vmem:[#allocation57_spill] sm:$0xff] }
 0x32d   : > { %v1963_v42 = vsel %vm4947_vm6, %v1899_v6, -1e+30  ;;  %4167 = vpow2.f32 %v2817_v28 }
 0x32e   : > { %v2058_v4 = vmul.f32 1.442695, %v1963_v42  ;;  %v6496_v57 = vpop.eup %4157  ;;  %v1896_v42 = vsub.f32 %v7980_v52, %v6080_v53 }
 0x32f   : > { %2166 = vadd.xlane.f32.xlu1 %v6442_v34  ;;  %2164 = vadd.xlane.f32.xlu0 %v6448_v45  ;;  %v2672_v45 = vsub.f32 %v7972_v54, %v6060_v13  ;;  %v2056_v13 = vmul.f32 1.442695, %v1962_v50  ;;  %v7978_v54 = vld [vmem:[#allocation58_spill] sm:$0xff]  ;;  %v6502_v28 = vpop.eup %4159 }
 0x330   : > { %v6456_v12 = vpop.xlane.xlu1 %2611  ;;  %v6458_v2 = vpop.xlane.xlu0 %2609  ;;  %7979 = vst [vmem:[#allocation58_spill] sm:$0xff] %v6496_v57  ;;  %7981 = vst [vmem:[#allocation57_spill] sm:$0xff] %v6502_v28  ;;  %4169 = vpow2.f32 %v2058_v4  ;;  %v1960_v4 = vsel %vm4947_vm6, %v1896_v42, -1e+30 }
 0x331   : > { %v2736_v6 = vsel %vm4940_vm5, %v2672_v45, -1e+30  ;;  %4171 = vpow2.f32 %v2056_v13 }
 0x332   : > { %v2831_v50 = vmul.f32 1.442695, %v2736_v6  ;;  %v6514_v53 = vpop.eup %4161  ;;  %v2669_v6 = vsub.f32 %v7980_v52, %v6098_v48 }
 0x333   : > { %2939 = vadd.xlane.f32.xlu1 %v6460_v32  ;;  %2937 = vadd.xlane.f32.xlu0 %v6466_v49  ;;  %v1897_v49 = vsub.f32 %v7978_v54, %v6078_v63  ;;  %v2829_v63 = vmul.f32 1.442695, %v2735_v0  ;;  %7982 = vst [vmem:[#allocation155_spill] sm:$0xff] %v6514_v53  ;;  %v6520_v13 = vpop.eup %4163 }
 0x334   : > { %v6474_v62 = vpop.xlane.xlu1 %1850  ;;  %v6476_v34 = vpop.xlane.xlu0 %1848  ;;  %7983 = vst [vmem:[#allocation156_spill] sm:$0xff] %v6520_v13  ;;  %4173 = vpow2.f32 %v2831_v50  ;;  %v2733_v52 = vsel %vm4940_vm5, %v2669_v6, -1e+30  ;;  %v7986_v50 = vld [vmem:[#allocation62_spill] sm:$0xff] }
 0x335   : > { %v1961_v45 = vsel %vm4947_vm6, %v1897_v49, -1e+30  ;;  %4175 = vpow2.f32 %v2829_v63 }
 0x336   : > { %v2054_v0 = vmul.f32 1.442695, %v1961_v45  ;;  %v6532_v48 = vpop.eup %4165  ;;  %v1902_v45 = vsub.f32 %v7986_v50, %v6116_v9 }
 0x337   : > { %2178 = vadd.xlane.f32.xlu1 %v6478_v10  ;;  %2176 = vadd.xlane.f32.xlu0 %v6484_v38  ;;  %v2670_v38 = vsub.f32 %v7978_v54, %v6096_v47  ;;  %v2052_v47 = vmul.f32 1.442695, %v1960_v4  ;;  %v7984_v54 = vld [vmem:[#allocation63_spill] sm:$0xff]  ;;  %v6538_v63 = vpop.eup %4167 }
 0x338   : > { %v6492_v18 = vpop.xlane.xlu1 %2623  ;;  %v6494_v32 = vpop.xlane.xlu0 %2621  ;;  %7985 = vst [vmem:[#allocation63_spill] sm:$0xff] %v6532_v48  ;;  %7987 = vst [vmem:[#allocation62_spill] sm:$0xff] %v6538_v63  ;;  %4177 = vpow2.f32 %v2054_v0  ;;  %v1966_v0 = vsel %vm4947_vm6, %v1902_v45, -1e+30 }
 0x339   : > { %v2734_v49 = vsel %vm4940_vm5, %v2670_v38, -1e+30  ;;  %4179 = vpow2.f32 %v2052_v47 }
 0x33a   : > { %v2827_v4 = vmul.f32 1.442695, %v2734_v49  ;;  %v6550_v9 = vpop.eup %4169  ;;  %v2675_v49 = vsub.f32 %v7986_v50, %v6134_v5 }
 0x33b   : > { %2951 = vadd.xlane.f32.xlu1 %v6496_v57  ;;  %2949 = vadd.xlane.f32.xlu0 %v6502_v28  ;;  %v1903_v28 = vsub.f32 %v7984_v54, %v6114_v11  ;;  %v2825_v11 = vmul.f32 1.442695, %v2733_v52  ;;  %7988 = vst [vmem:[#allocation157_spill] sm:$0xff] %v6550_v9  ;;  %v6556_v47 = vpop.eup %4171 }
 0x33c   : > { %v6510_v19 = vpop.xlane.xlu1 %1846  ;;  %v6512_v10 = vpop.xlane.xlu0 %1844  ;;  %7989 = vst [vmem:[#allocation158_spill] sm:$0xff] %v6556_v47  ;;  %4181 = vpow2.f32 %v2827_v4  ;;  %v2739_v50 = vsel %vm4940_vm5, %v2675_v49, -1e+30  ;;  %v7992_v4 = vld [vmem:[#allocation65_spill] sm:$0xff] }
 0x33d   : > { %v1967_v38 = vsel %vm4947_vm6, %v1903_v28, -1e+30  ;;  %4183 = vpow2.f32 %v2825_v11 }
 0x33e   : > { %v2066_v52 = vmul.f32 1.442695, %v1967_v38  ;;  %v6568_v5 = vpop.eup %4173  ;;  %v1900_v38 = vsub.f32 %v7992_v4, %v6152_v27 }
 0x33f   : > { %2174 = vadd.xlane.f32.xlu1 %v6514_v53  ;;  %2172 = vadd.xlane.f32.xlu0 %v6520_v13  ;;  %v2676_v13 = vsub.f32 %v7984_v54, %v6132_v59  ;;  %v2064_v59 = vmul.f32 1.442695, %v1966_v0  ;;  %v7990_v54 = vld [vmem:[#allocation66_spill] sm:$0xff]  ;;  %v6574_v11 = vpop.eup %4175 }
 0x340   : > { %v6528_v42 = vpop.xlane.xlu1 %2619  ;;  %v6530_v57 = vpop.xlane.xlu0 %2617  ;;  %7991 = vst [vmem:[#allocation66_spill] sm:$0xff] %v6568_v5  ;;  %7993 = vst [vmem:[#allocation65_spill] sm:$0xff] %v6574_v11  ;;  %4185 = vpow2.f32 %v2066_v52  ;;  %v1964_v52 = vsel %vm4947_vm6, %v1900_v38, -1e+30 }
 0x341   : > { %v2740_v28 = vsel %vm4940_vm5, %v2676_v13, -1e+30  ;;  %4187 = vpow2.f32 %v2064_v59 }
 0x342   : > { %v2839_v0 = vmul.f32 1.442695, %v2740_v28  ;;  %v6586_v27 = vpop.eup %4177  ;;  %v2673_v28 = vsub.f32 %v7992_v4, %v6170_v56 }
 0x343   : > { %2947 = vadd.xlane.f32.xlu1 %v6532_v48  ;;  %2945 = vadd.xlane.f32.xlu0 %v6538_v63  ;;  %v1901_v63 = vsub.f32 %v7990_v54, %v6150_v40  ;;  %v2837_v40 = vmul.f32 1.442695, %v2739_v50  ;;  %7994 = vst [vmem:[#allocation159_spill] sm:$0xff] %v6586_v27  ;;  %v6592_v59 = vpop.eup %4179 }
 0x344   : > { %v6546_v6 = vpop.xlane.xlu1 %1858  ;;  %v6548_v53 = vpop.xlane.xlu0 %1856  ;;  %7995 = vst [vmem:[#allocation160_spill] sm:$0xff] %v6592_v59  ;;  %4189 = vpow2.f32 %v2839_v0  ;;  %v2737_v4 = vsel %vm4940_vm5, %v2673_v28, -1e+30  ;;  %v7998_v0 = vld [vmem:[#allocation70_spill] sm:$0xff] }
 0x345   : > { %v1965_v13 = vsel %vm4947_vm6, %v1901_v63, -1e+30  ;;  %4191 = vpow2.f32 %v2837_v40 }
 0x346   : > { %v2062_v50 = vmul.f32 1.442695, %v1965_v13  ;;  %v6604_v56 = vpop.eup %4181  ;;  %v1906_v13 = vsub.f32 %v7998_v0, %v6188_v41 }
 0x347   : > { %2186 = vadd.xlane.f32.xlu1 %v6550_v9  ;;  %2184 = vadd.xlane.f32.xlu0 %v6556_v47  ;;  %v2674_v47 = vsub.f32 %v7990_v54, %v6168_v26  ;;  %v2060_v26 = vmul.f32 1.442695, %v1964_v52  ;;  %v7996_v54 = vld [vmem:[#allocation71_spill] sm:$0xff]  ;;  %v6610_v40 = vpop.eup %4183 }
 0x348   : > { %v6564_v45 = vpop.xlane.xlu1 %2631  ;;  %v6566_v48 = vpop.xlane.xlu0 %2629  ;;  %7997 = vst [vmem:[#allocation71_spill] sm:$0xff] %v6604_v56  ;;  %7999 = vst [vmem:[#allocation70_spill] sm:$0xff] %v6610_v40  ;;  %4193 = vpow2.f32 %v2062_v50  ;;  %v1970_v50 = vsel %vm4947_vm6, %v1906_v13, -1e+30 }
 0x349   : > { %v2738_v63 = vsel %vm4940_vm5, %v2674_v47, -1e+30  ;;  %4195 = vpow2.f32 %v2060_v26 }
 0x34a   : > { %v2835_v52 = vmul.f32 1.442695, %v2738_v63  ;;  %v6622_v41 = vpop.eup %4185  ;;  %v2679_v63 = vsub.f32 %v7998_v0, %v6206_v15 }
 0x34b   : > { %2959 = vadd.xlane.f32.xlu1 %v6568_v5  ;;  %2957 = vadd.xlane.f32.xlu0 %v6574_v11  ;;  %v1907_v11 = vsub.f32 %v7996_v54, %v6186_v3  ;;  %v2833_v3 = vmul.f32 1.442695, %v2737_v4  ;;  %8000 = vst [vmem:[#allocation161_spill] sm:$0xff] %v6622_v41  ;;  %v6628_v26 = vpop.eup %4187 }
 0x34c   : > { %v6582_v49 = vpop.xlane.xlu1 %1854  ;;  %v6584_v9 = vpop.xlane.xlu0 %1852  ;;  %8001 = vst [vmem:[#allocation162_spill] sm:$0xff] %v6628_v26  ;;  %4197 = vpow2.f32 %v2835_v52  ;;  %v2743_v0 = vsel %vm4940_vm5, %v2679_v63, -1e+30  ;;  %v8004_v52 = vld [vmem:[#allocation73_spill] sm:$0xff] }
 0x34d   : > { %v1971_v47 = vsel %vm4947_vm6, %v1907_v11, -1e+30  ;;  %4199 = vpow2.f32 %v2833_v3 }
 0x34e   : > { %v2074_v4 = vmul.f32 1.442695, %v1971_v47  ;;  %v6640_v15 = vpop.eup %4189  ;;  %v1904_v47 = vsub.f32 %v8004_v52, %v6224_v8 }
 0x34f   : > { %2182 = vadd.xlane.f32.xlu1 %v6586_v27  ;;  %2180 = vadd.xlane.f32.xlu0 %v6592_v59  ;;  %v2680_v59 = vsub.f32 %v7996_v54, %v6204_v44  ;;  %v2072_v44 = vmul.f32 1.442695, %v1970_v50  ;;  %v8002_v54 = vld [vmem:[#allocation74_spill] sm:$0xff]  ;;  %v6646_v3 = vpop.eup %4191 }
 0x350   : > { %v6600_v38 = vpop.xlane.xlu1 %2627  ;;  %v6602_v5 = vpop.xlane.xlu0 %2625  ;;  %8005 = vst [vmem:[#allocation73_spill] sm:$0xff] %v6646_v3  ;;  %4201 = vpow2.f32 %v2074_v4 }
 0x351   : > { %v2744_v11 = vsel %vm4940_vm5, %v2680_v59, -1e+30  ;;  %v2678_v59 = vsub.f32 %v8002_v54, %v6240_v1  ;;  %4203 = vpow2.f32 %v2072_v44  ;;  %v1968_v1 = vsel %vm4947_vm6, %v1904_v47, -1e+30 }
 0x352   : > { %v2847_v50 = vmul.f32 1.442695, %v2744_v11 }
 0x353   : > { %2955 = vadd.xlane.f32.xlu1 %v6604_v56  ;;  %2953 = vadd.xlane.f32.xlu0 %v6610_v40  ;;  %v1905_v40 = vsub.f32 %v8002_v54, %v6222_v55  ;;  %v2677_v55 = vsub.f32 %v8004_v52, %v6242_v16  ;;  %v2742_v16 = vsel %vm4940_vm5, %v2678_v59, -1e+30  ;;  %v8008_v54 = vld [vmem:[#allocation79_spill] sm:$0xff] }
 0x354   : > { %v6618_v28 = vpop.xlane.xlu1 %1866  ;;  %v6620_v27 = vpop.xlane.xlu0 %1864  ;;  %4205 = vpow2.f32 %v2847_v50  ;;  %v2843_v59 = vmul.f32 1.442695, %v2742_v16  ;;  %v8009_v50 = vld [vmem:[#allocation78_spill] sm:$0xff] }
 0x355   : > { %v1969_v63 = vsel %vm4947_vm6, %v1905_v40, -1e+30  ;;  %v2741_v11 = vsel %vm4940_vm5, %v2677_v55, -1e+30  ;;  %v2068_v40 = vmul.f32 1.442695, %v1968_v1 }
 0x356   : > { %v2070_v44 = vmul.f32 1.442695, %v1969_v63  ;;  %v1910_v63 = vsub.f32 %v8009_v50, %v6260_v21 }
 0x357   : > { %2194 = vadd.xlane.f32.xlu1 %v6622_v41  ;;  %2192 = vadd.xlane.f32.xlu0 %v6628_v26  ;;  %v2845_v26 = vmul.f32 1.442695, %v2743_v0  ;;  %v1911_v0 = vsub.f32 %v8008_v54, %v6258_v46  ;;  %v2683_v46 = vsub.f32 %v8009_v50, %v6278_v7 }
 0x358   : > { %v6636_v13 = vpop.xlane.xlu1 %2639  ;;  %v6638_v56 = vpop.xlane.xlu0 %2637 }
 0x359   : > { %8003 = vst [vmem:[#allocation74_spill] sm:$0xff] %v6638_v56  ;;  %v6660_v56 = vpop.eup %4193  ;;  %4207 = vpow2.f32 %v2845_v26  ;;  %v2684_v26 = vsub.f32 %v8008_v54, %v6276_v37  ;;  %v1975_v1 = vsel %vm4947_vm6, %v1911_v0, -1e+30  ;;  %v1974_v37 = vsel %vm4947_vm6, %v1910_v63, -1e+30  ;;  %v8013_v0 = vld [vmem:[#allocation82_spill] sm:$0xff] }
 0x35a   : > { %8006 = vst [vmem:[#allocation163_spill] sm:$0xff] %v6660_v56  ;;  %v6664_v4 = vpop.eup %4195  ;;  %4209 = vpow2.f32 %v2070_v44  ;;  %v2080_v54 = vmul.f32 1.442695, %v1974_v37 }
 0x35b   : > { %2967 = vadd.xlane.f32.xlu1 %v6640_v15  ;;  %2965 = vadd.xlane.f32.xlu0 %v6646_v3  ;;  %8007 = vst [vmem:[#allocation164_spill] sm:$0xff] %v6664_v4  ;;  %v6678_v3 = vpop.eup %4197  ;;  %4211 = vpow2.f32 %v2068_v40  ;;  %v2748_v7 = vsel %vm4940_vm5, %v2684_v26, -1e+30  ;;  %v2747_v40 = vsel %vm4940_vm5, %v2683_v46, -1e+30  ;;  %v8015_v26 = vld [vmem:[#allocation81_spill] sm:$0xff] }
 0x35c   : > { %v6656_v8 = vpop.xlane.xlu1 %1862  ;;  %v6658_v41 = vpop.xlane.xlu0 %1860  ;;  %4213 = vpow2.f32 %v2843_v59  ;;  %v1909_v59 = vsub.f32 %v8013_v0, %v6294_v29  ;;  %v2681_v29 = vsub.f32 %v8015_v26, %v6314_v39 }
 0x35d   : > { %v6682_v55 = vpop.eup %4199 }
 0x35e   : > { %8010 = vst [vmem:[#allocation79_spill] sm:$0xff] %v6682_v55 }
 0x35f   : > { %2190 = vadd.xlane.f32.xlu1 %v6660_v56  ;;  %2188 = vadd.xlane.f32.xlu0 %v6664_v4  ;;  %v2841_v56 = vmul.f32 1.442695, %v2741_v11  ;;  %v6692_v4 = vpop.eup %4201  ;;  %v2082_v11 = vmul.f32 1.442695, %v1975_v1  ;;  %v1908_v1 = vsub.f32 %v8015_v26, %v6296_v60  ;;  %v1973_v60 = vsel %vm4947_vm6, %v1909_v59, -1e+30 }
 0x360   : > { %v6674_v52 = vpop.xlane.xlu1 %2635  ;;  %v6676_v47 = vpop.xlane.xlu0 %2633  ;;  %8011 = vst [vmem:[#allocation78_spill] sm:$0xff] %v6692_v4 }
 0x361   : > { %v6696_v44 = vpop.eup %4203  ;;  %4215 = vpow2.f32 %v2841_v56 }
 0x362   : > { %8012 = vst [vmem:[#allocation165_spill] sm:$0xff] %v6696_v44  ;;  %v6706_v56 = vpop.eup %4205 }
 0x363   : > { %2963 = vadd.xlane.f32.xlu1 %v6678_v3  ;;  %2961 = vadd.xlane.f32.xlu0 %v6682_v55  ;;  %8014 = vst [vmem:[#allocation82_spill] sm:$0xff] %v6706_v56  ;;  %v2855_v55 = vmul.f32 1.442695, %v2748_v7  ;;  %v6710_v46 = vpop.eup %4207 }
 0x364   : > { %v2131_v16 = vpop.xlane.xlu1 %2130  ;;  %v2129_v21 = vpop.xlane.xlu0 %2128  ;;  %8016 = vst [vmem:[#allocation81_spill] sm:$0xff] %v6710_v46 }
 0x365   : > { %4217 = vrcp.f32 %v2131_v16  ;;  %v2853_v16 = vmul.f32 1.442695, %v2747_v40  ;;  %v6720_v7 = vpop.eup %4209 }
 0x366   : > { %4219 = vrcp.f32 %v2129_v21  ;;  %8017 = vst [vmem:[#allocation166_spill] sm:$0xff] %v6720_v7 }
 0x367   : > { %2202 = vadd.xlane.f32.xlu1 %v6692_v4  ;;  %2200 = vadd.xlane.f32.xlu0 %v6696_v44  ;;  %v2682_v44 = vsub.f32 %v8013_v0, %v6312_v17  ;;  %v1972_v17 = vsel %vm4947_vm6, %v1908_v1, -1e+30  ;;  %v2745_v0 = vsel %vm4940_vm5, %v2681_v29, -1e+30  ;;  %v8022_v29 = vld [vmem:[#allocation86_spill] sm:$0xff] }
 0x368   : > { %v2904_v50 = vpop.xlane.xlu1 %2903  ;;  %v2902_v63 = vpop.xlane.xlu0 %2901  ;;  %v2076_v59 = vmul.f32 1.442695, %v1972_v17 }
 0x369   : > { %4221 = vrcp.f32 %v2904_v50  ;;  %v2746_v39 = vsel %vm4940_vm5, %v2682_v44, -1e+30  ;;  %v8021_v50 = vld [vmem:[#allocation87_spill] sm:$0xff] }
 0x36a   : > { %4223 = vrcp.f32 %v2902_v63  ;;  %v1915_v63 = vsub.f32 %v8021_v50, %v6330_v22 }
 0x36b   : > { %4225 = vpow2.f32 %v2082_v11  ;;  %2975 = vadd.xlane.f32.xlu1 %v6706_v56  ;;  %2973 = vadd.xlane.f32.xlu0 %v6710_v46  ;;  %v6724_v11 = vpop.eup %4211  ;;  %v8023_v46 = vld [vmem:[#allocation6_spill] sm:$0xff]  ;;  %v8024_v56 = vld [vmem:[#allocation124_spill] sm:$0xff] }
 0x36c   : > { %4227 = vpow2.f32 %v2080_v54  ;;  %v2127_v21 = vpop.xlane.xlu1 %2126  ;;  %v2125_v37 = vpop.xlane.xlu0 %2124  ;;  %8018 = vst [vmem:[#allocation167_spill] sm:$0xff] %v6724_v11  ;;  %v2078_v54 = vmul.f32 1.442695, %v1973_v60  ;;  %v1914_v60 = vsub.f32 %v8022_v29, %v6332_v24  ;;  %v3220_v22 = vmax.f32 %v8023_v46, 0.0 }
 0x36d   : > { %4229 = vpow2.f32 %v2855_v55  ;;  %v6728_v40 = vpop.eup %4213 }
 0x36e   : > { %4231 = vpow2.f32 %v2853_v16  ;;  %8019 = vst [vmem:[#allocation168_spill] sm:$0xff] %v6728_v40  ;;  %v6734_v55 = vpop.eup %4215  ;;  %v2851_v16 = vmul.f32 1.442695, %v2746_v39  ;;  %v8025_v39 = vld [vmem:[#allocation137_spill] sm:$0xff] }
 0x36f   : > { %4233 = vrcp.f32 %v2127_v21  ;;  %2198 = vadd.xlane.f32.xlu1 %v6720_v7  ;;  %2196 = vadd.xlane.f32.xlu0 %v6724_v11  ;;  %8020 = vst [vmem:[#allocation169_spill] sm:$0xff] %v6734_v55  ;;  %v4218_v1 = vpop.eup %4217  ;;  %v2849_v7 = vmul.f32 1.442695, %v2745_v0  ;;  %v2688_v11 = vsub.f32 %v8021_v50, %v6348_v30  ;;  %v1979_v30 = vsel %vm4947_vm6, %v1915_v63, -1e+30  ;;  %v8026_v50 = vld [vmem:[#allocation139_spill] sm:$0xff] }
 0x370   : > { %4235 = vrcp.f32 %v2125_v37  ;;  %v2900_v44 = vpop.xlane.xlu1 %2899  ;;  %v2898_v26 = vpop.xlane.xlu0 %2897  ;;  %v2687_v37 = vsub.f32 %v8022_v29, %v8024_v56  ;;  %v2259_v0 = vmul.f32 %v4218_v1, %v8025_v39  ;;  %v1978_v56 = vsel %vm4947_vm6, %v1914_v60, -1e+30  ;;  %v8027_v29 = vld [vmem:[#allocation136_spill] sm:$0xff]  ;;  %v8031_v63 = vld [vmem:[#allocation138_spill] sm:$0xff] }
 0x371   : > { %4237 = vrcp.f32 %v2900_v44  ;;  %v4220_v21 = vpop.eup %4219  ;;  %v8033_v39 = vld [vmem:[#allocation8_spill] sm:$0xff] }
 0x372   : > { %4239 = vrcp.f32 %v2898_v26 }
 0x373   : > { %v4222_v17 = vpop.eup %4221  ;;  %4241 = vpow2.f32 %v2078_v54  ;;  %2971 = vadd.xlane.f32.xlu1 %v6728_v40  ;;  %2969 = vadd.xlane.f32.xlu0 %v6734_v55  ;;  %v2257_v40 = vmul.f32 %v4220_v21, %v8027_v29  ;;  %v2090_v29 = vmul.f32 1.442695, %v1979_v30  ;;  %v2751_v55 = vsel %vm4940_vm5, %v2687_v37, -1e+30 }
 0x374   : > { %v4224_v24 = vpop.eup %4223  ;;  %4243 = vpow2.f32 %v2076_v59  ;;  %v3032_v46 = vmul.f32 %v4222_v17, %v8026_v50  ;;  %v2139_v54 = vpop.xlane.xlu1 %2138  ;;  %v3221_v50 = vmax.f32 %v8033_v39, 0.0 }
 0x375   : > { %v2137_v44 = vpop.xlane.xlu0 %2136  ;;  %v6756_v26 = vpop.eup %4225  ;;  %4245 = vpow2.f32 %v2851_v16  ;;  %v3030_v1 = vmul.f32 %v4224_v24, %v8031_v63  ;;  %v2752_v16 = vsel %vm4940_vm5, %v2688_v11, -1e+30  ;;  %v8035_v63 = vld [vmem:[#allocation90_spill] sm:$0xff] }
 0x376   : > { %v6770_v17 = vpop.eup %4227  ;;  %4247 = vpow2.f32 %v2849_v7  ;;  %v3156_v60 = vadd.f32 %v3032_v46, %v2259_v0  ;;  %v2088_v7 = vmul.f32 1.442695, %v1978_v56  ;;  %v1913_v11 = vsub.f32 %v8035_v63, %v6366_v51 }
 0x377   : > { %8032 = vst [vmem:[#allocation87_spill] sm:$0xff] %v6770_v17  ;;  %v6775_v21 = vpop.eup %4229  ;;  %v3155_v4 = vadd.f32 %v3030_v1, %v2257_v40  ;;  %4249 = vrcp.f32 %v2139_v54  ;;  %2210 = vadd.xlane.f32.xlu1 %v6756_v26  ;;  %2208 = vadd.xlane.f32.xlu0 %v6770_v17  ;;  %v2863_v37 = vmul.f32 1.442695, %v2752_v16  ;;  %v8036_v40 = vld [vmem:[#allocation89_spill] sm:$0xff]  ;;  %v2861_v1 = vmul.f32 1.442695, %v2751_v55 }
 0x378   : > { %v6781_v24 = vpop.eup %4231  ;;  %v3287_v0 = vsel %vm6765_vm7, %v3156_v60, %v3221_v50  ;;  %4251 = vrcp.f32 %v2137_v44  ;;  %v2912_v30 = vpop.xlane.xlu1 %2911  ;;  %v1912_v54 = vsub.f32 %v8036_v40, %v6368_v31  ;;  %v2686_v44 = vsub.f32 %v8035_v63, %v6384_v33  ;;  %v8037_v16 = vld [vmem:[#allocation7_spill] sm:$0xff]  ;;  %v8038_v55 = vld [vmem:[#allocation141_spill] sm:$0xff] }
 0x379   : > { %8034 = vst [vmem:[#allocation86_spill] sm:$0xff] %v6781_v24  ;;  %v2910_v46 = vpop.xlane.xlu0 %2909  ;;  %v4234_v39 = vpop.eup %4233  ;;  %3351 = vst [vmem:[%s6790_s18 + $0x18] sm:$0xff] %v3287_v0  ;;  %v3286_v56 = vsel %vm6765_vm7, %v3155_v4, %v3220_v22  ;;  %4253 = vrcp.f32 %v2912_v30  ;;  %v3218_v60 = vmax.f32 %v8037_v16, 0.0  ;;  %v2685_v31 = vsub.f32 %v8036_v40, %v6386_v20  ;;  %v8039_v63 = vld [vmem:[#allocation143_spill] sm:$0xff]  ;;  %v8041_v16 = vld [vmem:[#allocation142_spill] sm:$0xff] }
 0x37a   : > { %v4236_v51 = vpop.eup %4235  ;;  %3350 = vst [vmem:[%s6790_s18 + $0x10] sm:$0xff] %v3286_v56  ;;  %4255 = vrcp.f32 %v2910_v46  ;;  %v1977_v22 = vsel %vm4947_vm6, %v1913_v11, -1e+30  ;;  %v2255_v33 = vmul.f32 %v4234_v39, %v8038_v55  ;;  %v1976_v20 = vsel %vm4947_vm6, %v1912_v54, -1e+30  ;;  %v8042_v17 = vld [vmem:[#allocation9_spill] sm:$0xff] }
 0x37b   : > { %v4238_v50 = vpop.eup %4237  ;;  %4257 = vpow2.f32 %v2090_v29  ;;  %2983 = vadd.xlane.f32.xlu1 %v6775_v21  ;;  %2981 = vadd.xlane.f32.xlu0 %v6781_v24  ;;  %v8040_v29 = vld [vmem:[#allocation140_spill] sm:$0xff]  ;;  %v3219_v11 = vmax.f32 %v8042_v17, 0.0  ;;  %v2750_v39 = vsel %vm4940_vm5, %v2686_v44, -1e+30  ;;  %v2084_v17 = vmul.f32 1.442695, %v1976_v20 }
 0x37c   : > { %v4240_v4 = vpop.eup %4239  ;;  %4259 = vpow2.f32 %v2088_v7  ;;  %v3028_v0 = vmul.f32 %v4238_v50, %v8039_v63  ;;  %v2135_v30 = vpop.xlane.xlu1 %2134  ;;  %v2253_v40 = vmul.f32 %v4236_v51, %v8040_v29  ;;  %v2086_v63 = vmul.f32 1.442695, %v1977_v22 }
 0x37d   : > { %v2133_v46 = vpop.xlane.xlu0 %2132  ;;  %v6807_v56 = vpop.eup %4241  ;;  %4261 = vpow2.f32 %v2863_v37  ;;  %v3026_v24 = vmul.f32 %v4240_v4, %v8041_v16  ;;  %v2749_v37 = vsel %vm4940_vm5, %v2685_v31, -1e+30  ;;  %v8045_v16 = vld [vmem:[#allocation10_spill] sm:$0xff] }
 0x37e   : > { %v6813_v7 = vpop.eup %4243  ;;  %4263 = vpow2.f32 %v2861_v1  ;;  %v3154_v50 = vadd.f32 %v3028_v0, %v2255_v33  ;;  %v8043_v1 = vld [vmem:[#allocation96_spill] sm:$0xff]  ;;  %v8044_v0 = vld [vmem:[#allocation95_spill] sm:$0xff] }
 0x37f   : > { %v6818_v55 = vpop.eup %4245  ;;  %v3153_v54 = vadd.f32 %v3026_v24, %v2253_v40  ;;  %4265 = vrcp.f32 %v2135_v30  ;;  %2206 = vadd.xlane.f32.xlu1 %v6807_v56  ;;  %2204 = vadd.xlane.f32.xlu0 %v6813_v7  ;;  %v1919_v44 = vsub.f32 %v8043_v1, %v6402_v35  ;;  %v2859_v24 = vmul.f32 1.442695, %v2750_v39 }
 0x380   : > { %v6824_v51 = vpop.eup %4247  ;;  %v3285_v4 = vsel %vm6765_vm7, %v3154_v50, %v3219_v11  ;;  %4267 = vrcp.f32 %v2133_v46  ;;  %v2908_v22 = vpop.xlane.xlu1 %2907  ;;  %v1918_v30 = vsub.f32 %v8044_v0, %v6404_v14  ;;  %v2857_v40 = vmul.f32 1.442695, %v2749_v37  ;;  %v8046_v50 = vld [vmem:[#allocation144_spill] sm:$0xff]  ;;  %v8047_v37 = vld [vmem:[#allocation146_spill] sm:$0xff] }
 0x381   : > { %v2906_v33 = vpop.xlane.xlu0 %2905  ;;  %v4250_v31 = vpop.eup %4249  ;;  %3349 = vst [vmem:[%s6790_s18 + $0x8] sm:$0xff] %v3285_v4  ;;  %v3284_v29 = vsel %vm6765_vm7, %v3153_v54, %v3218_v60  ;;  %4269 = vrcp.f32 %v2908_v22  ;;  %v2692_v35 = vsub.f32 %v8043_v1, %v6420_v61  ;;  %v3224_v11 = vmax.f32 %v8045_v16, 0.0  ;;  %v8050_v16 = vld [vmem:[#allocation11_spill] sm:$0xff] }
 0x382   : > { %v4252_v20 = vpop.eup %4251  ;;  %3348 = vst [vmem:[%s6790_s18] sm:$0xff] %v3284_v29  ;;  %4271 = vrcp.f32 %v2906_v33  ;;  %v2691_v39 = vsub.f32 %v8044_v0, %v6422_v36  ;;  %v1983_v60 = vsel %vm4947_vm6, %v1919_v44, -1e+30  ;;  %v2267_v61 = vmul.f32 %v4250_v31, %v8046_v50  ;;  %v8049_v0 = vld [vmem:[#allocation93_spill] sm:$0xff] }
 0x383   : > { %v4254_v46 = vpop.eup %4253  ;;  %4273 = vpow2.f32 %v2086_v63  ;;  %2979 = vadd.xlane.f32.xlu1 %v6818_v55  ;;  %2977 = vadd.xlane.f32.xlu0 %v6824_v51  ;;  %v1982_v36 = vsel %vm4947_vm6, %v1918_v30, -1e+30  ;;  %v8048_v63 = vld [vmem:[#allocation145_spill] sm:$0xff]  ;;  %v3225_v44 = vmax.f32 %v8050_v16, 0.0  ;;  %v2756_v31 = vsel %vm4940_vm5, %v2692_v35, -1e+30 }
 0x384   : > { %v4256_v14 = vpop.eup %4255  ;;  %4275 = vpow2.f32 %v2084_v17  ;;  %v3040_v54 = vmul.f32 %v4254_v46, %v8047_v37  ;;  %v2147_v1 = vpop.xlane.xlu1 %2146  ;;  %v2265_v33 = vmul.f32 %v4252_v20, %v8048_v63  ;;  %v2098_v37 = vmul.f32 1.442695, %v1983_v60  ;;  %v8051_v35 = vld [vmem:[#allocation102_spill] sm:$0xff]  ;;  %v8053_v16 = vld [vmem:[#allocation12_spill] sm:$0xff] }
 0x385   : > { %v2145_v4 = vpop.xlane.xlu0 %2144  ;;  %v6847_v22 = vpop.eup %4257  ;;  %4277 = vpow2.f32 %v2859_v24  ;;  %v3038_v29 = vmul.f32 %v4256_v14, %v8049_v0  ;;  %v2755_v24 = vsel %vm4940_vm5, %v2691_v39, -1e+30  ;;  %v1917_v14 = vsub.f32 %v8051_v35, %v6438_v58 }
 0x386   : > { %v6853_v17 = vpop.eup %4259  ;;  %4279 = vpow2.f32 %v2857_v40  ;;  %v3160_v46 = vadd.f32 %v3040_v54, %v2267_v61  ;;  %v2096_v40 = vmul.f32 1.442695, %v1982_v36  ;;  %v2871_v63 = vmul.f32 1.442695, %v2756_v31 }
 0x387   : > { %v6858_v50 = vpop.eup %4261  ;;  %v3159_v30 = vadd.f32 %v3038_v29, %v2265_v33  ;;  %4281 = vrcp.f32 %v2147_v1  ;;  %2218 = vadd.xlane.f32.xlu1 %v6847_v22  ;;  %2216 = vadd.xlane.f32.xlu0 %v6853_v17  ;;  %v8052_v1 = vld [vmem:[#allocation101_spill] sm:$0xff]  ;;  %v2869_v29 = vmul.f32 1.442695, %v2755_v24  ;;  %v2690_v58 = vsub.f32 %v8051_v35, %v6456_v12  ;;  %v8055_v24 = vld [vmem:[#allocation23_spill] sm:$0xff] }
 0x388   : > { %v6864_v20 = vpop.eup %4263  ;;  %v3291_v60 = vsel %vm6765_vm7, %v3160_v46, %v3225_v44  ;;  %4283 = vrcp.f32 %v2145_v4  ;;  %v2920_v61 = vpop.xlane.xlu1 %2919  ;;  %v1916_v33 = vsub.f32 %v8052_v1, %v6440_v43  ;;  %v3222_v44 = vmax.f32 %v8053_v16, 0.0  ;;  %v8054_v46 = vld [vmem:[#allocation18_spill] sm:$0xff]  ;;  %v8058_v16 = vld [vmem:[#allocation13_spill] sm:$0xff] }
 0x389   : > { %v2918_v54 = vpop.xlane.xlu0 %2917  ;;  %v4266_v39 = vpop.eup %4265  ;;  %3355 = vst [vmem:[%s6790_s18 + $0x38] sm:$0xff] %v3291_v60  ;;  %v3290_v0 = vsel %vm6765_vm7, %v3159_v30, %v3224_v11  ;;  %4285 = vrcp.f32 %v2920_v61  ;;  %v2689_v31 = vsub.f32 %v8052_v1, %v6458_v2  ;;  %v1981_v11 = vsel %vm4947_vm6, %v1917_v14, -1e+30  ;;  %v8057_v1 = vld [vmem:[#allocation98_spill] sm:$0xff] }
 0x38a   : > { %v4268_v36 = vpop.eup %4267  ;;  %3354 = vst [vmem:[%s6790_s18 + $0x30] sm:$0xff] %v3290_v0  ;;  %4287 = vrcp.f32 %v2918_v54  ;;  %v2263_v12 = vmul.f32 %v4266_v39, %v8054_v46  ;;  %v1980_v2 = vsel %vm4947_vm6, %v1916_v33, -1e+30  ;;  %v3223_v14 = vmax.f32 %v8058_v16, 0.0  ;;  %v8061_v16 = vld [vmem:[#allocation14_spill] sm:$0xff] }
 0x38b   : > { %v4270_v4 = vpop.eup %4269  ;;  %4289 = vpow2.f32 %v2098_v37  ;;  %2991 = vadd.xlane.f32.xlu1 %v6858_v50  ;;  %2989 = vadd.xlane.f32.xlu0 %v6864_v20  ;;  %v8056_v37 = vld [vmem:[#allocation147_spill] sm:$0xff]  ;;  %v2754_v39 = vsel %vm4940_vm5, %v2690_v58, -1e+30  ;;  %v8059_v58 = vld [vmem:[#allocation109_spill] sm:$0xff] }
 0x38c   : > { %v4272_v43 = vpop.eup %4271  ;;  %4291 = vpow2.f32 %v2096_v40  ;;  %v3036_v30 = vmul.f32 %v4270_v4, %v8055_v24  ;;  %v2143_v35 = vpop.xlane.xlu1 %2142  ;;  %v2261_v54 = vmul.f32 %v4268_v36, %v8056_v37  ;;  %v2094_v24 = vmul.f32 1.442695, %v1981_v11 }
 0x38d   : > { %v2141_v60 = vpop.xlane.xlu0 %2140  ;;  %v6887_v61 = vpop.eup %4273  ;;  %4293 = vpow2.f32 %v2871_v63  ;;  %v3034_v0 = vmul.f32 %v4272_v43, %v8057_v1  ;;  %v2753_v63 = vsel %vm4940_vm5, %v2689_v31, -1e+30  ;;  %v1923_v43 = vsub.f32 %v8059_v58, %v6474_v62 }
 0x38e   : > { %v6893_v40 = vpop.eup %4275  ;;  %4295 = vpow2.f32 %v2869_v29  ;;  %v3158_v4 = vadd.f32 %v3036_v30, %v2263_v12  ;;  %v2092_v29 = vmul.f32 1.442695, %v1980_v2  ;;  %v2867_v37 = vmul.f32 1.442695, %v2754_v39 }
 0x38f   : > { %v6898_v46 = vpop.eup %4277  ;;  %v3157_v33 = vadd.f32 %v3034_v0, %v2261_v54  ;;  %4297 = vrcp.f32 %v2143_v35  ;;  %2214 = vadd.xlane.f32.xlu1 %v6887_v61  ;;  %2212 = vadd.xlane.f32.xlu0 %v6893_v40  ;;  %v8060_v35 = vld [vmem:[#allocation108_spill] sm:$0xff]  ;;  %v2865_v0 = vmul.f32 1.442695, %v2753_v63  ;;  %v2696_v62 = vsub.f32 %v8059_v58, %v6492_v18 }
 0x390   : > { %v6904_v36 = vpop.eup %4279  ;;  %v3289_v11 = vsel %vm6765_vm7, %v3158_v4, %v3223_v14  ;;  %4299 = vrcp.f32 %v2141_v60  ;;  %v2916_v12 = vpop.xlane.xlu1 %2915  ;;  %v1922_v54 = vsub.f32 %v8060_v35, %v6476_v34  ;;  %v3228_v14 = vmax.f32 %v8061_v16, 0.0  ;;  %v8062_v4 = vld [vmem:[#allocation22_spill] sm:$0xff]  ;;  %v8063_v63 = vld [vmem:[#allocation100_spill] sm:$0xff]  ;;  %v8066_v16 = vld [vmem:[#allocation15_spill] sm:$0xff] }
 0x391   : > { %v2914_v30 = vpop.xlane.xlu0 %2913  ;;  %v4282_v31 = vpop.eup %4281  ;;  %3353 = vst [vmem:[%s6790_s18 + $0x28] sm:$0xff] %v3289_v11  ;;  %v3288_v1 = vsel %vm6765_vm7, %v3157_v33, %v3222_v44  ;;  %4301 = vrcp.f32 %v2916_v12  ;;  %v2695_v39 = vsub.f32 %v8060_v35, %v6494_v32  ;;  %v1987_v44 = vsel %vm4947_vm6, %v1923_v43, -1e+30  ;;  %v8065_v35 = vld [vmem:[#allocation26_spill] sm:$0xff] }
 0x392   : > { %v4284_v2 = vpop.eup %4283  ;;  %3352 = vst [vmem:[%s6790_s18 + $0x20] sm:$0xff] %v3288_v1  ;;  %4303 = vrcp.f32 %v2914_v30  ;;  %v2275_v18 = vmul.f32 %v4282_v31, %v8062_v4  ;;  %v1986_v32 = vsel %vm4947_vm6, %v1922_v54, -1e+30  ;;  %v3229_v43 = vmax.f32 %v8066_v16, 0.0  ;;  %v8069_v16 = vld [vmem:[#allocation16_spill] sm:$0xff] }
 0x393   : > { %v4286_v60 = vpop.eup %4285  ;;  %4305 = vpow2.f32 %v2094_v24  ;;  %2987 = vadd.xlane.f32.xlu1 %v6898_v46  ;;  %2985 = vadd.xlane.f32.xlu0 %v6904_v36  ;;  %v8064_v24 = vld [vmem:[#allocation99_spill] sm:$0xff]  ;;  %v2760_v31 = vsel %vm4940_vm5, %v2696_v62, -1e+30  ;;  %v8067_v62 = vld [vmem:[#allocation114_spill] sm:$0xff] }
 0x394   : > { %v4288_v34 = vpop.eup %4287  ;;  %4307 = vpow2.f32 %v2092_v29  ;;  %v3048_v33 = vmul.f32 %v4286_v60, %v8063_v63  ;;  %v2155_v58 = vpop.xlane.xlu1 %2154  ;;  %v2273_v30 = vmul.f32 %v4284_v2, %v8064_v24  ;;  %v2106_v63 = vmul.f32 1.442695, %v1987_v44 }
 0x395   : > { %v2153_v11 = vpop.xlane.xlu0 %2152  ;;  %v6927_v12 = vpop.eup %4289  ;;  %4309 = vpow2.f32 %v2867_v37  ;;  %v3046_v1 = vmul.f32 %v4288_v34, %v8065_v35  ;;  %v2759_v37 = vsel %vm4940_vm5, %v2695_v39, -1e+30  ;;  %v1921_v34 = vsub.f32 %v8067_v62, %v6510_v19 }
 0x396   : > { %v6933_v29 = vpop.eup %4291  ;;  %4311 = vpow2.f32 %v2865_v0  ;;  %v3164_v60 = vadd.f32 %v3048_v33, %v2275_v18  ;;  %v2104_v0 = vmul.f32 1.442695, %v1986_v32  ;;  %v2879_v24 = vmul.f32 1.442695, %v2760_v31 }
 0x397   : > { %v6938_v4 = vpop.eup %4293  ;;  %v3163_v54 = vadd.f32 %v3046_v1, %v2273_v30  ;;  %4313 = vrcp.f32 %v2155_v58  ;;  %2226 = vadd.xlane.f32.xlu1 %v6927_v12  ;;  %2224 = vadd.xlane.f32.xlu0 %v6933_v29  ;;  %v8068_v58 = vld [vmem:[#allocation113_spill] sm:$0xff]  ;;  %v2877_v1 = vmul.f32 1.442695, %v2759_v37  ;;  %v2694_v19 = vsub.f32 %v8067_v62, %v6528_v42  ;;  %v8071_v37 = vld [vmem:[#allocation106_spill] sm:$0xff] }
 0x398   : > { %v6944_v2 = vpop.eup %4295  ;;  %v3295_v44 = vsel %vm6765_vm7, %v3164_v60, %v3229_v43  ;;  %4315 = vrcp.f32 %v2153_v11  ;;  %v2928_v18 = vpop.xlane.xlu1 %2927  ;;  %v1920_v30 = vsub.f32 %v8068_v58, %v6512_v10  ;;  %v3226_v43 = vmax.f32 %v8069_v16, 0.0  ;;  %v8070_v60 = vld [vmem:[#allocation105_spill] sm:$0xff] }
 0x399   : > { %v2926_v33 = vpop.xlane.xlu0 %2925  ;;  %v4298_v39 = vpop.eup %4297  ;;  %3359 = vst [vmem:[%s6790_s18 + $0x58] sm:$0xff] %v3295_v44  ;;  %v3294_v35 = vsel %vm6765_vm7, %v3163_v54, %v3228_v14  ;;  %4317 = vrcp.f32 %v2928_v18  ;;  %v2693_v31 = vsub.f32 %v8068_v58, %v6530_v57  ;;  %v1985_v14 = vsel %vm4947_vm6, %v1921_v34, -1e+30  ;;  %v8073_v58 = vld [vmem:[#allocation31_spill] sm:$0xff]  ;;  %v8074_v16 = vld [vmem:[#allocation17_spill] sm:$0xff] }
 0x39a   : > { %v4300_v32 = vpop.eup %4299  ;;  %3358 = vst [vmem:[%s6790_s18 + $0x50] sm:$0xff] %v3294_v35  ;;  %4319 = vrcp.f32 %v2926_v33  ;;  %v2271_v42 = vmul.f32 %v4298_v39, %v8070_v60  ;;  %v1984_v57 = vsel %vm4947_vm6, %v1920_v30, -1e+30  ;;  %v3227_v34 = vmax.f32 %v8074_v16, 0.0  ;;  %v8077_v16 = vld [vmem:[#allocation19_spill] sm:$0xff] }
 0x39b   : > { %v4302_v11 = vpop.eup %4301  ;;  %4321 = vpow2.f32 %v2106_v63  ;;  %2999 = vadd.xlane.f32.xlu1 %v6938_v4  ;;  %2997 = vadd.xlane.f32.xlu0 %v6944_v2  ;;  %v8072_v63 = vld [vmem:[#allocation25_spill] sm:$0xff]  ;;  %v2758_v39 = vsel %vm4940_vm5, %v2694_v19, -1e+30 }
 0x39c   : > { %v4304_v10 = vpop.eup %4303  ;;  %4323 = vpow2.f32 %v2104_v0  ;;  %v3044_v54 = vmul.f32 %v4302_v11, %v8071_v37  ;;  %v2151_v62 = vpop.xlane.xlu1 %2150  ;;  %v2269_v33 = vmul.f32 %v4300_v32, %v8072_v63  ;;  %v2102_v37 = vmul.f32 1.442695, %v1985_v14  ;;  %v8075_v19 = vld [vmem:[#allocation121_spill] sm:$0xff] }
 0x39d   : > { %v2149_v44 = vpop.xlane.xlu0 %2148  ;;  %v6967_v18 = vpop.eup %4305  ;;  %4325 = vpow2.f32 %v2879_v24  ;;  %v3042_v35 = vmul.f32 %v4304_v10, %v8073_v58  ;;  %v2757_v24 = vsel %vm4940_vm5, %v2693_v31, -1e+30  ;;  %v1927_v10 = vsub.f32 %v8075_v19, %v6546_v6 }
 0x39e   : > { %v6973_v0 = vpop.eup %4307  ;;  %4327 = vpow2.f32 %v2877_v1  ;;  %v3162_v11 = vadd.f32 %v3044_v54, %v2271_v42  ;;  %v2100_v1 = vmul.f32 1.442695, %v1984_v57  ;;  %v2875_v63 = vmul.f32 1.442695, %v2758_v39 }
 0x39f   : > { %v6978_v60 = vpop.eup %4309  ;;  %v3161_v30 = vadd.f32 %v3042_v35, %v2269_v33  ;;  %4329 = vrcp.f32 %v2151_v62  ;;  %2222 = vadd.xlane.f32.xlu1 %v6967_v18  ;;  %2220 = vadd.xlane.f32.xlu0 %v6973_v0  ;;  %v8076_v62 = vld [vmem:[#allocation120_spill] sm:$0xff]  ;;  %v2873_v35 = vmul.f32 1.442695, %v2757_v24  ;;  %v2700_v6 = vsub.f32 %v8075_v19, %v6564_v45 }
 0x3a0   : > { %v6984_v32 = vpop.eup %4311  ;;  %v3293_v14 = vsel %vm6765_vm7, %v3162_v11, %v3227_v34  ;;  %4331 = vrcp.f32 %v2149_v44  ;;  %v2924_v42 = vpop.xlane.xlu1 %2923  ;;  %v1926_v33 = vsub.f32 %v8076_v62, %v6548_v53  ;;  %v3232_v34 = vmax.f32 %v8077_v16, 0.0  ;;  %v8078_v11 = vld [vmem:[#allocation111_spill] sm:$0xff]  ;;  %v8079_v24 = vld [vmem:[#allocation112_spill] sm:$0xff] }
 0x3a1   : > { %v2922_v54 = vpop.xlane.xlu0 %2921  ;;  %v4314_v31 = vpop.eup %4313  ;;  %3357 = vst [vmem:[%s6790_s18 + $0x48] sm:$0xff] %v3293_v14  ;;  %v3292_v58 = vsel %vm6765_vm7, %v3161_v30, %v3226_v43  ;;  %4333 = vrcp.f32 %v2924_v42  ;;  %v2699_v39 = vsub.f32 %v8076_v62, %v6566_v48  ;;  %v1991_v43 = vsel %vm4947_vm6, %v1927_v10, -1e+30  ;;  %v8081_v62 = vld [vmem:[#allocation34_spill] sm:$0xff]  ;;  %v8082_v16 = vld [vmem:[#allocation20_spill] sm:$0xff] }
 0x3a2   : > { %v4316_v57 = vpop.eup %4315  ;;  %3356 = vst [vmem:[%s6790_s18 + $0x40] sm:$0xff] %v3292_v58  ;;  %4335 = vrcp.f32 %v2922_v54  ;;  %v2283_v45 = vmul.f32 %v4314_v31, %v8078_v11  ;;  %v1990_v48 = vsel %vm4947_vm6, %v1926_v33, -1e+30  ;;  %v3233_v10 = vmax.f32 %v8082_v16, 0.0  ;;  %v8085_v16 = vld [vmem:[#allocation21_spill] sm:$0xff] }
 0x3a3   : > { %v4318_v44 = vpop.eup %4317  ;;  %4337 = vpow2.f32 %v2102_v37  ;;  %2995 = vadd.xlane.f32.xlu1 %v6978_v60  ;;  %2993 = vadd.xlane.f32.xlu0 %v6984_v32  ;;  %v8080_v37 = vld [vmem:[#allocation30_spill] sm:$0xff]  ;;  %v2764_v31 = vsel %vm4940_vm5, %v2700_v6, -1e+30 }
 0x3a4   : > { %v4320_v53 = vpop.eup %4319  ;;  %4339 = vpow2.f32 %v2100_v1  ;;  %v3056_v30 = vmul.f32 %v4318_v44, %v8079_v24  ;;  %v2163_v19 = vpop.xlane.xlu1 %2162  ;;  %v2281_v54 = vmul.f32 %v4316_v57, %v8080_v37  ;;  %v2114_v24 = vmul.f32 1.442695, %v1991_v43  ;;  %v8083_v6 = vld [vmem:[#allocation126_spill] sm:$0xff] }
 0x3a5   : > { %v2161_v14 = vpop.xlane.xlu0 %2160  ;;  %v7007_v42 = vpop.eup %4321  ;;  %4341 = vpow2.f32 %v2875_v63  ;;  %v3054_v58 = vmul.f32 %v4320_v53, %v8081_v62  ;;  %v2763_v63 = vsel %vm4940_vm5, %v2699_v39, -1e+30  ;;  %v1925_v53 = vsub.f32 %v8083_v6, %v6582_v49 }
 0x3a6   : > { %v7013_v1 = vpop.eup %4323  ;;  %4343 = vpow2.f32 %v2873_v35  ;;  %v3168_v44 = vadd.f32 %v3056_v30, %v2283_v45  ;;  %v2112_v35 = vmul.f32 1.442695, %v1990_v48  ;;  %v2887_v37 = vmul.f32 1.442695, %v2764_v31 }
 0x3a7   : > { %v7018_v11 = vpop.eup %4325  ;;  %v3167_v33 = vadd.f32 %v3054_v58, %v2281_v54  ;;  %4345 = vrcp.f32 %v2163_v19  ;;  %2234 = vadd.xlane.f32.xlu1 %v7007_v42  ;;  %2232 = vadd.xlane.f32.xlu0 %v7013_v1  ;;  %v8084_v19 = vld [vmem:[#allocation125_spill] sm:$0xff]  ;;  %v2885_v58 = vmul.f32 1.442695, %v2763_v63  ;;  %v2698_v49 = vsub.f32 %v8083_v6, %v6600_v38  ;;  %v8087_v63 = vld [vmem:[#allocation118_spill] sm:$0xff] }
 0x3a8   : > { %v7024_v57 = vpop.eup %4327  ;;  %v3299_v43 = vsel %vm6765_vm7, %v3168_v44, %v3233_v10  ;;  %4347 = vrcp.f32 %v2161_v14  ;;  %v2936_v45 = vpop.xlane.xlu1 %2935  ;;  %v1924_v54 = vsub.f32 %v8084_v19, %v6584_v9  ;;  %v3230_v10 = vmax.f32 %v8085_v16, 0.0  ;;  %v8086_v44 = vld [vmem:[#allocation117_spill] sm:$0xff]  ;;  %v8092_v16 = vld [vmem:[#allocation24_spill] sm:$0xff] }
 0x3a9   : > { %v2934_v30 = vpop.xlane.xlu0 %2933  ;;  %v4330_v39 = vpop.eup %4329  ;;  %3363 = vst [vmem:[%s6790_s18 + $0x78] sm:$0xff] %v3299_v43  ;;  %v3298_v62 = vsel %vm6765_vm7, %v3167_v33, %v3232_v34  ;;  %4349 = vrcp.f32 %v2936_v45  ;;  %v2697_v31 = vsub.f32 %v8084_v19, %v6602_v5  ;;  %v1989_v34 = vsel %vm4947_vm6, %v1925_v53, -1e+30  ;;  %v8090_v19 = vld [vmem:[#allocation39_spill] sm:$0xff] }
 0x3aa   : > { %v4332_v48 = vpop.eup %4331  ;;  %3362 = vst [vmem:[%s6790_s18 + $0x70] sm:$0xff] %v3298_v62  ;;  %4351 = vrcp.f32 %v2934_v30  ;;  %v2279_v38 = vmul.f32 %v4330_v39, %v8086_v44  ;;  %v1988_v5 = vsel %vm4947_vm6, %v1924_v54, -1e+30  ;;  %v3231_v53 = vmax.f32 %v8092_v16, 0.0 }
 0x3ab   : > { %v4334_v14 = vpop.eup %4333  ;;  %4353 = vpow2.f32 %v2114_v24  ;;  %3007 = vadd.xlane.f32.xlu1 %v7018_v11  ;;  %3005 = vadd.xlane.f32.xlu0 %v7024_v57  ;;  %v8089_v24 = vld [vmem:[#allocation33_spill] sm:$0xff]  ;;  %v2762_v39 = vsel %vm4940_vm5, %v2698_v49, -1e+30  ;;  %v8095_v49 = vld [vmem:[#allocation132_spill] sm:$0xff] }
 0x3ac   : > { %v4336_v9 = vpop.eup %4335  ;;  %4355 = vpow2.f32 %v2112_v35  ;;  %v3052_v33 = vmul.f32 %v4334_v14, %v8087_v63  ;;  %v2159_v6 = vpop.xlane.xlu1 %2158  ;;  %v2277_v30 = vmul.f32 %v4332_v48, %v8089_v24  ;;  %v2110_v63 = vmul.f32 1.442695, %v1989_v34 }
 0x3ad   : > { %v2157_v43 = vpop.xlane.xlu0 %2156  ;;  %v7047_v45 = vpop.eup %4337  ;;  %4357 = vpow2.f32 %v2887_v37  ;;  %v3050_v62 = vmul.f32 %v4336_v9, %v8090_v19  ;;  %v2761_v37 = vsel %vm4940_vm5, %v2697_v31, -1e+30  ;;  %v1931_v9 = vsub.f32 %v8095_v49, %v6618_v28  ;;  %v8097_v28 = vld [vmem:[#allocation135_spill] sm:$0xff] }
 0x3ae   : > { %8088 = vst [vmem:[#allocation6_spill] sm:$0xff] %v7047_v45  ;;  %v7053_v35 = vpop.eup %4339  ;;  %4359 = vpow2.f32 %v2885_v58  ;;  %v3166_v14 = vadd.f32 %v3052_v33, %v2279_v38  ;;  %v2108_v58 = vmul.f32 1.442695, %v1988_v5  ;;  %v2883_v24 = vmul.f32 1.442695, %v2762_v39  ;;  %v8099_v39 = vld [vmem:[#allocation134_spill] sm:$0xff] }
 0x3af   : > { %8091 = vst [vmem:[#allocation124_spill] sm:$0xff] %v7053_v35  ;;  %v7058_v44 = vpop.eup %4341  ;;  %v3165_v54 = vadd.f32 %v3050_v62, %v2277_v30  ;;  %4361 = vrcp.f32 %v2159_v6  ;;  %2230 = vadd.xlane.f32.xlu1 %v7047_v45  ;;  %2228 = vadd.xlane.f32.xlu0 %v7053_v35  ;;  %v8096_v6 = vld [vmem:[#allocation131_spill] sm:$0xff]  ;;  %v2881_v62 = vmul.f32 1.442695, %v2761_v37  ;;  %v1929_v16 = vsub.f32 %v8097_v28, %v6656_v8  ;;  %v8104_v45 = vld [vmem:[#allocation28_spill] sm:$0xff] }
 0x3b0   : > { %8093 = vst [vmem:[#allocation137_spill] sm:$0xff] %v7058_v44  ;;  %v7064_v48 = vpop.eup %4343  ;;  %v3297_v34 = vsel %vm6765_vm7, %v3166_v14, %v3231_v53  ;;  %4363 = vrcp.f32 %v2157_v43  ;;  %v2932_v38 = vpop.xlane.xlu1 %2931  ;;  %v1930_v30 = vsub.f32 %v8096_v6, %v6620_v27  ;;  %v8098_v53 = vld [vmem:[#allocation27_spill] sm:$0xff]  ;;  %v1928_v35 = vsub.f32 %v8099_v39, %v6658_v41 }
 0x3b1   : > { %8094 = vst [vmem:[#allocation139_spill] sm:$0xff] %v7064_v48  ;;  %v2930_v33 = vpop.xlane.xlu0 %2929  ;;  %v4346_v31 = vpop.eup %4345  ;;  %3361 = vst [vmem:[%s6790_s18 + $0x68] sm:$0xff] %v3297_v34  ;;  %v3296_v19 = vsel %vm6765_vm7, %v3165_v54, %v3230_v10  ;;  %4365 = vrcp.f32 %v2932_v38  ;;  %v3236_v14 = vmax.f32 %v8098_v53, 0.0  ;;  %v1995_v10 = vsel %vm4947_vm6, %v1931_v9, -1e+30  ;;  %v8100_v37 = vld [vmem:[#allocation123_spill] sm:$0xff] }
 0x3b2   : > { %v4348_v5 = vpop.eup %4347  ;;  %3360 = vst [vmem:[%s6790_s18 + $0x60] sm:$0xff] %v3296_v19  ;;  %4367 = vrcp.f32 %v2930_v33  ;;  %v2291_v8 = vmul.f32 %v4346_v31, %v8100_v37  ;;  %v8101_v54 = vld [vmem:[#allocation42_spill] sm:$0xff]  ;;  %v1994_v41 = vsel %vm4947_vm6, %v1930_v30, -1e+30  ;;  %v3237_v9 = vmax.f32 %v8104_v45, 0.0 }
 0x3b3   : > { %v4350_v43 = vpop.eup %4349  ;;  %4369 = vpow2.f32 %v2110_v63  ;;  %3003 = vadd.xlane.f32.xlu1 %v7058_v44  ;;  %3001 = vadd.xlane.f32.xlu0 %v7064_v48  ;;  %v8102_v63 = vld [vmem:[#allocation38_spill] sm:$0xff]  ;;  %v8103_v48 = vld [vmem:[#allocation129_spill] sm:$0xff]  ;;  %v1993_v31 = vsel %vm4947_vm6, %v1929_v16, -1e+30  ;;  %v2120_v45 = vmul.f32 1.442695, %v1994_v41 }
 0x3b4   : > { %v4352_v27 = vpop.eup %4351  ;;  %4371 = vpow2.f32 %v2108_v58  ;;  %v3064_v34 = vmul.f32 %v4350_v43, %v8101_v54  ;;  %v2171_v38 = vpop.xlane.xlu1 %2170  ;;  %v2289_v53 = vmul.f32 %v4348_v5, %v8102_v63  ;;  %v2122_v54 = vmul.f32 1.442695, %v1995_v10  ;;  %v8106_v41 = vld [vmem:[#allocation74_spill] sm:$0xff] }
 0x3b5   : > { %v2169_v33 = vpop.xlane.xlu0 %2168  ;;  %v7087_v19 = vpop.eup %4353  ;;  %4373 = vpow2.f32 %v2883_v24  ;;  %v3062_v44 = vmul.f32 %v4352_v27, %v8103_v48  ;;  %v1992_v24 = vsel %vm4947_vm6, %v1928_v35, -1e+30  ;;  %v2702_v5 = vsub.f32 %v8097_v28, %v6674_v52 }
 0x3b6   : > { %v7093_v58 = vpop.eup %4355  ;;  %4375 = vpow2.f32 %v2881_v62  ;;  %v3172_v43 = vadd.f32 %v3064_v34, %v2291_v8  ;;  %v2701_v27 = vsub.f32 %v8099_v39, %v6676_v47  ;;  %v2704_v52 = vsub.f32 %v8095_v49, %v6636_v13  ;;  %v8107_v13 = vld [vmem:[#allocation41_spill] sm:$0xff]  ;;  %v8108_v39 = vld [vmem:[#allocation47_spill] sm:$0xff] }
 0x3b7   : > { %v7098_v37 = vpop.eup %4357  ;;  %v3171_v30 = vadd.f32 %v3062_v44, %v2289_v53  ;;  %4377 = vrcp.f32 %v2171_v38  ;;  %2242 = vadd.xlane.f32.xlu1 %v7087_v19  ;;  %2240 = vadd.xlane.f32.xlu0 %v7093_v58  ;;  %v2118_v44 = vmul.f32 1.442695, %v1993_v31  ;;  %v2116_v28 = vmul.f32 1.442695, %v1992_v24  ;;  %v8105_v38 = vld [vmem:[#allocation29_spill] sm:$0xff] }
 0x3b8   : > { %v7104_v48 = vpop.eup %4359  ;;  %v3303_v62 = vsel %vm6765_vm7, %v3172_v43, %v3237_v9  ;;  %4379 = vrcp.f32 %v2169_v33  ;;  %v2944_v25 = vpop.xlane.xlu1 %2943  ;;  %v3234_v33 = vmax.f32 %v8105_v38, 0.0  ;;  %v2703_v63 = vsub.f32 %v8096_v6, %v8106_v41 }
 0x3b9   : > { %v2942_v16 = vpop.xlane.xlu0 %2941  ;;  %v4362_v35 = vpop.eup %4361  ;;  %3367 = vst [vmem:[%s6790_s18 + $0x98] sm:$0xff] %v3303_v62  ;;  %v3302_v10 = vsel %vm6765_vm7, %v3171_v30, %v3236_v14  ;;  %4381 = vrcp.f32 %v2944_v25  ;;  %v2766_v14 = vsel %vm4940_vm5, %v2702_v5, -1e+30  ;;  %v2765_v6 = vsel %vm4940_vm5, %v2701_v27, -1e+30  ;;  %v8110_v30 = vld [vmem:[#allocation46_spill] sm:$0xff] }
 0x3ba   : > { %v4364_v8 = vpop.eup %4363  ;;  %3366 = vst [vmem:[%s6790_s18 + $0x90] sm:$0xff] %v3302_v10  ;;  %4383 = vrcp.f32 %v2942_v16  ;;  %v2287_v49 = vmul.f32 %v4362_v35, %v8107_v13  ;;  %v8111_v25 = vld [vmem:[#allocation32_spill] sm:$0xff]  ;;  %v2768_v16 = vsel %vm4940_vm5, %v2704_v52, -1e+30  ;;  %v2891_v27 = vmul.f32 1.442695, %v2766_v14 }
 0x3bb   : > { %v4366_v34 = vpop.eup %4365  ;;  %4385 = vpow2.f32 %v2122_v54  ;;  %3015 = vadd.xlane.f32.xlu1 %v7098_v37  ;;  %3013 = vadd.xlane.f32.xlu0 %v7104_v48  ;;  %v8109_v54 = vld [vmem:[#allocation148_spill] sm:$0xff]  ;;  %v3235_v5 = vmax.f32 %v8111_v25, 0.0  ;;  %v2889_v38 = vmul.f32 1.442695, %v2765_v6  ;;  %v2895_v23 = vmul.f32 1.442695, %v2768_v16 }
 0x3bc   : > { %v4368_v47 = vpop.eup %4367  ;;  %4387 = vpow2.f32 %v2120_v45  ;;  %v3060_v53 = vmul.f32 %v4366_v34, %v8108_v39  ;;  %v2167_v9 = vpop.xlane.xlu1 %2166  ;;  %v2285_v24 = vmul.f32 %v4364_v8, %v8109_v54  ;;  %v8115_v25 = vld [vmem:[#allocation49_spill] sm:$0xff] }
 0x3bd   : > { %v2165_v31 = vpop.xlane.xlu0 %2164  ;;  %v7127_v43 = vpop.eup %4369  ;;  %4389 = vpow2.f32 %v2118_v44  ;;  %v3058_v62 = vmul.f32 %v4368_v47, %v8110_v30  ;;  %v2767_v44 = vsel %vm4940_vm5, %v2703_v63, -1e+30  ;;  %v8114_v30 = vld [vmem:[#allocation150_spill] sm:$0xff] }
 0x3be   : > { %v7133_v45 = vpop.eup %4371  ;;  %4391 = vpow2.f32 %v2116_v28  ;;  %v3170_v35 = vadd.f32 %v3060_v53, %v2287_v49  ;;  %v2893_v13 = vmul.f32 1.442695, %v2767_v44  ;;  %v8112_v53 = vld [vmem:[#allocation149_spill] sm:$0xff] }
 0x3bf   : > { %v7138_v10 = vpop.eup %4373  ;;  %v3169_v34 = vadd.f32 %v3058_v62, %v2285_v24  ;;  %4393 = vrcp.f32 %v2167_v9  ;;  %2238 = vadd.xlane.f32.xlu1 %v7127_v43  ;;  %2236 = vadd.xlane.f32.xlu0 %v7133_v45 }
 0x3c0   : > { %v7144_v8 = vpop.eup %4375  ;;  %v3301_v52 = vsel %vm6765_vm7, %v3170_v35, %v3235_v5  ;;  %4395 = vrcp.f32 %v2165_v31  ;;  %v2940_v28 = vpop.xlane.xlu1 %2939  ;;  %v8113_v31 = vld [vmem:[#allocation50_spill] sm:$0xff]  ;;  %v8117_v35 = vld [vmem:[#allocation36_spill] sm:$0xff] }
 0x3c1   : > { %v2938_v41 = vpop.xlane.xlu0 %2937  ;;  %v4378_v47 = vpop.eup %4377  ;;  %3365 = vst [vmem:[%s6790_s18 + $0x88] sm:$0xff] %v3301_v52  ;;  %v3300_v63 = vsel %vm6765_vm7, %v3169_v34, %v3234_v33  ;;  %4397 = vrcp.f32 %v2940_v28  ;;  %v3241_v44 = vmax.f32 %v8117_v35, 0.0  ;;  %v8122_v35 = vld [vmem:[#allocation54_spill] sm:$0xff] }
 0x3c2   : > { %v4380_v14 = vpop.eup %4379  ;;  %3364 = vst [vmem:[%s6790_s18 + $0x80] sm:$0xff] %v3300_v63  ;;  %4399 = vrcp.f32 %v2938_v41  ;;  %v2299_v9 = vmul.f32 %v4378_v47, %v8112_v53 }
 0x3c3   : > { %v4382_v49 = vpop.eup %4381  ;;  %4401 = vpow2.f32 %v2891_v27  ;;  %3011 = vadd.xlane.f32.xlu1 %v7138_v10  ;;  %3009 = vadd.xlane.f32.xlu0 %v7144_v8  ;;  %v2297_v62 = vmul.f32 %v4380_v14, %v8114_v30 }
 0x3c4   : > { %v4384_v39 = vpop.eup %4383  ;;  %4403 = vpow2.f32 %v2889_v38  ;;  %v3072_v6 = vmul.f32 %v4382_v49, %v8113_v31  ;;  %v2179_v54 = vpop.xlane.xlu1 %2178  ;;  %v8118_v38 = vld [vmem:[#allocation35_spill] sm:$0xff] }
 0x3c5   : > { %v2177_v24 = vpop.xlane.xlu0 %2176  ;;  %v7156_v33 = vpop.eup %4385  ;;  %4405 = vpow2.f32 %v2895_v23  ;;  %v3070_v5 = vmul.f32 %v4384_v39, %v8115_v25  ;;  %v3240_v52 = vmax.f32 %v8118_v38, 0.0  ;;  %v8121_v25 = vld [vmem:[#allocation152_spill] sm:$0xff] }
 0x3c6   : > { %v7160_v16 = vpop.eup %4387  ;;  %4407 = vpow2.f32 %v2893_v13  ;;  %v3176_v27 = vadd.f32 %v3072_v6, %v2299_v9  ;;  %v8119_v9 = vld [vmem:[#allocation151_spill] sm:$0xff]  ;;  %v8123_v38 = vld [vmem:[#allocation40_spill] sm:$0xff] }
 0x3c7   : > { %8116 = vst [vmem:[#allocation136_spill] sm:$0xff] %v7160_v16  ;;  %v7163_v34 = vpop.eup %4389  ;;  %v3175_v28 = vadd.f32 %v3070_v5, %v2297_v62  ;;  %4409 = vrcp.f32 %v2179_v54  ;;  %2250 = vadd.xlane.f32.xlu1 %v7156_v33  ;;  %2248 = vadd.xlane.f32.xlu0 %v7160_v16  ;;  %v8120_v6 = vld [vmem:[#allocation55_spill] sm:$0xff] }
 0x3c8   : > { %v7168_v41 = vpop.eup %4391  ;;  %v3307_v47 = vsel %vm6765_vm7, %v3176_v27, %v3241_v44  ;;  %4411 = vrcp.f32 %v2177_v24  ;;  %v2952_v23 = vpop.xlane.xlu1 %2951 }
 0x3c9   : > { %v2950_v63 = vpop.xlane.xlu0 %2949  ;;  %v4394_v14 = vpop.eup %4393  ;;  %3371 = vst [vmem:[%s6790_s18 + $0xb8] sm:$0xff] %v3307_v47  ;;  %v3306_v13 = vsel %vm6765_vm7, %v3175_v28, %v3240_v52  ;;  %4413 = vrcp.f32 %v2952_v23  ;;  %v3239_v52 = vmax.f32 %v8123_v38, 0.0  ;;  %v8124_v23 = vld [vmem:[#allocation37_spill] sm:$0xff] }
 0x3ca   : > { %v4396_v49 = vpop.eup %4395  ;;  %3370 = vst [vmem:[%s6790_s18 + $0xb0] sm:$0xff] %v3306_v13  ;;  %4415 = vrcp.f32 %v2950_v63  ;;  %v2295_v31 = vmul.f32 %v4394_v14, %v8119_v9  ;;  %v3238_v63 = vmax.f32 %v8124_v23, 0.0  ;;  %v8128_v23 = vld [vmem:[#allocation57_spill] sm:$0xff] }
 0x3cb   : > { %v4398_v39 = vpop.eup %4397  ;;  %2246 = vadd.xlane.f32.xlu1 %v7163_v34  ;;  %2244 = vadd.xlane.f32.xlu0 %v7168_v41  ;;  %v2293_v5 = vmul.f32 %v4396_v49, %v8121_v25  ;;  %v8125_v25 = vld [vmem:[#allocation153_spill] sm:$0xff] }
 0x3cc   : > { %v4400_v53 = vpop.eup %4399  ;;  %v3068_v54 = vmul.f32 %v4398_v39, %v8120_v6  ;;  %v2175_v24 = vpop.xlane.xlu1 %2174 }
 0x3cd   : > { %v2173_v30 = vpop.xlane.xlu0 %2172  ;;  %v7180_v62 = vpop.eup %4401  ;;  %v3066_v44 = vmul.f32 %v4400_v53, %v8122_v35  ;;  %4417 = vrcp.f32 %v2175_v24 }
 0x3ce   : > { %v7184_v27 = vpop.eup %4403  ;;  %v3174_v28 = vadd.f32 %v3068_v54, %v2295_v31  ;;  %4419 = vrcp.f32 %v2173_v30  ;;  %v8126_v30 = vld [vmem:[#allocation58_spill] sm:$0xff] }
 0x3cf   : > { %v7187_v47 = vpop.eup %4405  ;;  %v3173_v14 = vadd.f32 %v3066_v44, %v2293_v5  ;;  %3019 = vadd.xlane.f32.xlu1 %v7180_v62  ;;  %3017 = vadd.xlane.f32.xlu0 %v7184_v27 }
 0x3d0   : > { %v7192_v13 = vpop.eup %4407  ;;  %v3305_v49 = vsel %vm6765_vm7, %v3174_v28, %v3239_v52  ;;  %v2948_v39 = vpop.xlane.xlu1 %2947  ;;  %v8127_v52 = vld [vmem:[#allocation154_spill] sm:$0xff] }
 0x3d1   : > { %v2946_v53 = vpop.xlane.xlu0 %2945  ;;  %v4410_v9 = vpop.eup %4409  ;;  %3369 = vst [vmem:[%s6790_s18 + $0xa8] sm:$0xff] %v3305_v49  ;;  %v3304_v31 = vsel %vm6765_vm7, %v3173_v14, %v3238_v63  ;;  %4421 = vrcp.f32 %v2948_v39  ;;  %v8129_v14 = vld [vmem:[#allocation44_spill] sm:$0xff] }
 0x3d2   : > { %v4412_v6 = vpop.eup %4411  ;;  %3368 = vst [vmem:[%s6790_s18 + $0xa0] sm:$0xff] %v3304_v31  ;;  %4423 = vrcp.f32 %v2946_v53  ;;  %v2307_v5 = vmul.f32 %v4410_v9, %v8125_v25  ;;  %v3245_v49 = vmax.f32 %v8129_v14, 0.0  ;;  %v8130_v53 = vld [vmem:[#allocation43_spill] sm:$0xff]  ;;  %v8133_v14 = vld [vmem:[#allocation156_spill] sm:$0xff] }
 0x3d3   : > { %v4414_v54 = vpop.eup %4413  ;;  %3023 = vadd.xlane.f32.xlu1 %v7187_v47  ;;  %3021 = vadd.xlane.f32.xlu0 %v7192_v13  ;;  %v2305_v28 = vmul.f32 %v4412_v6, %v8127_v52  ;;  %v3244_v31 = vmax.f32 %v8130_v53, 0.0  ;;  %v8131_v52 = vld [vmem:[#allocation155_spill] sm:$0xff] }
 0x3d4   : > { %v4416_v24 = vpop.eup %4415  ;;  %v3080_v35 = vmul.f32 %v4414_v54, %v8126_v30  ;;  %v2187_v44 = vpop.xlane.xlu1 %2186 }
 0x3d5   : > { %v2185_v38 = vpop.xlane.xlu0 %2184  ;;  %v3078_v63 = vmul.f32 %v4416_v24, %v8128_v23  ;;  %4425 = vrcp.f32 %v2187_v44  ;;  %v8132_v44 = vld [vmem:[#allocation63_spill] sm:$0xff] }
 0x3d6   : > { %v3180_v39 = vadd.f32 %v3080_v35, %v2307_v5  ;;  %4427 = vrcp.f32 %v2185_v38 }
 0x3d7   : > { %v3179_v16 = vadd.f32 %v3078_v63, %v2305_v28  ;;  %v4418_v30 = vpop.eup %4417 }
 0x3d8   : > { %v3311_v9 = vsel %vm6765_vm7, %v3180_v39, %v3245_v49  ;;  %v2960_v25 = vpop.xlane.xlu1 %2959  ;;  %v4420_v24 = vpop.eup %4419  ;;  %v2303_v28 = vmul.f32 %v4418_v30, %v8131_v52  ;;  %v8134_v39 = vld [vmem:[#allocation62_spill] sm:$0xff] }
 0x3d9   : > { %v2958_v54 = vpop.xlane.xlu0 %2957  ;;  %3375 = vst [vmem:[%s6790_s18 + $0xd8] sm:$0xff] %v3311_v9  ;;  %v3310_v6 = vsel %vm6765_vm7, %v3179_v16, %v3244_v31  ;;  %4429 = vrcp.f32 %v2960_v25  ;;  %v2301_v49 = vmul.f32 %v4420_v24, %v8133_v14  ;;  %v8135_v9 = vld [vmem:[#allocation48_spill] sm:$0xff]  ;;  %v8136_v25 = vld [vmem:[#allocation45_spill] sm:$0xff] }
 0x3da   : > { %3374 = vst [vmem:[%s6790_s18 + $0xd0] sm:$0xff] %v3310_v6  ;;  %4431 = vrcp.f32 %v2958_v54  ;;  %v3243_v16 = vmax.f32 %v8135_v9, 0.0  ;;  %v3242_v6 = vmax.f32 %v8136_v25, 0.0  ;;  %v8137_v14 = vld [vmem:[#allocation157_spill] sm:$0xff]  ;;  %v8139_v9 = vld [vmem:[#allocation158_spill] sm:$0xff] }
 0x3db   : > { %v4422_v5 = vpop.eup %4421 }
 0x3dc   : > { %v4424_v35 = vpop.eup %4423  ;;  %v3076_v23 = vmul.f32 %v4422_v5, %v8132_v44  ;;  %v2183_v63 = vpop.xlane.xlu1 %2182 }
 0x3dd   : > { %v2181_v38 = vpop.xlane.xlu0 %2180  ;;  %v3074_v53 = vmul.f32 %v4424_v35, %v8134_v39  ;;  %4433 = vrcp.f32 %v2183_v63  ;;  %v8138_v63 = vld [vmem:[#allocation66_spill] sm:$0xff] }
 0x3de   : > { %v3178_v31 = vadd.f32 %v3076_v23, %v2303_v28  ;;  %4435 = vrcp.f32 %v2181_v38 }
 0x3df   : > { %v3177_v54 = vadd.f32 %v3074_v53, %v2301_v49  ;;  %v4426_v44 = vpop.eup %4425 }
 0x3e0   : > { %v3309_v30 = vsel %vm6765_vm7, %v3178_v31, %v3243_v16  ;;  %v2956_v52 = vpop.xlane.xlu1 %2955  ;;  %v4428_v35 = vpop.eup %4427  ;;  %v2315_v49 = vmul.f32 %v4426_v44, %v8137_v14  ;;  %v8140_v31 = vld [vmem:[#allocation65_spill] sm:$0xff] }
 0x3e1   : > { %v2954_v5 = vpop.xlane.xlu0 %2953  ;;  %3373 = vst [vmem:[%s6790_s18 + $0xc8] sm:$0xff] %v3309_v30  ;;  %v3308_v24 = vsel %vm6765_vm7, %v3177_v54, %v3242_v6  ;;  %4437 = vrcp.f32 %v2956_v52  ;;  %v2313_v16 = vmul.f32 %v4428_v35, %v8139_v9  ;;  %v8141_v30 = vld [vmem:[#allocation52_spill] sm:$0xff]  ;;  %v8142_v52 = vld [vmem:[#allocation51_spill] sm:$0xff] }
 0x3e2   : > { %3372 = vst [vmem:[%s6790_s18 + $0xc0] sm:$0xff] %v3308_v24  ;;  %4439 = vrcp.f32 %v2954_v5  ;;  %v3249_v6 = vmax.f32 %v8141_v30, 0.0  ;;  %v3248_v24 = vmax.f32 %v8142_v52, 0.0  ;;  %v8143_v9 = vld [vmem:[#allocation159_spill] sm:$0xff]  ;;  %v8145_v30 = vld [vmem:[#allocation160_spill] sm:$0xff] }
 0x3e3   : > { %v4430_v28 = vpop.eup %4429 }
 0x3e4   : > { %v4432_v23 = vpop.eup %4431  ;;  %v3088_v39 = vmul.f32 %v4430_v28, %v8138_v63  ;;  %v2195_v53 = vpop.xlane.xlu1 %2194 }
 0x3e5   : > { %v2193_v38 = vpop.xlane.xlu0 %2192  ;;  %v3086_v25 = vmul.f32 %v4432_v23, %v8140_v31  ;;  %4441 = vrcp.f32 %v2195_v53  ;;  %v8144_v53 = vld [vmem:[#allocation71_spill] sm:$0xff] }
 0x3e6   : > { %v3184_v54 = vadd.f32 %v3088_v39, %v2315_v49  ;;  %4443 = vrcp.f32 %v2193_v38 }
 0x3e7   : > { %v3183_v5 = vadd.f32 %v3086_v25, %v2313_v16  ;;  %v4434_v63 = vpop.eup %4433 }
 0x3e8   : > { %v3315_v44 = vsel %vm6765_vm7, %v3184_v54, %v3249_v6  ;;  %v2968_v14 = vpop.xlane.xlu1 %2967  ;;  %v4436_v23 = vpop.eup %4435  ;;  %v2311_v16 = vmul.f32 %v4434_v63, %v8143_v9  ;;  %v8146_v54 = vld [vmem:[#allocation70_spill] sm:$0xff] }
 0x3e9   : > { %v2966_v28 = vpop.xlane.xlu0 %2965  ;;  %3379 = vst [vmem:[%s6790_s18 + $0xf8] sm:$0xff] %v3315_v44  ;;  %v3314_v35 = vsel %vm6765_vm7, %v3183_v5, %v3248_v24  ;;  %4445 = vrcp.f32 %v2968_v14  ;;  %v2309_v6 = vmul.f32 %v4436_v23, %v8145_v30  ;;  %v8147_v44 = vld [vmem:[#allocation56_spill] sm:$0xff]  ;;  %v8148_v14 = vld [vmem:[#allocation53_spill] sm:$0xff] }
 0x3ea   : > { %3378 = vst [vmem:[%s6790_s18 + $0xf0] sm:$0xff] %v3314_v35  ;;  %4447 = vrcp.f32 %v2966_v28  ;;  %v3247_v24 = vmax.f32 %v8147_v44, 0.0  ;;  %v3246_v35 = vmax.f32 %v8148_v14, 0.0  ;;  %v8149_v30 = vld [vmem:[#allocation161_spill] sm:$0xff]  ;;  %v8152_v14 = vld [vmem:[#allocation60_spill] sm:$0xff] }
 0x3eb   : > { %v4438_v49 = vpop.eup %4437 }
 0x3ec   : > { %v4440_v39 = vpop.eup %4439  ;;  %v3084_v31 = vmul.f32 %v4438_v49, %v8144_v53  ;;  %v2191_v25 = vpop.xlane.xlu1 %2190 }
 0x3ed   : > { %v2189_v38 = vpop.xlane.xlu0 %2188  ;;  %v3082_v52 = vmul.f32 %v4440_v39, %v8146_v54  ;;  %4449 = vrcp.f32 %v2191_v25 }
 0x3ee   : > { %v3182_v5 = vadd.f32 %v3084_v31, %v2311_v16  ;;  %4451 = vrcp.f32 %v2189_v38 }
 0x3ef   : > { %v3181_v28 = vadd.f32 %v3082_v52, %v2309_v6  ;;  %v4442_v53 = vpop.eup %4441  ;;  %v8150_v52 = vld [vmem:[#allocation162_spill] sm:$0xff] }
 0x3f0   : > { %v3313_v63 = vsel %vm6765_vm7, %v3182_v5, %v3247_v24  ;;  %v2964_v9 = vpop.xlane.xlu1 %2963  ;;  %v4444_v39 = vpop.eup %4443  ;;  %v2323_v6 = vmul.f32 %v4442_v53, %v8149_v30  ;;  %v8151_v24 = vld [vmem:[#allocation73_spill] sm:$0xff] }
 0x3f1   : > { %v2962_v49 = vpop.xlane.xlu0 %2961  ;;  %3377 = vst [vmem:[%s6790_s18 + $0xe8] sm:$0xff] %v3313_v63  ;;  %v3312_v23 = vsel %vm6765_vm7, %v3181_v28, %v3246_v35  ;;  %4453 = vrcp.f32 %v2964_v9  ;;  %v2321_v44 = vmul.f32 %v4444_v39, %v8150_v52  ;;  %v3253_v35 = vmax.f32 %v8152_v14, 0.0  ;;  %v8153_v63 = vld [vmem:[#allocation59_spill] sm:$0xff] }
 0x3f2   : > { %3376 = vst [vmem:[%s6790_s18 + $0xe0] sm:$0xff] %v3312_v23  ;;  %4455 = vrcp.f32 %v2962_v49  ;;  %v3252_v9 = vmax.f32 %v8153_v63, 0.0  ;;  %v8156_v14 = vld [vmem:[#allocation79_spill] sm:$0xff] }
 0x3f3   : > { %v4446_v16 = vpop.eup %4445 }
 0x3f4   : > { %v4448_v31 = vpop.eup %4447  ;;  %v3096_v25 = vmul.f32 %v4446_v16, %v6640_v15  ;;  %v2203_v54 = vpop.xlane.xlu1 %2202 }
 0x3f5   : > { %v2201_v38 = vpop.xlane.xlu0 %2200  ;;  %v3094_v5 = vmul.f32 %v4448_v31, %v8151_v24  ;;  %4457 = vrcp.f32 %v2203_v54  ;;  %v8155_v24 = vld [vmem:[#allocation164_spill] sm:$0xff] }
 0x3f6   : > { %v3188_v28 = vadd.f32 %v3096_v25, %v2323_v6  ;;  %4459 = vrcp.f32 %v2201_v38  ;;  %v8154_v25 = vld [vmem:[#allocation163_spill] sm:$0xff] }
 0x3f7   : > { %v3187_v49 = vadd.f32 %v3094_v5, %v2321_v44  ;;  %v4450_v16 = vpop.eup %4449 }
 0x3f8   : > { %v3319_v53 = vsel %vm6765_vm7, %v3188_v28, %v3253_v35  ;;  %v2976_v23 = vpop.xlane.xlu1 %2975  ;;  %v4452_v31 = vpop.eup %4451  ;;  %v2319_v52 = vmul.f32 %v4450_v16, %v8154_v25  ;;  %v8157_v28 = vld [vmem:[#allocation64_spill] sm:$0xff] }
 0x3f9   : > { %v2974_v15 = vpop.xlane.xlu0 %2973  ;;  %3383 = vst [vmem:[%s6790_s18 + $0x118] sm:$0xff] %v3319_v53  ;;  %v3318_v39 = vsel %vm6765_vm7, %v3187_v49, %v3252_v9  ;;  %4461 = vrcp.f32 %v2976_v23  ;;  %v2317_v5 = vmul.f32 %v4452_v31, %v8155_v24  ;;  %v3251_v63 = vmax.f32 %v8157_v28, 0.0  ;;  %v8158_v49 = vld [vmem:[#allocation61_spill] sm:$0xff] }
 0x3fa   : > { %3382 = vst [vmem:[%s6790_s18 + $0x110] sm:$0xff] %v3318_v39  ;;  %4463 = vrcp.f32 %v2974_v15  ;;  %v3250_v53 = vmax.f32 %v8158_v49, 0.0  ;;  %v8162_v28 = vld [vmem:[#allocation81_spill] sm:$0xff] }
 0x3fb   : > { %v4454_v30 = vpop.eup %4453 }
 0x3fc   : > { %v4456_v6 = vpop.eup %4455  ;;  %v3092_v54 = vmul.f32 %v4454_v30, %v6678_v3  ;;  %v2199_v44 = vpop.xlane.xlu1 %2198 }
 0x3fd   : > { %v2197_v38 = vpop.xlane.xlu0 %2196  ;;  %v3090_v35 = vmul.f32 %v4456_v6, %v8156_v14  ;;  %4465 = vrcp.f32 %v2199_v44  ;;  %v8160_v44 = vld [vmem:[#allocation82_spill] sm:$0xff]  ;;  %v8161_v14 = vld [vmem:[#allocation165_spill] sm:$0xff] }
 0x3fe   : > { %v3186_v9 = vadd.f32 %v3092_v54, %v2319_v52  ;;  %4467 = vrcp.f32 %v2197_v38  ;;  %v8159_v52 = vld [vmem:[#allocation78_spill] sm:$0xff] }
 0x3ff   : > { %v3185_v23 = vadd.f32 %v3090_v35, %v2317_v5  ;;  %v4458_v39 = vpop.eup %4457 }
 0x400   : > { %v3317_v15 = vsel %vm6765_vm7, %v3186_v9, %v3251_v63  ;;  %v2972_v16 = vpop.xlane.xlu1 %2971  ;;  %v4460_v30 = vpop.eup %4459  ;;  %v2331_v54 = vmul.f32 %v4458_v39, %v8159_v52  ;;  %v8163_v9 = vld [vmem:[#allocation68_spill] sm:$0xff] }
 0x401   : > { %v2970_v3 = vpop.xlane.xlu0 %2969  ;;  %3381 = vst [vmem:[%s6790_s18 + $0x108] sm:$0xff] %v3317_v15  ;;  %v3316_v31 = vsel %vm6765_vm7, %v3185_v23, %v3250_v53  ;;  %4469 = vrcp.f32 %v2972_v16  ;;  %v2329_v35 = vmul.f32 %v4460_v30, %v8161_v14  ;;  %v3257_v49 = vmax.f32 %v8163_v9, 0.0  ;;  %v8164_v23 = vld [vmem:[#allocation67_spill] sm:$0xff]  ;;  %v8168_v9 = vld [vmem:[#allocation169_spill] sm:$0xff] }
 0x402   : > { %3380 = vst [vmem:[%s6790_s18 + $0x100] sm:$0xff] %v3316_v31  ;;  %4471 = vrcp.f32 %v2970_v3  ;;  %v3256_v15 = vmax.f32 %v8164_v23, 0.0 }
 0x403   : > { %v4462_v6 = vpop.eup %4461 }
 0x404   : > { %v4464_v25 = vpop.eup %4463  ;;  %v3104_v24 = vmul.f32 %v4462_v6, %v8160_v44  ;;  %v2211_v5 = vpop.xlane.xlu1 %2210  ;;  %v8165_v44 = vld [vmem:[#allocation166_spill] sm:$0xff] }
 0x405   : > { %v2209_v38 = vpop.xlane.xlu0 %2208  ;;  %v3102_v63 = vmul.f32 %v4464_v25, %v8162_v28  ;;  %4473 = vrcp.f32 %v2211_v5  ;;  %v8166_v5 = vld [vmem:[#allocation168_spill] sm:$0xff]  ;;  %v8167_v28 = vld [vmem:[#allocation167_spill] sm:$0xff] }
 0x406   : > { %v3192_v53 = vadd.f32 %v3104_v24, %v2331_v54  ;;  %4475 = vrcp.f32 %v2209_v38 }
 0x407   : > { %v3191_v16 = vadd.f32 %v3102_v63, %v2329_v35  ;;  %v4466_v6 = vpop.eup %4465 }
 0x408   : > { %v3323_v3 = vsel %vm6765_vm7, %v3192_v53, %v3257_v49  ;;  %v2984_v39 = vpop.xlane.xlu1 %2983  ;;  %v4468_v25 = vpop.eup %4467  ;;  %v2327_v24 = vmul.f32 %v4466_v6, %v8165_v44  ;;  %v8169_v53 = vld [vmem:[#allocation72_spill] sm:$0xff] }
 0x409   : > { %v2982_v31 = vpop.xlane.xlu0 %2981  ;;  %3387 = vst [vmem:[%s6790_s18 + $0x138] sm:$0xff] %v3323_v3  ;;  %v3322_v30 = vsel %vm6765_vm7, %v3191_v16, %v3256_v15  ;;  %4477 = vrcp.f32 %v2984_v39  ;;  %v2325_v63 = vmul.f32 %v4468_v25, %v8167_v28  ;;  %v3255_v23 = vmax.f32 %v8169_v53, 0.0  ;;  %v8170_v16 = vld [vmem:[#allocation69_spill] sm:$0xff]  ;;  %v8171_v28 = vld [vmem:[#allocation87_spill] sm:$0xff]  ;;  %v8173_v53 = vld [vmem:[#allocation76_spill] sm:$0xff] }
 0x40a   : > { %3386 = vst [vmem:[%s6790_s18 + $0x130] sm:$0xff] %v3322_v30  ;;  %4479 = vrcp.f32 %v2982_v31  ;;  %v3254_v3 = vmax.f32 %v8170_v16, 0.0  ;;  %v8174_v16 = vld [vmem:[#allocation75_spill] sm:$0xff] }
 0x40b   : > { %v4470_v52 = vpop.eup %4469 }
 0x40c   : > { %v4472_v54 = vpop.eup %4471  ;;  %v3100_v14 = vmul.f32 %v4470_v52, %v8166_v5  ;;  %v2207_v35 = vpop.xlane.xlu1 %2206 }
 0x40d   : > { %v2205_v38 = vpop.xlane.xlu0 %2204  ;;  %v3098_v49 = vmul.f32 %v4472_v54, %v8168_v9  ;;  %4481 = vrcp.f32 %v2207_v35  ;;  %v8172_v9 = vld [vmem:[#allocation86_spill] sm:$0xff] }
 0x40e   : > { %v3190_v15 = vadd.f32 %v3100_v14, %v2327_v24  ;;  %4483 = vrcp.f32 %v2205_v38 }
 0x40f   : > { %v3189_v39 = vadd.f32 %v3098_v49, %v2325_v63  ;;  %v4474_v52 = vpop.eup %4473 }
 0x410   : > { %v3321_v31 = vsel %vm6765_vm7, %v3190_v15, %v3255_v23  ;;  %v2980_v6 = vpop.xlane.xlu1 %2979  ;;  %v4476_v54 = vpop.eup %4475  ;;  %v2339_v5 = vmul.f32 %v4474_v52, %v6756_v26  ;;  %v3261_v23 = vmax.f32 %v8173_v53, 0.0 }
 0x411   : > { %v2978_v30 = vpop.xlane.xlu0 %2977  ;;  %3385 = vst [vmem:[%s6790_s18 + $0x128] sm:$0xff] %v3321_v31  ;;  %v3320_v25 = vsel %vm6765_vm7, %v3189_v39, %v3254_v3  ;;  %4485 = vrcp.f32 %v2980_v6  ;;  %v2337_v63 = vmul.f32 %v4476_v54, %v8171_v28  ;;  %v3260_v3 = vmax.f32 %v8174_v16, 0.0  ;;  %v8175_v28 = vld [vmem:[#allocation80_spill] sm:$0xff] }
 0x412   : > { %3384 = vst [vmem:[%s6790_s18 + $0x120] sm:$0xff] %v3320_v25  ;;  %4487 = vrcp.f32 %v2978_v30 }
 0x413   : > { %v4478_v44 = vpop.eup %4477 }
 0x414   : > { %v4480_v24 = vpop.eup %4479  ;;  %v3112_v14 = vmul.f32 %v4478_v44, %v6775_v21  ;;  %v2219_v35 = vpop.xlane.xlu1 %2218 }
 0x415   : > { %v2217_v38 = vpop.xlane.xlu0 %2216  ;;  %v3110_v49 = vmul.f32 %v4480_v24, %v8172_v9  ;;  %4489 = vrcp.f32 %v2219_v35 }
 0x416   : > { %v3196_v15 = vadd.f32 %v3112_v14, %v2339_v5  ;;  %4491 = vrcp.f32 %v2217_v38 }
 0x417   : > { %v3195_v39 = vadd.f32 %v3110_v49, %v2337_v63  ;;  %v4482_v6 = vpop.eup %4481  ;;  %v3259_v63 = vmax.f32 %v8175_v28, 0.0  ;;  %v8176_v49 = vld [vmem:[#allocation77_spill] sm:$0xff] }
 0x418   : > { %v3327_v26 = vsel %vm6765_vm7, %v3196_v15, %v3261_v23  ;;  %v2992_v31 = vpop.xlane.xlu1 %2991  ;;  %v4484_v52 = vpop.eup %4483  ;;  %v2335_v44 = vmul.f32 %v4482_v6, %v6807_v56  ;;  %v3258_v53 = vmax.f32 %v8176_v49, 0.0 }
 0x419   : > { %v2990_v21 = vpop.xlane.xlu0 %2989  ;;  %3391 = vst [vmem:[%s6790_s18 + $0x158] sm:$0xff] %v3327_v26  ;;  %v3326_v30 = vsel %vm6765_vm7, %v3195_v39, %v3260_v3  ;;  %4493 = vrcp.f32 %v2992_v31  ;;  %v2333_v35 = vmul.f32 %v4484_v52, %v6813_v7 }
 0x41a   : > { %3390 = vst [vmem:[%s6790_s18 + $0x150] sm:$0xff] %v3326_v30  ;;  %4495 = vrcp.f32 %v2990_v21 }
 0x41b   : > { %v4486_v25 = vpop.eup %4485 }
 0x41c   : > { %v4488_v54 = vpop.eup %4487  ;;  %v3108_v24 = vmul.f32 %v4486_v25, %v6818_v55  ;;  %v2215_v5 = vpop.xlane.xlu1 %2214  ;;  %v8177_v25 = vld [vmem:[#allocation84_spill] sm:$0xff] }
 0x41d   : > { %v2213_v14 = vpop.xlane.xlu0 %2212  ;;  %v3106_v38 = vmul.f32 %v4488_v54, %v6824_v51  ;;  %4497 = vrcp.f32 %v2215_v5  ;;  %v3265_v54 = vmax.f32 %v8177_v25, 0.0 }
 0x41e   : > { %v3194_v9 = vadd.f32 %v3108_v24, %v2335_v44  ;;  %4499 = vrcp.f32 %v2213_v14  ;;  %v8178_v24 = vld [vmem:[#allocation83_spill] sm:$0xff] }
 0x41f   : > { %v3193_v23 = vadd.f32 %v3106_v38, %v2333_v35  ;;  %v4490_v16 = vpop.eup %4489  ;;  %v3264_v5 = vmax.f32 %v8178_v24, 0.0 }
 0x420   : > { %v3325_v56 = vsel %vm6765_vm7, %v3194_v9, %v3259_v63  ;;  %v2988_v15 = vpop.xlane.xlu1 %2987  ;;  %v4492_v51 = vpop.eup %4491  ;;  %v2347_v26 = vmul.f32 %v4490_v16, %v6847_v22 }
 0x421   : > { %v2986_v55 = vpop.xlane.xlu0 %2985  ;;  %3389 = vst [vmem:[%s6790_s18 + $0x148] sm:$0xff] %v3325_v56  ;;  %v3324_v7 = vsel %vm6765_vm7, %v3193_v23, %v3258_v53  ;;  %4501 = vrcp.f32 %v2988_v15  ;;  %v2345_v30 = vmul.f32 %v4492_v51, %v6853_v17  ;;  %v8180_v51 = vld [vmem:[#allocation85_spill] sm:$0xff] }
 0x422   : > { %3388 = vst [vmem:[%s6790_s18 + $0x140] sm:$0xff] %v3324_v7  ;;  %4503 = vrcp.f32 %v2986_v55  ;;  %v8179_v55 = vld [vmem:[#allocation88_spill] sm:$0xff] }
 0x423   : > { %v4494_v3 = vpop.eup %4493  ;;  %v3263_v16 = vmax.f32 %v8179_v55, 0.0  ;;  %v8183_v55 = vld [vmem:[#allocation97_spill] sm:$0xff] }
 0x424   : > { %v4496_v39 = vpop.eup %4495  ;;  %v3120_v31 = vmul.f32 %v4494_v3, %v6858_v50  ;;  %v2227_v21 = vpop.xlane.xlu1 %2226  ;;  %v3262_v3 = vmax.f32 %v8180_v51, 0.0  ;;  %v8184_v51 = vld [vmem:[#allocation94_spill] sm:$0xff] }
 0x425   : > { %v2225_v6 = vpop.xlane.xlu0 %2224  ;;  %v3118_v52 = vmul.f32 %v4496_v39, %v6864_v20  ;;  %4505 = vrcp.f32 %v2227_v21 }
 0x426   : > { %v3200_v44 = vadd.f32 %v3120_v31, %v2347_v26  ;;  %4507 = vrcp.f32 %v2225_v6 }
 0x427   : > { %v3199_v14 = vadd.f32 %v3118_v52, %v2345_v30  ;;  %v4498_v38 = vpop.eup %4497 }
 0x428   : > { %v3331_v22 = vsel %vm6765_vm7, %v3200_v44, %v3265_v54  ;;  %v3000_v35 = vpop.xlane.xlu1 %2999  ;;  %v4500_v20 = vpop.eup %4499  ;;  %v2343_v9 = vmul.f32 %v4498_v38, %v6887_v61 }
 0x429   : > { %v2998_v50 = vpop.xlane.xlu0 %2997  ;;  %3395 = vst [vmem:[%s6790_s18 + $0x178] sm:$0xff] %v3331_v22  ;;  %v3330_v17 = vsel %vm6765_vm7, %v3199_v14, %v3264_v5  ;;  %4509 = vrcp.f32 %v3000_v35  ;;  %v2341_v56 = vmul.f32 %v4500_v20, %v6893_v40  ;;  %v8181_v5 = vld [vmem:[#allocation92_spill] sm:$0xff]  ;;  %v8182_v35 = vld [vmem:[#allocation91_spill] sm:$0xff] }
 0x42a   : > { %3394 = vst [vmem:[%s6790_s18 + $0x170] sm:$0xff] %v3330_v17  ;;  %4511 = vrcp.f32 %v2998_v50  ;;  %v3269_v14 = vmax.f32 %v8181_v5, 0.0  ;;  %v3268_v50 = vmax.f32 %v8182_v35, 0.0 }
 0x42b   : > { %v4502_v28 = vpop.eup %4501 }
 0x42c   : > { %v4504_v63 = vpop.eup %4503  ;;  %v3116_v49 = vmul.f32 %v4502_v28, %v6898_v46  ;;  %v2223_v53 = vpop.xlane.xlu1 %2222 }
 0x42d   : > { %v2221_v23 = vpop.xlane.xlu0 %2220  ;;  %v3114_v15 = vmul.f32 %v4504_v63, %v6904_v36  ;;  %4513 = vrcp.f32 %v2223_v53 }
 0x42e   : > { %v3198_v7 = vadd.f32 %v3116_v49, %v2343_v9  ;;  %4515 = vrcp.f32 %v2221_v23 }
 0x42f   : > { %v3197_v39 = vadd.f32 %v3114_v15, %v2341_v56  ;;  %v4506_v31 = vpop.eup %4505 }
 0x430   : > { %v3329_v61 = vsel %vm6765_vm7, %v3198_v7, %v3263_v16  ;;  %v2996_v26 = vpop.xlane.xlu1 %2995  ;;  %v4508_v36 = vpop.eup %4507  ;;  %v2355_v30 = vmul.f32 %v4506_v31, %v6927_v12  ;;  %v3267_v16 = vmax.f32 %v8183_v55, 0.0 }
 0x431   : > { %v2994_v46 = vpop.xlane.xlu0 %2993  ;;  %3393 = vst [vmem:[%s6790_s18 + $0x168] sm:$0xff] %v3329_v61  ;;  %v3328_v40 = vsel %vm6765_vm7, %v3197_v39, %v3262_v3  ;;  %4517 = vrcp.f32 %v2996_v26  ;;  %v2353_v44 = vmul.f32 %v4508_v36, %v6933_v29  ;;  %v3266_v3 = vmax.f32 %v8184_v51, 0.0 }
 0x432   : > { %3392 = vst [vmem:[%s6790_s18 + $0x160] sm:$0xff] %v3328_v40  ;;  %4519 = vrcp.f32 %v2994_v46 }
 0x433   : > { %v4510_v21 = vpop.eup %4509 }
 0x434   : > { %v4512_v6 = vpop.eup %4511  ;;  %v3128_v52 = vmul.f32 %v4510_v21, %v6938_v4  ;;  %v2235_v25 = vpop.xlane.xlu1 %2234 }
 0x435   : > { %v2233_v54 = vpop.xlane.xlu0 %2232  ;;  %v3126_v24 = vmul.f32 %v4512_v6, %v6944_v2  ;;  %4521 = vrcp.f32 %v2235_v25  ;;  %v8185_v25 = vld [vmem:[#allocation104_spill] sm:$0xff] }
 0x436   : > { %v3204_v22 = vadd.f32 %v3128_v52, %v2355_v30  ;;  %4523 = vrcp.f32 %v2233_v54  ;;  %v3273_v54 = vmax.f32 %v8185_v25, 0.0 }
 0x437   : > { %v3203_v38 = vadd.f32 %v3126_v24, %v2353_v44  ;;  %v4514_v20 = vpop.eup %4513  ;;  %v8186_v24 = vld [vmem:[#allocation103_spill] sm:$0xff] }
 0x438   : > { %v3335_v12 = vsel %vm6765_vm7, %v3204_v22, %v3269_v14  ;;  %v3008_v17 = vpop.xlane.xlu1 %3007  ;;  %v4516_v2 = vpop.eup %4515  ;;  %v2351_v9 = vmul.f32 %v4514_v20, %v6967_v18  ;;  %v3272_v5 = vmax.f32 %v8186_v24, 0.0 }
 0x439   : > { %v3006_v4 = vpop.xlane.xlu0 %3005  ;;  %3399 = vst [vmem:[%s6790_s18 + $0x198] sm:$0xff] %v3335_v12  ;;  %v3334_v29 = vsel %vm6765_vm7, %v3203_v38, %v3268_v50  ;;  %4525 = vrcp.f32 %v3008_v17  ;;  %v2349_v56 = vmul.f32 %v4516_v2, %v6973_v0  ;;  %v8187_v12 = vld [vmem:[#allocation6_spill] sm:$0xff] }
 0x43a   : > { %3398 = vst [vmem:[%s6790_s18 + $0x190] sm:$0xff] %v3334_v29  ;;  %4527 = vrcp.f32 %v3006_v4  ;;  %v8188_v4 = vld [vmem:[#allocation137_spill] sm:$0xff] }
 0x43b   : > { %v4518_v28 = vpop.eup %4517 }
 0x43c   : > { %v4520_v63 = vpop.eup %4519  ;;  %v3124_v49 = vmul.f32 %v4518_v28, %v6978_v60  ;;  %v2231_v53 = vpop.xlane.xlu1 %2230  ;;  %v8189_v28 = vld [vmem:[#allocation124_spill] sm:$0xff] }
 0x43d   : > { %v2229_v23 = vpop.xlane.xlu0 %2228  ;;  %v3122_v15 = vmul.f32 %v4520_v63, %v6984_v32  ;;  %4529 = vrcp.f32 %v2231_v53  ;;  %v8191_v53 = vld [vmem:[#allocation110_spill] sm:$0xff] }
 0x43e   : > { %v3202_v7 = vadd.f32 %v3124_v49, %v2351_v9  ;;  %4531 = vrcp.f32 %v2229_v23  ;;  %v8190_v9 = vld [vmem:[#allocation139_spill] sm:$0xff]  ;;  %v3271_v23 = vmax.f32 %v8191_v53, 0.0 }
 0x43f   : > { %v3201_v39 = vadd.f32 %v3122_v15, %v2349_v56  ;;  %v4522_v26 = vpop.eup %4521  ;;  %v8192_v15 = vld [vmem:[#allocation107_spill] sm:$0xff] }
 0x440   : > { %v3333_v18 = vsel %vm6765_vm7, %v3202_v7, %v3267_v16  ;;  %v3004_v61 = vpop.xlane.xlu1 %3003  ;;  %v4524_v32 = vpop.eup %4523  ;;  %v2363_v40 = vmul.f32 %v4522_v26, %v7007_v42  ;;  %v3270_v55 = vmax.f32 %v8192_v15, 0.0 }
 0x441   : > { %v3002_v60 = vpop.xlane.xlu0 %3001  ;;  %3397 = vst [vmem:[%s6790_s18 + $0x188] sm:$0xff] %v3333_v18  ;;  %v3332_v0 = vsel %vm6765_vm7, %v3201_v39, %v3266_v3  ;;  %4533 = vrcp.f32 %v3004_v61  ;;  %v2361_v30 = vmul.f32 %v4524_v32, %v7013_v1 }
 0x442   : > { %3396 = vst [vmem:[%s6790_s18 + $0x180] sm:$0xff] %v3332_v0  ;;  %4535 = vrcp.f32 %v3002_v60 }
 0x443   : > { %v4526_v46 = vpop.eup %4525 }
 0x444   : > { %v4528_v31 = vpop.eup %4527  ;;  %v3136_v36 = vmul.f32 %v4526_v46, %v7018_v11  ;;  %v2243_v21 = vpop.xlane.xlu1 %2242 }
 0x445   : > { %v2241_v6 = vpop.xlane.xlu0 %2240  ;;  %v3134_v52 = vmul.f32 %v4528_v31, %v7024_v57  ;;  %4537 = vrcp.f32 %v2243_v21  ;;  %v8193_v21 = vld [vmem:[#allocation116_spill] sm:$0xff] }
 0x446   : > { %v3208_v44 = vadd.f32 %v3136_v36, %v2363_v40  ;;  %4539 = vrcp.f32 %v2241_v6  ;;  %v3277_v6 = vmax.f32 %v8193_v21, 0.0 }
 0x447   : > { %v3207_v14 = vadd.f32 %v3134_v52, %v2361_v30  ;;  %v4530_v35 = vpop.eup %4529  ;;  %v8194_v52 = vld [vmem:[#allocation115_spill] sm:$0xff] }
 0x448   : > { %v3339_v42 = vsel %vm6765_vm7, %v3208_v44, %v3273_v54  ;;  %v3016_v22 = vpop.xlane.xlu1 %3015  ;;  %v4532_v57 = vpop.eup %4531  ;;  %v2359_v17 = vmul.f32 %v4530_v35, %v8187_v12  ;;  %v3276_v25 = vmax.f32 %v8194_v52, 0.0 }
 0x449   : > { %v3014_v11 = vpop.xlane.xlu0 %3013  ;;  %3403 = vst [vmem:[%s6790_s18 + $0x1b8] sm:$0xff] %v3339_v42  ;;  %v3338_v1 = vsel %vm6765_vm7, %v3207_v14, %v3272_v5  ;;  %4541 = vrcp.f32 %v3016_v22  ;;  %v2357_v63 = vmul.f32 %v4532_v57, %v8189_v28 }
 0x44a   : > { %3402 = vst [vmem:[%s6790_s18 + $0x1b0] sm:$0xff] %v3338_v1  ;;  %4543 = vrcp.f32 %v3014_v11 }
 0x44b   : > { %v4534_v50 = vpop.eup %4533 }
 0x44c   : > { %v4536_v38 = vpop.eup %4535  ;;  %v3132_v20 = vmul.f32 %v4534_v50, %v8188_v4  ;;  %v2239_v29 = vpop.xlane.xlu1 %2238  ;;  %v8195_v50 = vld [vmem:[#allocation122_spill] sm:$0xff] }
 0x44d   : > { %v2237_v2 = vpop.xlane.xlu0 %2236  ;;  %v3130_v49 = vmul.f32 %v4536_v38, %v8190_v9  ;;  %4545 = vrcp.f32 %v2239_v29  ;;  %v3275_v38 = vmax.f32 %v8195_v50, 0.0 }
 0x44e   : > { %v3206_v56 = vadd.f32 %v3132_v20, %v2359_v17  ;;  %4547 = vrcp.f32 %v2237_v2  ;;  %v8196_v17 = vld [vmem:[#allocation119_spill] sm:$0xff] }
 0x44f   : > { %v3205_v16 = vadd.f32 %v3130_v49, %v2357_v63  ;;  %v4538_v39 = vpop.eup %4537  ;;  %v3274_v4 = vmax.f32 %v8196_v17, 0.0 }
 0x450   : > { %v3337_v7 = vsel %vm6765_vm7, %v3206_v56, %v3271_v23  ;;  %v3012_v51 = vpop.xlane.xlu1 %3011  ;;  %v4540_v61 = vpop.eup %4539  ;;  %v2371_v0 = vmul.f32 %v4538_v39, %v7087_v19 }
 0x451   : > { %v3010_v3 = vpop.xlane.xlu0 %3009  ;;  %3401 = vst [vmem:[%s6790_s18 + $0x1a8] sm:$0xff] %v3337_v7  ;;  %v3336_v18 = vsel %vm6765_vm7, %v3205_v16, %v3270_v55  ;;  %4549 = vrcp.f32 %v3012_v51  ;;  %v2369_v40 = vmul.f32 %v4540_v61, %v7093_v58  ;;  %v8197_v55 = vld [vmem:[#allocation133_spill] sm:$0xff] }
 0x452   : > { %3400 = vst [vmem:[%s6790_s18 + $0x1a0] sm:$0xff] %v3336_v18  ;;  %4551 = vrcp.f32 %v3010_v3  ;;  %v3279_v16 = vmax.f32 %v8197_v55, 0.0  ;;  %v8198_v3 = vld [vmem:[#allocation130_spill] sm:$0xff] }
 0x453   : > { %v4542_v60 = vpop.eup %4541  ;;  %v3278_v39 = vmax.f32 %v8198_v3, 0.0 }
 0x454   : > { %v4544_v26 = vpop.eup %4543  ;;  %v3144_v32 = vmul.f32 %v4542_v60, %v7098_v37  ;;  %v2251_v46 = vpop.xlane.xlu1 %2250 }
 0x455   : > { %v2249_v31 = vpop.xlane.xlu0 %2248  ;;  %v3142_v36 = vmul.f32 %v4544_v26, %v7104_v48 }
 0x456   : > { %v3212_v30 = vadd.f32 %v3144_v32, %v2371_v0 }
 0x457   : > { %v3211_v54 = vadd.f32 %v3142_v36, %v2369_v40  ;;  %v4546_v5 = vpop.eup %4545 }
 0x458   : > { %v3343_v44 = vsel %vm6765_vm7, %v3212_v30, %v3277_v6  ;;  %v2247_v24 = vpop.xlane.xlu1 %2246  ;;  %v4548_v14 = vpop.eup %4547  ;;  %v2367_v42 = vmul.f32 %v4546_v5, %v7127_v43 }
 0x459   : > { %v2245_v19 = vpop.xlane.xlu0 %2244  ;;  %3407 = vst [vmem:[%s6790_s18 + $0x1d8] sm:$0xff] %v3343_v44  ;;  %v3342_v37 = vsel %vm6765_vm7, %v3211_v54, %v3276_v25  ;;  %4553 = vrcp.f32 %v2247_v24  ;;  %v2365_v1 = vmul.f32 %v4548_v14, %v7133_v45 }
 0x45a   : > { %3406 = vst [vmem:[%s6790_s18 + $0x1d0] sm:$0xff] %v3342_v37  ;;  %4555 = vrcp.f32 %v2245_v19 }
 0x45b   : > { %v4550_v58 = vpop.eup %4549 }
 0x45c   : > { %v4552_v48 = vpop.eup %4551  ;;  %v3140_v22 = vmul.f32 %v4550_v58, %v7138_v10  ;;  %v3020_v11 = vpop.xlane.xlu1 %3019 }
 0x45d   : > { %v3018_v35 = vpop.xlane.xlu0 %3017  ;;  %v3138_v57 = vmul.f32 %v4552_v48, %v7144_v8  ;;  %4557 = vrcp.f32 %v3020_v11 }
 0x45e   : > { %v3210_v12 = vadd.f32 %v3140_v22, %v2367_v42  ;;  %4559 = vrcp.f32 %v3018_v35 }
 0x45f   : > { %v3209_v20 = vadd.f32 %v3138_v57, %v2365_v1  ;;  %4561 = vrcp.f32 %v2251_v46 }
 0x460   : > { %v3341_v43 = vsel %vm6765_vm7, %v3210_v12, %v3275_v38  ;;  %4563 = vrcp.f32 %v2249_v31  ;;  %v3024_v10 = vpop.xlane.xlu1 %3023  ;;  %v8201_v31 = vld [vmem:[#allocation127_spill] sm:$0xff] }
 0x461   : > { %v3022_v29 = vpop.xlane.xlu0 %3021  ;;  %3405 = vst [vmem:[%s6790_s18 + $0x1c8] sm:$0xff] %v3341_v43  ;;  %v3340_v45 = vsel %vm6765_vm7, %v3209_v20, %v3274_v4  ;;  %4565 = vrcp.f32 %v3024_v10  ;;  %v3280_v40 = vmax.f32 %v8201_v31, 0.0 }
 0x462   : > { %3404 = vst [vmem:[%s6790_s18 + $0x1c0] sm:$0xff] %v3340_v45  ;;  %4567 = vrcp.f32 %v3022_v29 }
 0x463   : > { %v4554_v8 = vpop.eup %4553 }
 0x464   : > { %v4556_v2 = vpop.eup %4555  ;;  %v2375_v9 = vmul.f32 %v4554_v8, %v7163_v34 }
 0x465   : > { %v2373_v23 = vmul.f32 %v4556_v2, %v7168_v41 }
 0x467   : > { %v4558_v28 = vpop.eup %4557 }
 0x468   : > { %v4560_v63 = vpop.eup %4559  ;;  %v3148_v49 = vmul.f32 %v4558_v28, %v7180_v62 }
 0x469   : > { %v4562_v53 = vpop.eup %4561  ;;  %v3146_v56 = vmul.f32 %v4560_v63, %v7184_v27  ;;  %v8199_v27 = vld [vmem:[#allocation136_spill] sm:$0xff] }
 0x46a   : > { %v4564_v15 = vpop.eup %4563  ;;  %v3214_v7 = vadd.f32 %v3148_v49, %v2375_v9  ;;  %v2379_v34 = vmul.f32 %v4562_v53, %v7156_v33  ;;  %v8200_v33 = vld [vmem:[#allocation128_spill] sm:$0xff] }
 0x46b   : > { %v4566_v51 = vpop.eup %4565  ;;  %v3213_v18 = vadd.f32 %v3146_v56, %v2373_v23  ;;  %v2377_v60 = vmul.f32 %v4564_v15, %v8199_v27  ;;  %v3281_v32 = vmax.f32 %v8200_v33, 0.0 }
 0x46c   : > { %v4568_v61 = vpop.eup %4567  ;;  %v3345_v62 = vsel %vm6765_vm7, %v3214_v7, %v3279_v16  ;;  %v3152_v41 = vmul.f32 %v4566_v51, %v7187_v47 }
 0x46d   : > { %3409 = vst [vmem:[%s6790_s18 + $0x1e8] sm:$0xff] %v3345_v62  ;;  %v3344_v26 = vsel %vm6765_vm7, %v3213_v18, %v3278_v39  ;;  %v3150_v0 = vmul.f32 %v4568_v61, %v7192_v13 }
 0x46e   : > { %3408 = vst [vmem:[%s6790_s18 + $0x1e0] sm:$0xff] %v3344_v26  ;;  %v3216_v46 = vadd.f32 %v3152_v41, %v2379_v34 }
 0x46f   : > { %v3215_v47 = vadd.f32 %v3150_v0, %v2377_v60 }
 0x470   : > { %v3347_v13 = vsel %vm6765_vm7, %v3216_v46, %v3281_v32 }
 0x471   : > { %3411 = vst [vmem:[%s6790_s18 + $0x1f8] sm:$0xff] %v3347_v13  ;;  %v3346_v36 = vsel %vm6765_vm7, %v3215_v47, %v3280_v40 }
 0x472   : > { %3410 = vst [vmem:[%s6790_s18 + $0x1f0] sm:$0xff] %v3346_v36 }
 0x473   : > { %4583 = shalt.err (!%p4580_p3)
}
 0x474   : > { %s4584_s15 = scalar_lea.hbm %s7441_s28, 8192  ;;  %s4588_s16 = scalar_lea.hbm %s7500_s6, 16384 }
 0x475   : > { %p4585_p4 = scmp.ne.s32.totalorder %s7441_s28, %s4584_s15  ;;  %p4589_p9 = scmp.lt.u32.totalorder %s7441_s28, %s7500_s6 }
 0x476   : > { %p4590_p10 = scmp.lt.u32.totalorder %s4588_s16, %s4584_s15  ;;  %p4592_p12 = scmp.lt.u32.totalorder %s4584_s15, %s7441_s28 }
 0x477   : > { %p4586_p7 = pnand %p4585_p4, %p4710_p5 }
 0x478   : > { %p4591_p11 = por %p4590_p10, %p4589_p9 }
 0x479   : > { %p4587_p8 = pneg %p4586_p7 }
 0x47a   : > { %p4593_p13 = por %p4592_p12, %p4591_p11 }
 0x47c   : > { %p4594_p0 = pnand %p4593_p13, %p4587_p8 }
 0x47e   : > { %4597 = shalt.err (!%p4594_p0)
}
 0x47f   : > { %s4635_s19 = smov 128   ;;  %s4636_s25 = smov 8  }
 0x480   : > { %3980 = dma.vmem_to_hbm [thread:$0]  (%p4710_p5), %s7443_s20, 8192, %s7441_s28, %s7453_s29, %s4635_s19, %s4635_s19, %s4636_s25  }
 0x481 PF: > { %p3986_p1 = scmp.ge.s32.totalorder %s4632_s24, 2  ;;  %s3441_s26 = sand.u32 1, %s4620_s21  }
 0x482   : > { %s3442_s9 = scalar_lea.sflag [#allocation3], %s3441_s26 }
 0x483   : > { %p3983_p2 = pnand %p3986_p1, %p4714_p6 }
 0x485   : > { %4615 = dma.done.wait (!%p3983_p2), %s3442_s9, 8192  }
 0x486   : > { %4617 = vsyncadd (!%p3983_p2), %s3442_s9, 4294959104  ;;  %p16_p3 = scmp.ge.s32.totalorder %s4697_s27, 4   ;;  %s8202_s21 = smov %s4624_s22 }
 0x487   : > { %s8203_s22 = smov %s4628_s23  ;;  %s8204_s23 = smov %s4708_s30 }
 0x488   : > { %s8205_s24 = smov %s4697_s27  ;;  %18 = sbr.rel (!%p16_p3) target bundleno = 3 (0x3), region = 82 }
 0x48f   :  { %3447 = vsyncpa [#allocation3], 1 }
 0x490   :  { %3449 = vsyncpa [#allocation3 + $0x1], 1 }

</bundles_post_ra>
